<compile_context>
chip_gen: v5e
topology: v5e:2x2
jax: 0.10.0
libtpu: 0.0.40
codegen_flags: <defaults>
</compile_context>

<pallas_src>
import functools
import math

import jax
import jax.numpy as jnp
from jax.experimental import pallas as pl
from jax.experimental.pallas import tpu as pltpu


# ----------------------------------------------------------------------------
# Kernel
# ----------------------------------------------------------------------------
def _dense_vae_kernel(n_enc, n_dec, latent_dim, *refs):
    """Fused VAE forward for one batch tile.

    Ref ordering (inputs then outputs):
      inputs : x (bf16), eps (f32),
               [enc_w (bf16), enc_b (f32)] * n_enc,
               head_w (bf16, hidden x 2*latent), head_b (f32, 1 x 2*latent),
               [dec_w (bf16), dec_b (f32)] * n_dec
      outputs: recon (f32), mulv (f32, batch x 2*latent)  -- [mu | logvar]
    """
    n_in = 2 + 2 * n_enc + 2 + 2 * n_dec
    in_refs = refs[:n_in]
    recon_ref, mulv_ref = refs[n_in:]

    x = in_refs[0][...]      # bf16
    eps = in_refs[1][...]    # f32
    idx = 2

    # ---- encoder: (Linear + ReLU) stack, bf16 matmuls, f32 accumulate ----
    h = x
    for _ in range(n_enc):
        w = in_refs[idx][...]
        b = in_refs[idx + 1][...]
        idx += 2
        h = jnp.maximum(
            jnp.dot(h, w, preferred_element_type=jnp.float32) + b, 0.0
        ).astype(jnp.bfloat16)

    # ---- fused latent heads: one matmul producing [mu | logvar] ----
    head_w = in_refs[idx][...]
    head_b = in_refs[idx + 1][...]
    idx += 2
    mulv = jnp.dot(h, head_w, preferred_element_type=jnp.float32) + head_b
    mulv_ref[...] = mulv                       # single lane-packed store

    mu = mulv[:, :latent_dim]
    lv = mulv[:, latent_dim:]

    # ---- reparameterization (latent_sample), f32 element-wise ----
    z = mu + eps * jnp.exp(0.5 * lv)

    # ---- decoder: (Linear + ReLU) stack, final Linear without ReLU ----
    d = z.astype(jnp.bfloat16)
    for i in range(n_dec):
        w = in_refs[idx][...]
        b = in_refs[idx + 1][...]
        idx += 2
        d = jnp.dot(d, w, preferred_element_type=jnp.float32) + b
        if i < n_dec - 1:
            d = jnp.maximum(d, 0.0).astype(jnp.bfloat16)

    # ---- final element-wise cos ----
    recon_ref[...] = jnp.cos(d)


# ----------------------------------------------------------------------------
# Wrapper
# ----------------------------------------------------------------------------
def dense_vae_forward(x, eps, params, tb=None):
    """params: dict with 'enc' (list of (w, b)), 'mu', 'lv', 'dec' (list of (w, b)).

    Weights are (in, out) f32, biases (1, out) f32; this wrapper casts the
    matmul weights to bf16 and fuses the mu/logvar head.
    """
    enc, (mu_w, mu_b), (lv_w, lv_b), dec = (
        params["enc"],
        params["mu"],
        params["lv"],
        params["dec"],
    )
    n_enc, n_dec = len(enc), len(dec)

    batch, input_size = x.shape
    latent_dim = mu_w.shape[1]

    # Fuse mu/logvar heads into one (hidden, 2*latent) weight.
    head_w = jnp.concatenate([mu_w, lv_w], axis=1).astype(jnp.bfloat16)
    head_b = jnp.concatenate([mu_b, lv_b], axis=1)  # bias stays f32

    enc_bf = [(w.astype(jnp.bfloat16), b) for w, b in enc]
    dec_bf = [(w.astype(jnp.bfloat16), b) for w, b in dec]

    x_in = x.astype(jnp.bfloat16)
    eps_in = eps.astype(jnp.float32)

    # ---- batch tiling (second-to-last dim must be mult. of 8 or full extent) ----
    if tb is None:
        tb = min(256, batch)
    if tb >= batch:
        tb = batch
        pb = batch
    else:
        tb = max(8, (tb // 8) * 8)
        pb = ((batch + tb - 1) // tb) * tb
    if pb != batch:
        pad = pb - batch
        x_in = jnp.pad(x_in, ((0, pad), (0, 0)))
        eps_in = jnp.pad(eps_in, ((0, pad), (0, 0)))
    grid = (pb // tb,)

    act_map = lambda i: (i, 0)   # blocked over batch
    wt_map = lambda i: (0, 0)    # resident across all grid steps

    flat_inputs = [x_in, eps_in]
    in_specs = [
        pl.BlockSpec((tb, input_size), act_map),
        pl.BlockSpec((tb, latent_dim), act_map),
    ]
    for w, b in enc_bf:
        flat_inputs += [w, b]
        in_specs += [pl.BlockSpec(w.shape, wt_map), pl.BlockSpec(b.shape, wt_map)]
    flat_inputs += [head_w, head_b]
    in_specs += [pl.BlockSpec(head_w.shape, wt_map), pl.BlockSpec(head_b.shape, wt_map)]
    for w, b in dec_bf:
        flat_inputs += [w, b]
        in_specs += [pl.BlockSpec(w.shape, wt_map), pl.BlockSpec(b.shape, wt_map)]

    out_shape = (
        jax.ShapeDtypeStruct((pb, input_size), jnp.float32),      # x_recon
        jax.ShapeDtypeStruct((pb, 2 * latent_dim), jnp.float32),  # [mu | logvar]
    )
    out_specs = (
        pl.BlockSpec((tb, input_size), act_map),
        pl.BlockSpec((tb, 2 * latent_dim), act_map),
    )

    kernel = functools.partial(_dense_vae_kernel, n_enc, n_dec, latent_dim)

    recon_p, mulv_p = pl.pallas_call(
        kernel,
        out_shape=out_shape,
        grid=grid,
        in_specs=in_specs,
        out_specs=out_specs,
        compiler_params=pltpu.CompilerParams(
            dimension_semantics=("parallel",),   # shards batch across v7x's 2 TCs
            vmem_limit_bytes=32 * 1024 * 1024,
        ),
    )(*flat_inputs)

    recon = recon_p[:batch]
    mu = mulv_p[:batch, :latent_dim]
    lv = mulv_p[:batch, latent_dim:]
    return recon, mu, lv


# ----------------------------------------------------------------------------
# Deterministic parameter construction (PyTorch-default-style uniform init)
# ----------------------------------------------------------------------------
def _init_linear(key, fan_in, fan_out):
    kw, kb = jax.random.split(key)
    bound = 1.0 / math.sqrt(fan_in)
    w = jax.random.uniform(kw, (fan_in, fan_out), jnp.float32, -bound, bound)
    b = jax.random.uniform(kb, (1, fan_out), jnp.float32, -bound, bound)
    return w, b


def make_params(key, latent_dimension, hidden_neurons, input_size):
    keys = jax.random.split(key, 2 * len(hidden_neurons) + 3 + 1)
    ki = iter(range(len(keys)))

    enc = []
    prev = input_size
    for h in hidden_neurons:
        enc.append(_init_linear(keys[next(ki)], prev, h))
        prev = h

    mu = _init_linear(keys[next(ki)], hidden_neurons[-1], latent_dimension)
    lv = _init_linear(keys[next(ki)], hidden_neurons[-1], latent_dimension)

    dec = []
    prev = latent_dimension
    for h in reversed(hidden_neurons):
        dec.append(_init_linear(keys[next(ki)], prev, h))
        prev = h
    dec.append(_init_linear(keys[next(ki)], hidden_neurons[0], input_size))

    return {"enc": enc, "mu": mu, "lv": lv, "dec": dec}


# ----------------------------------------------------------------------------
# Pure-JAX reference (same bf16-matmul / f32-accumulate numerics as the kernel)
# ----------------------------------------------------------------------------
def dense_vae_ref(x, eps, params):
    def dot_bf16(a, w):
        return jnp.dot(
            a.astype(jnp.bfloat16),
            w.astype(jnp.bfloat16),
            preferred_element_type=jnp.float32,
        )

    h = x
    for w, b in params["enc"]:
        h = jnp.maximum(dot_bf16(h, w) + b, 0.0)
    mu = dot_bf16(h, params["mu"][0]) + params["mu"][1]
    lv = dot_bf16(h, params["lv"][0]) + params["lv"][1]
    z = mu + eps * jnp.exp(0.5 * lv)
    d = z
    n_dec = len(params["dec"])
    for i, (w, b) in enumerate(params["dec"]):
        d = dot_bf16(d, w) + b
        if i < n_dec - 1:
            d = jnp.maximum(d, 0.0)
    return jnp.cos(d), mu, lv


# ----------------------------------------------------------------------------
# Main
# ----------------------------------------------------------------------------
if __name__ == "__main__":
    batch = 256            # small, but exercises a 2-step batch grid (tb=128)
    input_size = 32
    hidden_neurons = [32, 16]
    latent_dimension = 8

    key = jax.random.PRNGKey(0)
    k_param, k_x, k_eps = jax.random.split(key, 3)

    params = make_params(k_param, latent_dimension, hidden_neurons, input_size)
    x = jax.random.normal(k_x, (batch, input_size), jnp.float32)
    eps = jax.random.normal(k_eps, (batch, latent_dimension), jnp.float32)

    recon, mu, lv = dense_vae_forward(x, eps, params, tb=128)
    jax.block_until_ready((recon, mu, lv))

    r_recon, r_mu, r_lv = dense_vae_ref(x, eps, params)
    assert recon.shape == (batch, input_size)
    assert mu.shape == (batch, latent_dimension)
    assert lv.shape == (batch, latent_dimension)
    assert jnp.allclose(recon, r_recon, atol=1e-3, rtol=1e-3)
    assert jnp.allclose(mu, r_mu, atol=1e-3, rtol=1e-3)
    assert jnp.allclose(lv, r_lv, atol=1e-3, rtol=1e-3)

    print("KERNEL_OK")
</pallas_src>

<mosaic_0001>
module attributes {stable_mosaic.version = 11 : i64} {
  func.func @_dense_vae_kernel(%arg0: i32, %arg1: memref<128x32xbf16, #tpu.memory_space<vmem>>, %arg2: memref<128x8xf32, #tpu.memory_space<vmem>>, %arg3: memref<32x32xbf16, #tpu.memory_space<vmem>>, %arg4: memref<1x32xf32, #tpu.memory_space<vmem>>, %arg5: memref<32x16xbf16, #tpu.memory_space<vmem>>, %arg6: memref<1x16xf32, #tpu.memory_space<vmem>>, %arg7: memref<16x16xbf16, #tpu.memory_space<vmem>>, %arg8: memref<1x16xf32, #tpu.memory_space<vmem>>, %arg9: memref<8x16xbf16, #tpu.memory_space<vmem>>, %arg10: memref<1x16xf32, #tpu.memory_space<vmem>>, %arg11: memref<16x32xbf16, #tpu.memory_space<vmem>>, %arg12: memref<1x32xf32, #tpu.memory_space<vmem>>, %arg13: memref<32x32xbf16, #tpu.memory_space<vmem>>, %arg14: memref<1x32xf32, #tpu.memory_space<vmem>>, %arg15: memref<128x32xf32, #tpu.memory_space<vmem>>, %arg16: memref<128x16xf32, #tpu.memory_space<vmem>>) attributes {dimension_semantics = [#tpu.dimension_semantics<parallel>], iteration_bounds = array<i64: 2>, scalar_prefetch = 0 : i64, scratch_operands = 0 : i64, tpu.core_type = #tpu.core_type<tc>, window_params = [{transform_indices = @transform_0, window_bounds = array<i64: 128, 32>}, {transform_indices = @transform_1, window_bounds = array<i64: 128, 8>}, {pipeline_mode = #tpu.pipeline_mode<synchronous>, transform_indices = @transform_2, window_bounds = array<i64: 32, 32>}, {pipeline_mode = #tpu.pipeline_mode<synchronous>, transform_indices = @transform_3, window_bounds = array<i64: 1, 32>}, {pipeline_mode = #tpu.pipeline_mode<synchronous>, transform_indices = @transform_4, window_bounds = array<i64: 32, 16>}, {pipeline_mode = #tpu.pipeline_mode<synchronous>, transform_indices = @transform_5, window_bounds = array<i64: 1, 16>}, {pipeline_mode = #tpu.pipeline_mode<synchronous>, transform_indices = @transform_6, window_bounds = array<i64: 16, 16>}, {pipeline_mode = #tpu.pipeline_mode<synchronous>, transform_indices = @transform_7, window_bounds = array<i64: 1, 16>}, {pipeline_mode = #tpu.pipeline_mode<synchronous>, transform_indices = @transform_8, window_bounds = array<i64: 8, 16>}, {pipeline_mode = #tpu.pipeline_mode<synchronous>, transform_indices = @transform_9, window_bounds = array<i64: 1, 16>}, {pipeline_mode = #tpu.pipeline_mode<synchronous>, transform_indices = @transform_10, window_bounds = array<i64: 16, 32>}, {pipeline_mode = #tpu.pipeline_mode<synchronous>, transform_indices = @transform_11, window_bounds = array<i64: 1, 32>}, {pipeline_mode = #tpu.pipeline_mode<synchronous>, transform_indices = @transform_12, window_bounds = array<i64: 32, 32>}, {pipeline_mode = #tpu.pipeline_mode<synchronous>, transform_indices = @transform_13, window_bounds = array<i64: 1, 32>}, {transform_indices = @transform_14, window_bounds = array<i64: 128, 32>}, {transform_indices = @transform_15, window_bounds = array<i64: 128, 16>}]} {
    %c0 = arith.constant 0 : index
    %c0_0 = arith.constant 0 : index
    %0 = vector.load %arg1[%c0, %c0_0] : memref<128x32xbf16, #tpu.memory_space<vmem>>, vector<128x32xbf16>
    %c0_1 = arith.constant 0 : index
    %c0_2 = arith.constant 0 : index
    %1 = vector.load %arg2[%c0_1, %c0_2] : memref<128x8xf32, #tpu.memory_space<vmem>>, vector<128x8xf32>
    %c0_3 = arith.constant 0 : index
    %c0_4 = arith.constant 0 : index
    %2 = vector.load %arg3[%c0_3, %c0_4] : memref<32x32xbf16, #tpu.memory_space<vmem>>, vector<32x32xbf16>
    %c0_5 = arith.constant 0 : index
    %c0_6 = arith.constant 0 : index
    %3 = vector.load %arg4[%c0_5, %c0_6] : memref<1x32xf32, #tpu.memory_space<vmem>>, vector<1x32xf32>
    %cst = arith.constant dense<0.000000e+00> : vector<128x32xf32>
    %4 = tpu.matmul %0, %2, %cst {dimension_numbers = #tpu.dot_dimension_numbers<[1], [0], [0], [1], [0, 0, 1, 1], [], []>} : vector<128x32xbf16>, vector<32x32xbf16>, vector<128x32xf32> -> vector<128x32xf32>
    %5 = vector.broadcast %3 : vector<1x32xf32> to vector<128x32xf32>
    %6 = arith.addf %4, %5 : vector<128x32xf32>
    %cst_7 = arith.constant 0.000000e+00 : f32
    %7 = vector.broadcast %cst_7 : f32 to vector<128x32xf32>
    %8 = arith.maximumf %6, %7 : vector<128x32xf32>
    %9 = arith.truncf %8 : vector<128x32xf32> to vector<128x32xbf16>
    %c0_8 = arith.constant 0 : index
    %c0_9 = arith.constant 0 : index
    %10 = vector.load %arg5[%c0_8, %c0_9] : memref<32x16xbf16, #tpu.memory_space<vmem>>, vector<32x16xbf16>
    %c0_10 = arith.constant 0 : index
    %c0_11 = arith.constant 0 : index
    %11 = vector.load %arg6[%c0_10, %c0_11] : memref<1x16xf32, #tpu.memory_space<vmem>>, vector<1x16xf32>
    %cst_12 = arith.constant dense<0.000000e+00> : vector<128x16xf32>
    %12 = tpu.matmul %9, %10, %cst_12 {dimension_numbers = #tpu.dot_dimension_numbers<[1], [0], [0], [1], [0, 0, 1, 1], [], []>} : vector<128x32xbf16>, vector<32x16xbf16>, vector<128x16xf32> -> vector<128x16xf32>
    %13 = vector.broadcast %11 : vector<1x16xf32> to vector<128x16xf32>
    %14 = arith.addf %12, %13 : vector<128x16xf32>
    %cst_13 = arith.constant 0.000000e+00 : f32
    %15 = vector.broadcast %cst_13 : f32 to vector<128x16xf32>
    %16 = arith.maximumf %14, %15 : vector<128x16xf32>
    %17 = arith.truncf %16 : vector<128x16xf32> to vector<128x16xbf16>
    %c0_14 = arith.constant 0 : index
    %c0_15 = arith.constant 0 : index
    %18 = vector.load %arg7[%c0_14, %c0_15] : memref<16x16xbf16, #tpu.memory_space<vmem>>, vector<16x16xbf16>
    %c0_16 = arith.constant 0 : index
    %c0_17 = arith.constant 0 : index
    %19 = vector.load %arg8[%c0_16, %c0_17] : memref<1x16xf32, #tpu.memory_space<vmem>>, vector<1x16xf32>
    %cst_18 = arith.constant dense<0.000000e+00> : vector<128x16xf32>
    %20 = tpu.matmul %17, %18, %cst_18 {dimension_numbers = #tpu.dot_dimension_numbers<[1], [0], [0], [1], [0, 0, 1, 1], [], []>} : vector<128x16xbf16>, vector<16x16xbf16>, vector<128x16xf32> -> vector<128x16xf32>
    %21 = vector.broadcast %19 : vector<1x16xf32> to vector<128x16xf32>
    %22 = arith.addf %20, %21 : vector<128x16xf32>
    %c0_19 = arith.constant 0 : index
    %c0_20 = arith.constant 0 : index
    %23 = vector.load %arg16[%c0_19, %c0_20] : memref<128x16xf32, #tpu.memory_space<vmem>>, vector<128x16xf32>
    tpu.vector_store %arg16[%c0_19, %c0_20], %22 {strides = array<i32>} : memref<128x16xf32, #tpu.memory_space<vmem>>, vector<128x16xf32>,
    %24 = vector.extract_strided_slice %22 {offsets = [0, 0], sizes = [128, 8], strides = [1, 1]} : vector<128x16xf32> to vector<128x8xf32>
    %25 = vector.extract_strided_slice %22 {offsets = [0, 8], sizes = [128, 8], strides = [1, 1]} : vector<128x16xf32> to vector<128x8xf32>
    %cst_21 = arith.constant 5.000000e-01 : f32
    %26 = vector.broadcast %cst_21 : f32 to vector<128x8xf32>
    %27 = arith.mulf %26, %25 : vector<128x8xf32>
    %28 = math.exp %27 : vector<128x8xf32>
    %29 = arith.mulf %1, %28 : vector<128x8xf32>
    %30 = arith.addf %24, %29 : vector<128x8xf32>
    %31 = arith.truncf %30 : vector<128x8xf32> to vector<128x8xbf16>
    %c0_22 = arith.constant 0 : index
    %c0_23 = arith.constant 0 : index
    %32 = vector.load %arg9[%c0_22, %c0_23] : memref<8x16xbf16, #tpu.memory_space<vmem>>, vector<8x16xbf16>
    %c0_24 = arith.constant 0 : index
    %c0_25 = arith.constant 0 : index
    %33 = vector.load %arg10[%c0_24, %c0_25] : memref<1x16xf32, #tpu.memory_space<vmem>>, vector<1x16xf32>
    %cst_26 = arith.constant dense<0.000000e+00> : vector<128x16xf32>
    %34 = tpu.matmul %31, %32, %cst_26 {dimension_numbers = #tpu.dot_dimension_numbers<[1], [0], [0], [1], [0, 0, 1, 1], [], []>} : vector<128x8xbf16>, vector<8x16xbf16>, vector<128x16xf32> -> vector<128x16xf32>
    %35 = vector.broadcast %33 : vector<1x16xf32> to vector<128x16xf32>
    %36 = arith.addf %34, %35 : vector<128x16xf32>
    %cst_27 = arith.constant 0.000000e+00 : f32
    %37 = vector.broadcast %cst_27 : f32 to vector<128x16xf32>
    %38 = arith.maximumf %36, %37 : vector<128x16xf32>
    %39 = arith.truncf %38 : vector<128x16xf32> to vector<128x16xbf16>
    %c0_28 = arith.constant 0 : index
    %c0_29 = arith.constant 0 : index
    %40 = vector.load %arg11[%c0_28, %c0_29] : memref<16x32xbf16, #tpu.memory_space<vmem>>, vector<16x32xbf16>
    %c0_30 = arith.constant 0 : index
    %c0_31 = arith.constant 0 : index
    %41 = vector.load %arg12[%c0_30, %c0_31] : memref<1x32xf32, #tpu.memory_space<vmem>>, vector<1x32xf32>
    %cst_32 = arith.constant dense<0.000000e+00> : vector<128x32xf32>
    %42 = tpu.matmul %39, %40, %cst_32 {dimension_numbers = #tpu.dot_dimension_numbers<[1], [0], [0], [1], [0, 0, 1, 1], [], []>} : vector<128x16xbf16>, vector<16x32xbf16>, vector<128x32xf32> -> vector<128x32xf32>
    %43 = vector.broadcast %41 : vector<1x32xf32> to vector<128x32xf32>
    %44 = arith.addf %42, %43 : vector<128x32xf32>
    %cst_33 = arith.constant 0.000000e+00 : f32
    %45 = vector.broadcast %cst_33 : f32 to vector<128x32xf32>
    %46 = arith.maximumf %44, %45 : vector<128x32xf32>
    %47 = arith.truncf %46 : vector<128x32xf32> to vector<128x32xbf16>
    %c0_34 = arith.constant 0 : index
    %c0_35 = arith.constant 0 : index
    %48 = vector.load %arg13[%c0_34, %c0_35] : memref<32x32xbf16, #tpu.memory_space<vmem>>, vector<32x32xbf16>
    %c0_36 = arith.constant 0 : index
    %c0_37 = arith.constant 0 : index
    %49 = vector.load %arg14[%c0_36, %c0_37] : memref<1x32xf32, #tpu.memory_space<vmem>>, vector<1x32xf32>
    %cst_38 = arith.constant dense<0.000000e+00> : vector<128x32xf32>
    %50 = tpu.matmul %47, %48, %cst_38 {dimension_numbers = #tpu.dot_dimension_numbers<[1], [0], [0], [1], [0, 0, 1, 1], [], []>} : vector<128x32xbf16>, vector<32x32xbf16>, vector<128x32xf32> -> vector<128x32xf32>
    %51 = vector.broadcast %49 : vector<1x32xf32> to vector<128x32xf32>
    %52 = arith.addf %50, %51 : vector<128x32xf32>
    %53 = math.cos %52 : vector<128x32xf32>
    %c0_39 = arith.constant 0 : index
    %c0_40 = arith.constant 0 : index
    %54 = vector.load %arg15[%c0_39, %c0_40] : memref<128x32xf32, #tpu.memory_space<vmem>>, vector<128x32xf32>
    tpu.vector_store %arg15[%c0_39, %c0_40], %53 {strides = array<i32>} : memref<128x32xf32, #tpu.memory_space<vmem>>, vector<128x32xf32>,
    return
  }
  func.func @transform_0(%arg0: i32) -> (i32, i32) {
    %c0_i32 = arith.constant 0 : i32
    %c0_i32_0 = arith.constant 0 : i32
    return %arg0, %c0_i32 : i32, i32
  }
  func.func @transform_1(%arg0: i32) -> (i32, i32) {
    %c0_i32 = arith.constant 0 : i32
    %c0_i32_0 = arith.constant 0 : i32
    return %arg0, %c0_i32 : i32, i32
  }
  func.func @transform_2(%arg0: i32) -> (i32, i32) {
    %c0_i32 = arith.constant 0 : i32
    %c0_i32_0 = arith.constant 0 : i32
    %c0_i32_1 = arith.constant 0 : i32
    return %c0_i32, %c0_i32_0 : i32, i32
  }
  func.func @transform_3(%arg0: i32) -> (i32, i32) {
    %c0_i32 = arith.constant 0 : i32
    %c0_i32_0 = arith.constant 0 : i32
    %c0_i32_1 = arith.constant 0 : i32
    return %c0_i32, %c0_i32_0 : i32, i32
  }
  func.func @transform_4(%arg0: i32) -> (i32, i32) {
    %c0_i32 = arith.constant 0 : i32
    %c0_i32_0 = arith.constant 0 : i32
    %c0_i32_1 = arith.constant 0 : i32
    return %c0_i32, %c0_i32_0 : i32, i32
  }
  func.func @transform_5(%arg0: i32) -> (i32, i32) {
    %c0_i32 = arith.constant 0 : i32
    %c0_i32_0 = arith.constant 0 : i32
    %c0_i32_1 = arith.constant 0 : i32
    return %c0_i32, %c0_i32_0 : i32, i32
  }
  func.func @transform_6(%arg0: i32) -> (i32, i32) {
    %c0_i32 = arith.constant 0 : i32
    %c0_i32_0 = arith.constant 0 : i32
    %c0_i32_1 = arith.constant 0 : i32
    return %c0_i32, %c0_i32_0 : i32, i32
  }
  func.func @transform_7(%arg0: i32) -> (i32, i32) {
    %c0_i32 = arith.constant 0 : i32
    %c0_i32_0 = arith.constant 0 : i32
    %c0_i32_1 = arith.constant 0 : i32
    return %c0_i32, %c0_i32_0 : i32, i32
  }
  func.func @transform_8(%arg0: i32) -> (i32, i32) {
    %c0_i32 = arith.constant 0 : i32
    %c0_i32_0 = arith.constant 0 : i32
    %c0_i32_1 = arith.constant 0 : i32
    return %c0_i32, %c0_i32_0 : i32, i32
  }
  func.func @transform_9(%arg0: i32) -> (i32, i32) {
    %c0_i32 = arith.constant 0 : i32
    %c0_i32_0 = arith.constant 0 : i32
    %c0_i32_1 = arith.constant 0 : i32
    return %c0_i32, %c0_i32_0 : i32, i32
  }
  func.func @transform_10(%arg0: i32) -> (i32, i32) {
    %c0_i32 = arith.constant 0 : i32
    %c0_i32_0 = arith.constant 0 : i32
    %c0_i32_1 = arith.constant 0 : i32
    return %c0_i32, %c0_i32_0 : i32, i32
  }
  func.func @transform_11(%arg0: i32) -> (i32, i32) {
    %c0_i32 = arith.constant 0 : i32
    %c0_i32_0 = arith.constant 0 : i32
    %c0_i32_1 = arith.constant 0 : i32
    return %c0_i32, %c0_i32_0 : i32, i32
  }
  func.func @transform_12(%arg0: i32) -> (i32, i32) {
    %c0_i32 = arith.constant 0 : i32
    %c0_i32_0 = arith.constant 0 : i32
    %c0_i32_1 = arith.constant 0 : i32
    return %c0_i32, %c0_i32_0 : i32, i32
  }
  func.func @transform_13(%arg0: i32) -> (i32, i32) {
    %c0_i32 = arith.constant 0 : i32
    %c0_i32_0 = arith.constant 0 : i32
    %c0_i32_1 = arith.constant 0 : i32
    return %c0_i32, %c0_i32_0 : i32, i32
  }
  func.func @transform_14(%arg0: i32) -> (i32, i32) {
    %c0_i32 = arith.constant 0 : i32
    %c0_i32_0 = arith.constant 0 : i32
    return %arg0, %c0_i32 : i32, i32
  }
  func.func @transform_15(%arg0: i32) -> (i32, i32) {
    %c0_i32 = arith.constant 0 : i32
    %c0_i32_0 = arith.constant 0 : i32
    return %arg0, %c0_i32 : i32, i32
  }
}

</mosaic_0001>

<bundles_post_ra>
// kernel: tpu_custom_call.1
= control target key start
LH: loop header
LB: loop body
LE: loop exit
PB: predicated region body
PF: predicated region fallthrough
CT: control target
= control target key end

     0   :  { %s4333_s18 = smov 0   ;;  %s6493_s0 = inlined_call_operand.vmem [shape: bf16[256,32], index: 0, kind: input, shape index: {}]   ;;  %s6494_s1 = inlined_call_operand.vmem [shape: f32[256,8], index: 1, kind: input, shape index: {}]   ;;  %s6495_s2 = inlined_call_operand.vmem [shape: bf16[32,32], index: 2, kind: input, shape index: {}]   ;;  %s6496_s3 = inlined_call_operand.vmem [shape: f32[1,32], index: 3, kind: input, shape index: {}]   ;;  %s6497_s4 = inlined_call_operand.vmem [shape: bf16[32,16], index: 4, kind: input, shape index: {}]   ;;  %s6498_s5 = inlined_call_operand.vmem [shape: f32[1,16], index: 5, kind: input, shape index: {}]   ;;  %s6499_s6 = inlined_call_operand.vmem [shape: bf16[16,16], index: 6, kind: input, shape index: {}]   ;;  %s6500_s7 = inlined_call_operand.vmem [shape: f32[1,16], index: 7, kind: input, shape index: {}]   ;;  %s6501_s8 = inlined_call_operand.vmem [shape: bf16[8,16], index: 8, kind: input, shape index: {}]   ;;  %s6502_s9 = inlined_call_operand.vmem [shape: f32[1,16], index: 9, kind: input, shape index: {}]   ;;  %s6503_s10 = inlined_call_operand.vmem [shape: bf16[16,32], index: 10, kind: input, shape index: {}]   ;;  %s6504_s11 = inlined_call_operand.vmem [shape: f32[1,32], index: 11, kind: input, shape index: {}]   ;;  %s6505_s12 = inlined_call_operand.vmem [shape: bf16[32,32], index: 12, kind: input, shape index: {}]   ;;  %s6506_s13 = inlined_call_operand.vmem [shape: f32[1,32], index: 13, kind: input, shape index: {}]   ;;  %s6507_s14 = inlined_call_operand.vmem [shape: f32[256,32], index: 14, kind: output, shape index: {0}]   ;;  %s6508_s15 = inlined_call_operand.vmem [shape: f32[256,16], index: 15, kind: output, shape index: {1}]  }
   0x1 LB: > { %s3987_s19 = sadd.s32 4294967295, %s4243_s18   ;;  %p3991_p0 = scmp.ge.s32.totalorder %s4243_s18, 1  ;;  %s4243_s18 = sphi %s4333_s18, %s26_s18  }
   0x2   : > { %p452_p1 = scmp.lt.s32.totalorder %s4243_s18, 3 }
   0x4   : > { %p453_p2 = pnand %p3991_p0, %p452_p1 }
   0x5   : > { %s3992_s22 = sshll.u32 (!%p453_p2), %s3987_s19, 4 }
   0x6   : > { %456 = sbr.rel (%p453_p2) target bundleno = 1626 (0x65a), region = 76  ;;  %p511_p3 = scmp.lt.s32.totalorder (!%p453_p2), %s3992_s22, 31 }
   0xb   : > { %v4171_v0 = vld [vmem:[%s6495_s2 + $0x8] sm:$0xff]  ;;  %v4170_v1 = vld [vmem:[%s6495_s2] sm:$0xff]  ;;  %s6542_s22 = smov (!%p511_p3, %s3992_s22), 31  ;;  %vm627_vm0 = vcmask 261120   ;;  %vm854_vm1 = vcmask 130048   ;;  %vm1126_vm2 = vcmask 1043456  }
   0xc   : > { %658 = vmatpush.bf16.msra.mxu0 %v4171_v0  ;;  %s3993_s25 = sshll.u32 %s6542_s22, 2  ;;  %v4173_v9 = vld [vmem:[%s6497_s4 + $0x8] sm:$0xff]  ;;  %v4172_v10 = vld [vmem:[%s6497_s4] sm:$0xff]  ;;  %s4393_s26 = sshll.u32 %s6542_s22, 3  ;;  %vm1101_vm3 = vcmask 64512  }
   0xd   : > { %s514_s28 = scalar_lea.vmem %s6493_s0, %s3993_s25  ;;  %775 = vmatpush.bf16.msra.mxu1 %v4173_v9  ;;  %v4196_v13 = vld [vmem:[%s6496_s3] ss:$0 sm:$0xff]  ;;  %s4407_s19 = scalar_lea.vmem %s6508_s15, %s4393_s26 }
   0xe   : > { %v4162_v2 = vld [vmem:[%s514_s28] sm:$0xff]  ;;  %v4163_v3 = vld [vmem:[%s514_s28 + $0x8] sm:$0xff]  ;;  %v4164_v4 = vld [vmem:[%s514_s28 + $0x10] sm:$0xff]  ;;  %s4245_s22 = smov 120   ;;  %s4539_s23 = scalar_lea.vmem %s6494_s1, %s4393_s26 }
   0xf   : > { %v4165_v5 = vld [vmem:[%s514_s28 + $0x18] sm:$0xff]  ;;  %v4166_v6 = vld [vmem:[%s514_s28 + $0x20] sm:$0xff]  ;;  %v4167_v7 = vld [vmem:[%s514_s28 + $0x28] sm:$0xff]  ;;  %s4897_s25 = scalar_lea.vmem %s6507_s14, %s4393_s26 }
  0x10   : > { %659 = vmatpush.bf16.msra.mxu0 %v4170_v1  ;;  %v4168_v8 = vld [vmem:[%s514_s28 + $0x30] sm:$0xff]  ;;  %v4169_v11 = vld [vmem:[%s514_s28 + $0x38] sm:$0xff]  ;;  %v4174_v14 = vld [vmem:[%s6499_s6] sm:$0xff] }
  0x11   : > { %776 = vmatpush.bf16.msra.mxu1 %v4172_v10  ;;  %4178 = vmatpush.bf16.msra.mxu2 %v4174_v14 }
  0x13   : > { %4040 = vmatmul.msk.bf16.vlgmr.msra.gmra.mxu0 %vm627_vm0, %v4162_v2 }
  0x14   : > { %886 = vmatpush.bf16.msrb.mxu0 %v4174_v14 }
  0x23   : > { %4041 = vmatmul.msk.bf16.gmra.mxu0 %vm627_vm0, %v4163_v3 }
  0x33   : > { %4042 = vmatmul.msk.bf16.gmra.mxu0 %vm627_vm0, %v4164_v4 }
  0x43   : > { %4043 = vmatmul.msk.bf16.gmra.mxu0 %vm627_vm0, %v4165_v5 }
  0x53   : > { %4044 = vmatmul.msk.bf16.gmra.mxu0 %vm627_vm0, %v4166_v6 }
  0x63   : > { %4045 = vmatmul.msk.bf16.gmra.mxu0 %vm627_vm0, %v4167_v7  ;;  %v4197_v7 = vld [vmem:[%s6498_s5] ss:$0 sm:$0xff] }
  0x73   : > { %4046 = vmatmul.msk.bf16.gmra.mxu0 %vm627_vm0, %v4168_v8 }
  0x83   : > { %4047 = vmatmul.msk.bf16.gmra.mxu0 %vm627_vm0, %v4169_v11 }
  0x90   : > { %v661_v12 = vpop.f32.mrf.mxu0 }
  0x91   : > { %v662_v15 = vadd.f32 %v4196_v13, %v661_v12 }
  0x93   : > { %v701_v18 = vmax.f32 %v662_v15, 0.0 }
  0x98   : > { %v663_v16 = vpop.f32.mrf.mxu0 }
  0x99   : > { %v664_v17 = vadd.f32 %v4196_v13, %v663_v16 }
  0x9b   : > { %v702_v19 = vmax.f32 %v664_v17, 0.0 }
  0x9d   : > { %v717_v20 = vpack.c.bf16 %v702_v19, %v701_v18 }
  0x9f   : > { %4056 = vmatmul.msk.bf16.vlgmr.msra.gmra.mxu1 %vm627_vm0, %v717_v20 }
  0xa0   : > { %v666_v21 = vpop.f32.mrf.mxu0 }
  0xa1   : > { %v667_v22 = vadd.f32 %v4196_v13, %v666_v21 }
  0xa3   : > { %v703_v25 = vmax.f32 %v667_v22, 0.0 }
  0xa8   : > { %v668_v23 = vpop.f32.mrf.mxu0 }
  0xa9   : > { %v669_v24 = vadd.f32 %v4196_v13, %v668_v23 }
  0xab   : > { %v704_v26 = vmax.f32 %v669_v24, 0.0 }
  0xad   : > { %v718_v27 = vpack.c.bf16 %v704_v26, %v703_v25 }
  0xaf   : > { %4057 = vmatmul.msk.bf16.gmra.mxu1 %vm627_vm0, %v718_v27 }
  0xb0   : > { %v671_v28 = vpop.f32.mrf.mxu0 }
  0xb1   : > { %v672_v29 = vadd.f32 %v4196_v13, %v671_v28 }
  0xb3   : > { %v705_v32 = vmax.f32 %v672_v29, 0.0 }
  0xb8   : > { %v673_v30 = vpop.f32.mrf.mxu0 }
  0xb9   : > { %v674_v31 = vadd.f32 %v4196_v13, %v673_v30 }
  0xbb   : > { %v706_v33 = vmax.f32 %v674_v31, 0.0 }
  0xbd   : > { %v719_v34 = vpack.c.bf16 %v706_v33, %v705_v32 }
  0xbf   : > { %4058 = vmatmul.msk.bf16.gmra.mxu1 %vm627_vm0, %v719_v34 }
  0xc0   : > { %v676_v35 = vpop.f32.mrf.mxu0 }
  0xc1   : > { %v677_v36 = vadd.f32 %v4196_v13, %v676_v35 }
  0xc3   : > { %v707_v39 = vmax.f32 %v677_v36, 0.0 }
  0xc8   : > { %v678_v37 = vpop.f32.mrf.mxu0 }
  0xc9   : > { %v679_v38 = vadd.f32 %v4196_v13, %v678_v37 }
  0xcb   : > { %v708_v40 = vmax.f32 %v679_v38, 0.0 }
  0xcd   : > { %v720_v41 = vpack.c.bf16 %v708_v40, %v707_v39 }
  0xcf   : > { %4059 = vmatmul.msk.bf16.gmra.mxu1 %vm627_vm0, %v720_v41 }
  0xd0   : > { %v681_v42 = vpop.f32.mrf.mxu0 }
  0xd1   : > { %v682_v43 = vadd.f32 %v4196_v13, %v681_v42 }
  0xd3   : > { %v709_v46 = vmax.f32 %v682_v43, 0.0 }
  0xd8   : > { %v683_v44 = vpop.f32.mrf.mxu0 }
  0xd9   : > { %v684_v45 = vadd.f32 %v4196_v13, %v683_v44 }
  0xdb   : > { %v710_v47 = vmax.f32 %v684_v45, 0.0 }
  0xdd   : > { %v721_v48 = vpack.c.bf16 %v710_v47, %v709_v46 }
  0xdf   : > { %4060 = vmatmul.msk.bf16.gmra.mxu1 %vm627_vm0, %v721_v48 }
  0xe0   : > { %v686_v49 = vpop.f32.mrf.mxu0 }
  0xe1   : > { %v687_v50 = vadd.f32 %v4196_v13, %v686_v49 }
  0xe3   : > { %v711_v53 = vmax.f32 %v687_v50, 0.0 }
  0xe8   : > { %v688_v51 = vpop.f32.mrf.mxu0 }
  0xe9   : > { %v689_v52 = vadd.f32 %v4196_v13, %v688_v51 }
  0xeb   : > { %v712_v54 = vmax.f32 %v689_v52, 0.0 }
  0xed   : > { %v722_v55 = vpack.c.bf16 %v712_v54, %v711_v53 }
  0xef   : > { %4061 = vmatmul.msk.bf16.gmra.mxu1 %vm627_vm0, %v722_v55 }
  0xf0   : > { %v691_v56 = vpop.f32.mrf.mxu0 }
  0xf1   : > { %v692_v57 = vadd.f32 %v4196_v13, %v691_v56 }
  0xf3   : > { %v713_v60 = vmax.f32 %v692_v57, 0.0 }
  0xf8   : > { %v693_v58 = vpop.f32.mrf.mxu0 }
  0xf9   : > { %v694_v59 = vadd.f32 %v4196_v13, %v693_v58 }
  0xfb   : > { %v714_v61 = vmax.f32 %v694_v59, 0.0 }
  0xfd   : > { %v723_v62 = vpack.c.bf16 %v714_v61, %v713_v60 }
  0xff   : > { %4062 = vmatmul.msk.bf16.gmra.mxu1 %vm627_vm0, %v723_v62 }
 0x100   : > { %v696_v63 = vpop.f32.mrf.mxu0 }
 0x101   : > { %v697_v0 = vadd.f32 %v4196_v13, %v696_v63  ;;  %v4398_v63 = vld [vmem:[%s6500_s7] ss:$0 sm:$0xff] }
 0x103   : > { %v715_v3 = vmax.f32 %v697_v0, 0.0  ;;  %v1096_v0 = vld [vmem:[%s6501_s8] sm:$0xf] }
 0x108   : > { %v698_v1 = vpop.f32.mrf.mxu0 }
 0x109   : > { %v699_v2 = vadd.f32 %v4196_v13, %v698_v1 }
 0x10b   : > { %v716_v4 = vmax.f32 %v699_v2, 0.0  ;;  %v1128_v2 = vsel %vm1126_vm2, %v1096_v0, 0 }
 0x10c   : > { %1137 = vmatpush.bf16.msrb.mxu1 %v1128_v2  ;;  %4179 = vmatpush.bf16.msra.mxu3 %v1128_v2 }
 0x10d   : > { %v724_v5 = vpack.c.bf16 %v716_v4, %v715_v3 }
 0x10f   : > { %4063 = vmatmul.msk.bf16.gmra.mxu1 %vm627_vm0, %v724_v5 }
 0x11c   : > { %v778_v6 = vpop.f32.mrf.mxu1 }
 0x11d   : > { %v779_v8 = vadd.f32 %v4197_v7, %v778_v6 }
 0x11f   : > { %v818_v11 = vmax.f32 %v779_v8, 0.0 }
 0x124   : > { %v780_v9 = vpop.f32.mrf.mxu1 }
 0x125   : > { %v781_v10 = vadd.f32 %v4197_v7, %v780_v9 }
 0x127   : > { %v819_v12 = vmax.f32 %v781_v10, 0.0 }
 0x129   : > { %v834_v14 = vpack.c.bf16 %v819_v12, %v818_v11 }
 0x12b   : > { %4068 = vmatmul.msk.bf16.vlgmr.msrb.gmra.mxu0 %vm854_vm1, %v834_v14 }
 0x12c   : > { %v783_v13 = vpop.f32.mrf.mxu1 }
 0x12d   : > { %v784_v15 = vadd.f32 %v4197_v7, %v783_v13 }
 0x12f   : > { %v820_v18 = vmax.f32 %v784_v15, 0.0 }
 0x134   : > { %v785_v16 = vpop.f32.mrf.mxu1 }
 0x135   : > { %v786_v17 = vadd.f32 %v4197_v7, %v785_v16 }
 0x137   : > { %v821_v19 = vmax.f32 %v786_v17, 0.0 }
 0x139   : > { %v835_v20 = vpack.c.bf16 %v821_v19, %v820_v18 }
 0x13b   : > { %4069 = vmatmul.msk.bf16.gmra.mxu0 %vm854_vm1, %v835_v20 }
 0x13c   : > { %v788_v21 = vpop.f32.mrf.mxu1 }
 0x13d   : > { %v789_v22 = vadd.f32 %v4197_v7, %v788_v21 }
 0x13f   : > { %v822_v25 = vmax.f32 %v789_v22, 0.0 }
 0x144   : > { %v790_v23 = vpop.f32.mrf.mxu1 }
 0x145   : > { %v791_v24 = vadd.f32 %v4197_v7, %v790_v23 }
 0x147   : > { %v823_v26 = vmax.f32 %v791_v24, 0.0 }
 0x149   : > { %v836_v27 = vpack.c.bf16 %v823_v26, %v822_v25 }
 0x14b   : > { %4070 = vmatmul.msk.bf16.gmra.mxu0 %vm854_vm1, %v836_v27 }
 0x14c   : > { %v793_v28 = vpop.f32.mrf.mxu1 }
 0x14d   : > { %v794_v29 = vadd.f32 %v4197_v7, %v793_v28 }
 0x14f   : > { %v824_v32 = vmax.f32 %v794_v29, 0.0 }
 0x154   : > { %v795_v30 = vpop.f32.mrf.mxu1 }
 0x155   : > { %v796_v31 = vadd.f32 %v4197_v7, %v795_v30 }
 0x157   : > { %v825_v33 = vmax.f32 %v796_v31, 0.0 }
 0x159   : > { %v837_v34 = vpack.c.bf16 %v825_v33, %v824_v32 }
 0x15b   : > { %4071 = vmatmul.msk.bf16.vlgmr.msra.gmra.mxu2 %vm854_vm1, %v837_v34 }
 0x15c   : > { %v798_v35 = vpop.f32.mrf.mxu1 }
 0x15d   : > { %v799_v36 = vadd.f32 %v4197_v7, %v798_v35 }
 0x15f   : > { %v826_v39 = vmax.f32 %v799_v36, 0.0 }
 0x164   : > { %v800_v37 = vpop.f32.mrf.mxu1 }
 0x165   : > { %v801_v38 = vadd.f32 %v4197_v7, %v800_v37 }
 0x167   : > { %v827_v40 = vmax.f32 %v801_v38, 0.0 }
 0x169   : > { %v838_v41 = vpack.c.bf16 %v827_v40, %v826_v39 }
 0x16b   : > { %4072 = vmatmul.msk.bf16.gmra.mxu2 %vm854_vm1, %v838_v41 }
 0x16c   : > { %v803_v42 = vpop.f32.mrf.mxu1 }
 0x16d   : > { %v804_v43 = vadd.f32 %v4197_v7, %v803_v42 }
 0x16f   : > { %v828_v46 = vmax.f32 %v804_v43, 0.0 }
 0x174   : > { %v805_v44 = vpop.f32.mrf.mxu1 }
 0x175   : > { %v806_v45 = vadd.f32 %v4197_v7, %v805_v44 }
 0x177   : > { %v829_v47 = vmax.f32 %v806_v45, 0.0 }
 0x179   : > { %v839_v48 = vpack.c.bf16 %v829_v47, %v828_v46 }
 0x17b   : > { %4073 = vmatmul.msk.bf16.gmra.mxu2 %vm854_vm1, %v839_v48 }
 0x17c   : > { %v808_v49 = vpop.f32.mrf.mxu1 }
 0x17d   : > { %v809_v50 = vadd.f32 %v4197_v7, %v808_v49 }
 0x17f   : > { %v830_v53 = vmax.f32 %v809_v50, 0.0 }
 0x184   : > { %v810_v51 = vpop.f32.mrf.mxu1 }
 0x185   : > { %v811_v52 = vadd.f32 %v4197_v7, %v810_v51 }
 0x187   : > { %v831_v54 = vmax.f32 %v811_v52, 0.0 }
 0x189   : > { %v840_v55 = vpack.c.bf16 %v831_v54, %v830_v53 }
 0x18b   : > { %4074 = vmatmul.msk.bf16.gmra.mxu2 %vm854_vm1, %v840_v55 }
 0x18c   : > { %v813_v56 = vpop.f32.mrf.mxu1 }
 0x18d   : > { %v814_v57 = vadd.f32 %v4197_v7, %v813_v56 }
 0x18f   : > { %v832_v60 = vmax.f32 %v814_v57, 0.0 }
 0x194   : > { %v815_v58 = vpop.f32.mrf.mxu1 }
 0x195   : > { %v816_v59 = vadd.f32 %v4197_v7, %v815_v58 }
 0x197   : > { %v833_v61 = vmax.f32 %v816_v59, 0.0 }
 0x199   : > { %v841_v62 = vpack.c.bf16 %v833_v61, %v832_v60 }
 0x19b   : > { %4075 = vmatmul.msk.bf16.gmra.mxu2 %vm854_vm1, %v841_v62 }
 0x1a8   : > { %v888_v1 = vpop.f32.mrf.mxu0 }
 0x1a9   : > { %v4410_v3 = vadd.f32 %v4398_v63, %v888_v1 }
 0x1ab   : > { %928 = vst.msk [vmem:[%s4407_s19] sm:$0xff] %vm854_vm1, %v4410_v3  ;;  %v944_v4 = vmul.f32 0.5, %v4410_v3 }
 0x1ad   : > { %v960_v5 = vmul.f32 1.442695, %v944_v4 }
 0x1af   : > { %4202 = vpow2.f32 %v960_v5 }
 0x1b0   : > { %v890_v6 = vpop.f32.mrf.mxu0 }
 0x1b1   : > { %v4417_v7 = vadd.f32 %v4398_v63, %v890_v6 }
 0x1b3   : > { %929 = vst.msk [vmem:[%s4407_s19 + $0x8] sm:$0xff] %vm854_vm1, %v4417_v7  ;;  %v945_v8 = vmul.f32 0.5, %v4417_v7 }
 0x1b5   : > { %v4203_v9 = vpop.eup %4202  ;;  %v962_v10 = vmul.f32 1.442695, %v945_v8 }
 0x1b6   : > { %1008 = vrot.lane.b32.xlu0 %v4203_v9, %s4245_s22 }
 0x1b7   : > { %4204 = vpow2.f32 %v962_v10 }
 0x1b8   : > { %v893_v11 = vpop.f32.mrf.mxu0 }
 0x1b9   : > { %v4425_v12 = vadd.f32 %v4398_v63, %v893_v11 }
 0x1bb   : > { %930 = vst.msk [vmem:[%s4407_s19 + $0x10] sm:$0xff] %vm854_vm1, %v4425_v12  ;;  %v946_v14 = vmul.f32 0.5, %v4425_v12 }
 0x1bd   : > { %v4205_v13 = vpop.eup %4204  ;;  %v964_v15 = vmul.f32 1.442695, %v946_v14 }
 0x1be   : > { %1010 = vrot.lane.b32.xlu0 %v4205_v13, %s4245_s22 }
 0x1bf   : > { %4206 = vpow2.f32 %v964_v15 }
 0x1c0   : > { %v895_v16 = vpop.f32.mrf.mxu0 }
 0x1c1   : > { %v4433_v17 = vadd.f32 %v4398_v63, %v895_v16 }
 0x1c3   : > { %931 = vst.msk [vmem:[%s4407_s19 + $0x18] sm:$0xff] %vm854_vm1, %v4433_v17  ;;  %v947_v18 = vmul.f32 0.5, %v4433_v17 }
 0x1c5   : > { %v4207_v19 = vpop.eup %4206  ;;  %v966_v20 = vmul.f32 1.442695, %v947_v18 }
 0x1c6   : > { %1012 = vrot.lane.b32.xlu1 %v4207_v19, %s4245_s22 }
 0x1c7   : > { %4208 = vpow2.f32 %v966_v20 }
 0x1c8   : > { %v898_v21 = vpop.f32.mrf.mxu0 }
 0x1c9   : > { %v4441_v22 = vadd.f32 %v4398_v63, %v898_v21 }
 0x1cb   : > { %932 = vst.msk [vmem:[%s4407_s19 + $0x20] sm:$0xff] %vm854_vm1, %v4441_v22  ;;  %v948_v23 = vmul.f32 0.5, %v4441_v22 }
 0x1cd   : > { %v4209_v24 = vpop.eup %4208  ;;  %v968_v25 = vmul.f32 1.442695, %v948_v23 }
 0x1ce   : > { %1014 = vrot.lane.b32.xlu1 %v4209_v24, %s4245_s22  ;;  %v551_v24 = vld [vmem:[%s4539_s23] sm:$0xff] }
 0x1cf   : > { %4210 = vpow2.f32 %v968_v25 }
 0x1d0   : > { %v900_v26 = vpop.f32.mrf.mxu0 }
 0x1d1   : > { %v4449_v27 = vadd.f32 %v4398_v63, %v900_v26 }
 0x1d3   : > { %933 = vst.msk [vmem:[%s4407_s19 + $0x28] sm:$0xff] %vm854_vm1, %v4449_v27  ;;  %v949_v28 = vmul.f32 0.5, %v4449_v27 }
 0x1d5   : > { %v4211_v29 = vpop.eup %4210  ;;  %v970_v30 = vmul.f32 1.442695, %v949_v28 }
 0x1d6   : > { %1016 = vrot.lane.b32.xlu2 %v4211_v29, %s4245_s22 }
 0x1d7   : > { %4212 = vpow2.f32 %v970_v30 }
 0x1dd   : > { %v4213_v31 = vpop.eup %4212 }
 0x1de   : > { %v903_v32 = vpop.f32.mrf.mxu2  ;;  %1018 = vrot.lane.b32.xlu2 %v4213_v31, %s4245_s22 }
 0x1df   : > { %v4458_v33 = vadd.f32 %v4398_v63, %v903_v32 }
 0x1e1   : > { %934 = vst.msk [vmem:[%s4407_s19 + $0x30] sm:$0xff] %vm854_vm1, %v4458_v33  ;;  %v950_v34 = vmul.f32 0.5, %v4458_v33 }
 0x1e3   : > { %v972_v35 = vmul.f32 1.442695, %v950_v34 }
 0x1e5   : > { %4214 = vpow2.f32 %v972_v35  ;;  %v553_v35 = vld [vmem:[%s4539_s23 + $0x10] sm:$0xff] }
 0x1e6   : > { %v905_v36 = vpop.f32.mrf.mxu2 }
 0x1e7   : > { %v4465_v37 = vadd.f32 %v4398_v63, %v905_v36  ;;  %v554_v36 = vld [vmem:[%s4539_s23 + $0x18] sm:$0xff] }
 0x1e9   : > { %935 = vst.msk [vmem:[%s4407_s19 + $0x38] sm:$0xff] %vm854_vm1, %v4465_v37  ;;  %v951_v38 = vmul.f32 0.5, %v4465_v37 }
 0x1eb   : > { %v4215_v39 = vpop.eup %4214  ;;  %v974_v40 = vmul.f32 1.442695, %v951_v38 }
 0x1ec   : > { %1020 = vrot.lane.b32.xlu0 %v4215_v39, %s4245_s22 }
 0x1ed   : > { %4216 = vpow2.f32 %v974_v40 }
 0x1ee   : > { %v908_v41 = vpop.f32.mrf.mxu2 }
 0x1ef   : > { %v4473_v42 = vadd.f32 %v4398_v63, %v908_v41 }
 0x1f1   : > { %936 = vst.msk [vmem:[%s4407_s19 + $0x40] sm:$0xff] %vm854_vm1, %v4473_v42  ;;  %v952_v43 = vmul.f32 0.5, %v4473_v42 }
 0x1f3   : > { %v4217_v44 = vpop.eup %4216  ;;  %v976_v45 = vmul.f32 1.442695, %v952_v43 }
 0x1f4   : > { %1022 = vrot.lane.b32.xlu1 %v4217_v44, %s4245_s22  ;;  %v556_v44 = vld [vmem:[%s4539_s23 + $0x28] sm:$0xff] }
 0x1f5   : > { %4218 = vpow2.f32 %v976_v45 }
 0x1f6   : > { %v910_v46 = vpop.f32.mrf.mxu2 }
 0x1f7   : > { %v4481_v47 = vadd.f32 %v4398_v63, %v910_v46  ;;  %v555_v46 = vld [vmem:[%s4539_s23 + $0x20] sm:$0xff] }
 0x1f9   : > { %937 = vst.msk [vmem:[%s4407_s19 + $0x48] sm:$0xff] %vm854_vm1, %v4481_v47  ;;  %v953_v48 = vmul.f32 0.5, %v4481_v47 }
 0x1fb   : > { %v4219_v49 = vpop.eup %4218  ;;  %v978_v50 = vmul.f32 1.442695, %v953_v48 }
 0x1fc   : > { %1024 = vrot.lane.b32.xlu2 %v4219_v49, %s4245_s22 }
 0x1fd   : > { %4220 = vpow2.f32 %v978_v50 }
 0x1fe   : > { %v913_v51 = vpop.f32.mrf.mxu2 }
 0x1ff   : > { %v4489_v52 = vadd.f32 %v4398_v63, %v913_v51 }
 0x201   : > { %938 = vst.msk [vmem:[%s4407_s19 + $0x50] sm:$0xff] %vm854_vm1, %v4489_v52  ;;  %v954_v53 = vmul.f32 0.5, %v4489_v52 }
 0x203   : > { %v4221_v54 = vpop.eup %4220  ;;  %v980_v55 = vmul.f32 1.442695, %v954_v53 }
 0x204   : > { %1026 = vrot.lane.b32.xlu0 %v4221_v54, %s4245_s22 }
 0x205   : > { %4222 = vpow2.f32 %v980_v55  ;;  %v558_v55 = vld [vmem:[%s4539_s23 + $0x38] sm:$0xff] }
 0x206   : > { %v915_v56 = vpop.f32.mrf.mxu2 }
 0x207   : > { %v4497_v57 = vadd.f32 %v4398_v63, %v915_v56 }
 0x209   : > { %939 = vst.msk [vmem:[%s4407_s19 + $0x58] sm:$0xff] %vm854_vm1, %v4497_v57  ;;  %v955_v58 = vmul.f32 0.5, %v4497_v57 }
 0x20b   : > { %v4223_v59 = vpop.eup %4222  ;;  %v982_v60 = vmul.f32 1.442695, %v955_v58 }
 0x20c   : > { %1028 = vrot.lane.b32.xlu1 %v4223_v59, %s4245_s22 }
 0x20d   : > { %4224 = vpow2.f32 %v982_v60 }
 0x20e   : > { %v918_v61 = vpop.f32.mrf.mxu2 }
 0x20f   : > { %v4505_v62 = vadd.f32 %v4398_v63, %v918_v61  ;;  %v559_v61 = vld [vmem:[%s4539_s23 + $0x40] sm:$0xff] }
 0x211   : > { %940 = vst.msk [vmem:[%s4407_s19 + $0x60] sm:$0xff] %vm854_vm1, %v4505_v62  ;;  %v956_v0 = vmul.f32 0.5, %v4505_v62 }
 0x213   : > { %v4225_v1 = vpop.eup %4224  ;;  %v984_v2 = vmul.f32 1.442695, %v956_v0 }
 0x214   : > { %1030 = vrot.lane.b32.xlu2 %v4225_v1, %s4245_s22  ;;  %v560_v1 = vld [vmem:[%s4539_s23 + $0x48] sm:$0xff] }
 0x215   : > { %4226 = vpow2.f32 %v984_v2 }
 0x216   : > { %v920_v4 = vpop.f32.mrf.mxu2 }
 0x217   : > { %v4513_v5 = vadd.f32 %v4398_v63, %v920_v4 }
 0x219   : > { %941 = vst.msk [vmem:[%s4407_s19 + $0x68] sm:$0xff] %vm854_vm1, %v4513_v5  ;;  %v957_v6 = vmul.f32 0.5, %v4513_v5 }
 0x21b   : > { %v4227_v8 = vpop.eup %4226  ;;  %v986_v9 = vmul.f32 1.442695, %v957_v6 }
 0x21c   : > { %1032 = vrot.lane.b32.xlu0 %v4227_v8, %s4245_s22 }
 0x21d   : > { %4228 = vpow2.f32 %v986_v9 }
 0x21e   : > { %v923_v10 = vpop.f32.mrf.mxu2 }
 0x21f   : > { %v4521_v11 = vadd.f32 %v4398_v63, %v923_v10 }
 0x221   : > { %942 = vst.msk [vmem:[%s4407_s19 + $0x70] sm:$0xff] %vm854_vm1, %v4521_v11  ;;  %v958_v14 = vmul.f32 0.5, %v4521_v11 }
 0x223   : > { %v4229_v13 = vpop.eup %4228  ;;  %v988_v15 = vmul.f32 1.442695, %v958_v14  ;;  %v562_v14 = vld [vmem:[%s4539_s23 + $0x58] sm:$0xff] }
 0x224   : > { %1034 = vrot.lane.b32.xlu1 %v4229_v13, %s4245_s22 }
 0x225   : > { %4230 = vpow2.f32 %v988_v15 }
 0x226   : > { %v925_v16 = vpop.f32.mrf.mxu2 }
 0x227   : > { %v4529_v18 = vadd.f32 %v4398_v63, %v925_v16  ;;  %v552_v63 = vld [vmem:[%s4539_s23 + $0x8] sm:$0xff] }
 0x228   : > { %v1009_v19 = vpop.permute.xlu0 %1008 }
 0x229   : > { %943 = vst.msk [vmem:[%s4407_s19 + $0x78] sm:$0xff] %vm854_vm1, %v4529_v18  ;;  %v959_v20 = vmul.f32 0.5, %v4529_v18  ;;  %v1056_v25 = vmul.f32 %v1009_v19, %v551_v24 }
 0x22b   : > { %v4231_v21 = vpop.eup %4230  ;;  %v990_v23 = vmul.f32 1.442695, %v959_v20  ;;  %v1072_v30 = vadd.f32 %v1056_v25, %v4410_v3 }
 0x22c   : > { %1036 = vrot.lane.b32.xlu2 %v4231_v21, %s4245_s22 }
 0x22d   : > { %4232 = vpow2.f32 %v990_v23  ;;  %v564_v23 = vld [vmem:[%s4539_s23 + $0x68] sm:$0xff] }
 0x230   : > { %v1011_v26 = vpop.permute.xlu0 %1010  ;;  %v1017_v39 = vpop.permute.xlu2 %1016 }
 0x231   : > { %v1057_v28 = vmul.f32 %v1011_v26, %v552_v63  ;;  %v1060_v49 = vmul.f32 %v1017_v39, %v555_v46 }
 0x233   : > { %v4233_v29 = vpop.eup %4232  ;;  %v1073_v31 = vadd.f32 %v1057_v28, %v4417_v7  ;;  %v1076_v51 = vadd.f32 %v1060_v49, %v4441_v22 }
 0x234   : > { %1038 = vrot.lane.b32.xlu0 %v4233_v29, %s4245_s22 }
 0x235   : > { %v1088_v32 = vpack.c.bf16 %v1073_v31, %v1072_v30  ;;  %v566_v31 = vld [vmem:[%s4539_s23 + $0x78] sm:$0xff] }
 0x237   : > { %4076 = vmatmul.msk.bf16.vlgmr.msrb.gmra.mxu1 %vm1101_vm3, %v1088_v32 }
 0x238   : > { %v1013_v34 = vpop.permute.xlu1 %1012  ;;  %v1019_v45 = vpop.permute.xlu2 %1018 }
 0x239   : > { %v1058_v38 = vmul.f32 %v1013_v34, %v553_v35  ;;  %v1061_v48 = vmul.f32 %v1019_v45, %v556_v44 }
 0x23b   : > { %v1074_v3 = vadd.f32 %v1058_v38, %v4425_v12  ;;  %v1077_v50 = vadd.f32 %v1061_v48, %v4449_v27  ;;  %v4175_v12 = vld [vmem:[%s6503_s10] sm:$0xff] }
 0x23c   : > { %1246 = vmatpush.bf16.msrb.mxu2 %v4175_v12 }
 0x23d   : > { %v1090_v53 = vpack.c.bf16 %v1077_v50, %v1076_v51 }
 0x240   : > { %v1015_v40 = vpop.permute.xlu1 %1014 }
 0x241   : > { %v1059_v41 = vmul.f32 %v1015_v40, %v554_v36 }
 0x243   : > { %v1075_v7 = vadd.f32 %v1059_v41, %v4433_v17  ;;  %v557_v17 = vld [vmem:[%s4539_s23 + $0x30] sm:$0xff] }
 0x245   : > { %v1089_v43 = vpack.c.bf16 %v1075_v7, %v1074_v3 }
 0x247   : > { %4077 = vmatmul.msk.bf16.gmra.mxu1 %vm1101_vm3, %v1089_v43 }
 0x256   : > { %v1025_v0 = vpop.permute.xlu2 %1024 }
 0x257   : > { %4078 = vmatmul.msk.bf16.gmra.mxu1 %vm1101_vm3, %v1090_v53  ;;  %v1064_v2 = vmul.f32 %v1025_v0, %v559_v61 }
 0x259   : > { %v1080_v8 = vadd.f32 %v1064_v2, %v4473_v42  ;;  %v563_v42 = vld [vmem:[%s4539_s23 + $0x60] sm:$0xff] }
 0x25e   : > { %v1021_v54 = vpop.permute.xlu0 %1020 }
 0x25f   : > { %v1062_v56 = vmul.f32 %v1021_v54, %v557_v17 }
 0x261   : > { %v1078_v27 = vadd.f32 %v1062_v56, %v4458_v33  ;;  %v561_v33 = vld [vmem:[%s4539_s23 + $0x50] sm:$0xff] }
 0x266   : > { %v1023_v58 = vpop.permute.xlu1 %1022 }
 0x267   : > { %v1063_v59 = vmul.f32 %v1023_v58, %v558_v55  ;;  %v4177_v58 = vld [vmem:[%s6505_s12 + $0x8] sm:$0xff] }
 0x268   : > { %1362 = vmatpush.bf16.msrb.mxu3 %v4177_v58 }
 0x269   : > { %v1079_v22 = vadd.f32 %v1063_v59, %v4465_v37 }
 0x26b   : > { %v1091_v60 = vpack.c.bf16 %v1079_v22, %v1078_v27 }
 0x26d   : > { %4079 = vmatmul.msk.bf16.vlgmr.msra.gmra.mxu3 %vm1101_vm3, %v1091_v60 }
 0x26e   : > { %v1031_v13 = vpop.permute.xlu2 %1030 }
 0x26f   : > { %v1067_v16 = vmul.f32 %v1031_v13, %v562_v14 }
 0x271   : > { %v1083_v20 = vadd.f32 %v1067_v16, %v4497_v57 }
 0x276   : > { %v1027_v4 = vpop.permute.xlu0 %1026 }
 0x277   : > { %v1065_v6 = vmul.f32 %v1027_v4, %v560_v1 }
 0x279   : > { %v1081_v9 = vadd.f32 %v1065_v6, %v4481_v47 }
 0x27b   : > { %v1092_v10 = vpack.c.bf16 %v1081_v9, %v1080_v8 }
 0x27d   : > { %4080 = vmatmul.msk.bf16.gmra.mxu3 %vm1101_vm3, %v1092_v10 }
 0x27e   : > { %v1029_v37 = vpop.permute.xlu1 %1028 }
 0x27f   : > { %v1066_v15 = vmul.f32 %v1029_v37, %v561_v33 }
 0x281   : > { %v1082_v19 = vadd.f32 %v1066_v15, %v4489_v52  ;;  %v565_v52 = vld [vmem:[%s4539_s23 + $0x70] sm:$0xff] }
 0x283   : > { %v1093_v21 = vpack.c.bf16 %v1083_v20, %v1082_v19  ;;  %v4176_v20 = vld [vmem:[%s6505_s12] sm:$0xff] }
 0x284   : > { %1363 = vmatpush.bf16.msrb.mxu3 %v4176_v20 }
 0x286   : > { %v1037_v30 = vpop.permute.xlu2 %1036 }
 0x287   : > { %v1070_v57 = vmul.f32 %v1037_v30, %v565_v52 }
 0x289   : > { %v1086_v35 = vadd.f32 %v1070_v57, %v4521_v11 }
 0x28d   : > { %4081 = vmatmul.msk.bf16.gmra.mxu3 %vm1101_vm3, %v1093_v21 }
 0x28e   : > { %v1033_v47 = vpop.permute.xlu0 %1032 }
 0x28f   : > { %v1068_v24 = vmul.f32 %v1033_v47, %v563_v42 }
 0x291   : > { %v1084_v26 = vadd.f32 %v1068_v24, %v4505_v62  ;;  %v4589_v62 = vld [vmem:[%s6502_s9] ss:$0 sm:$0xff] }
 0x296   : > { %v1035_v63 = vpop.permute.xlu1 %1034 }
 0x297   : > { %v1069_v25 = vmul.f32 %v1035_v63, %v564_v23 }
 0x299   : > { %v1085_v28 = vadd.f32 %v1069_v25, %v4513_v5 }
 0x29b   : > { %v1094_v29 = vpack.c.bf16 %v1085_v28, %v1084_v26 }
 0x29d   : > { %4082 = vmatmul.msk.bf16.gmra.mxu3 %vm1101_vm3, %v1094_v29 }
 0x2a6   : > { %v1039_v32 = vpop.permute.xlu0 %1038 }
 0x2a7   : > { %v1071_v34 = vmul.f32 %v1039_v32, %v566_v31 }
 0x2a9   : > { %v1087_v36 = vadd.f32 %v1071_v34, %v4529_v18  ;;  %v4200_v34 = vld [vmem:[%s6504_s11] ss:$0 sm:$0xff] }
 0x2ab   : > { %v1095_v38 = vpack.c.bf16 %v1087_v36, %v1086_v35 }
 0x2ad   : > { %4083 = vmatmul.msk.bf16.gmra.mxu3 %vm1101_vm3, %v1095_v38 }
 0x2b4   : > { %v1139_v39 = vpop.f32.mrf.mxu1 }
 0x2b5   : > { %v1140_v5 = vadd.f32 %v4589_v62, %v1139_v39 }
 0x2b7   : > { %v1179_v3 = vmax.f32 %v1140_v5, 0.0 }
 0x2bc   : > { %v1141_v40 = vpop.f32.mrf.mxu1 }
 0x2bd   : > { %v1142_v41 = vadd.f32 %v4589_v62, %v1141_v40 }
 0x2bf   : > { %v1180_v7 = vmax.f32 %v1142_v41, 0.0 }
 0x2c1   : > { %v1195_v43 = vpack.c.bf16 %v1180_v7, %v1179_v3 }
 0x2c3   : > { %4088 = vmatmul.msk.bf16.vlgmr.msrb.gmra.mxu2 %vm854_vm1, %v1195_v43 }
 0x2c4   : > { %v1144_v11 = vpop.f32.mrf.mxu1 }
 0x2c5   : > { %v1145_v18 = vadd.f32 %v4589_v62, %v1144_v11 }
 0x2c7   : > { %v1181_v46 = vmax.f32 %v1145_v18, 0.0 }
 0x2cc   : > { %v1146_v44 = vpop.f32.mrf.mxu1 }
 0x2cd   : > { %v1147_v45 = vadd.f32 %v4589_v62, %v1146_v44 }
 0x2cf   : > { %v1182_v48 = vmax.f32 %v1147_v45, 0.0 }
 0x2d1   : > { %v1196_v49 = vpack.c.bf16 %v1182_v48, %v1181_v46 }
 0x2d3   : > { %4089 = vmatmul.msk.bf16.gmra.mxu2 %vm854_vm1, %v1196_v49 }
 0x2d4   : > { %v1149_v50 = vpop.f32.mrf.mxu1 }
 0x2d5   : > { %v1150_v51 = vadd.f32 %v4589_v62, %v1149_v50 }
 0x2d7   : > { %v1183_v17 = vmax.f32 %v1150_v51, 0.0 }
 0x2dc   : > { %v1151_v53 = vpop.f32.mrf.mxu1 }
 0x2dd   : > { %v1152_v12 = vadd.f32 %v4589_v62, %v1151_v53 }
 0x2df   : > { %v1184_v54 = vmax.f32 %v1152_v12, 0.0 }
 0x2e1   : > { %v1197_v55 = vpack.c.bf16 %v1184_v54, %v1183_v17 }
 0x2e3   : > { %4090 = vmatmul.msk.bf16.gmra.mxu2 %vm854_vm1, %v1197_v55 }
 0x2f0   : > { %v1154_v56 = vpop.f32.mrf.mxu3 }
 0x2f1   : > { %v1155_v59 = vadd.f32 %v4589_v62, %v1154_v56 }
 0x2f3   : > { %v1185_v60 = vmax.f32 %v1155_v59, 0.0 }
 0x2f8   : > { %v1156_v27 = vpop.f32.mrf.mxu3 }
 0x2f9   : > { %v1157_v22 = vadd.f32 %v4589_v62, %v1156_v27 }
 0x2fb   : > { %v1186_v61 = vmax.f32 %v1157_v22, 0.0 }
 0x2fd   : > { %v1198_v0 = vpack.c.bf16 %v1186_v61, %v1185_v60 }
 0x2ff   : > { %4091 = vmatmul.msk.bf16.gmra.mxu2 %vm854_vm1, %v1198_v0 }
 0x300   : > { %v1159_v1 = vpop.f32.mrf.mxu3 }
 0x301   : > { %v1160_v2 = vadd.f32 %v4589_v62, %v1159_v1 }
 0x303   : > { %v1187_v8 = vmax.f32 %v1160_v2, 0.0 }
 0x308   : > { %v1161_v4 = vpop.f32.mrf.mxu3 }
 0x309   : > { %v1162_v6 = vadd.f32 %v4589_v62, %v1161_v4 }
 0x30b   : > { %v1188_v9 = vmax.f32 %v1162_v6, 0.0 }
 0x30d   : > { %v1199_v10 = vpack.c.bf16 %v1188_v9, %v1187_v8 }
 0x30f   : > { %4092 = vmatmul.msk.bf16.gmra.mxu2 %vm854_vm1, %v1199_v10 }
 0x310   : > { %v1164_v33 = vpop.f32.mrf.mxu3 }
 0x311   : > { %v1165_v37 = vadd.f32 %v4589_v62, %v1164_v33 }
 0x313   : > { %v1189_v15 = vmax.f32 %v1165_v37, 0.0 }
 0x318   : > { %v1166_v14 = vpop.f32.mrf.mxu3 }
 0x319   : > { %v1167_v13 = vadd.f32 %v4589_v62, %v1166_v14 }
 0x31b   : > { %v1190_v16 = vmax.f32 %v1167_v13, 0.0 }
 0x31d   : > { %v1200_v19 = vpack.c.bf16 %v1190_v16, %v1189_v15 }
 0x31f   : > { %4093 = vmatmul.msk.bf16.gmra.mxu2 %vm854_vm1, %v1200_v19 }
 0x320   : > { %v1169_v21 = vpop.f32.mrf.mxu3 }
 0x321   : > { %v1170_v42 = vadd.f32 %v4589_v62, %v1169_v21 }
 0x323   : > { %v1191_v24 = vmax.f32 %v1170_v42, 0.0 }
 0x328   : > { %v1171_v47 = vpop.f32.mrf.mxu3 }
 0x329   : > { %v1172_v23 = vadd.f32 %v4589_v62, %v1171_v47 }
 0x32b   : > { %v1192_v63 = vmax.f32 %v1172_v23, 0.0 }
 0x32d   : > { %v1201_v25 = vpack.c.bf16 %v1192_v63, %v1191_v24 }
 0x32f   : > { %4094 = vmatmul.msk.bf16.gmra.mxu2 %vm854_vm1, %v1201_v25 }
 0x330   : > { %v1174_v26 = vpop.f32.mrf.mxu3 }
 0x331   : > { %v1175_v28 = vadd.f32 %v4589_v62, %v1174_v26  ;;  %v4635_v26 = vld [vmem:[%s6506_s13] ss:$0 sm:$0xff] }
 0x333   : > { %v1193_v30 = vmax.f32 %v1175_v28, 0.0 }
 0x338   : > { %v1176_v29 = vpop.f32.mrf.mxu3 }
 0x339   : > { %v1177_v52 = vadd.f32 %v4589_v62, %v1176_v29 }
 0x33b   : > { %v1194_v31 = vmax.f32 %v1177_v52, 0.0 }
 0x33d   : > { %v1202_v57 = vpack.c.bf16 %v1194_v31, %v1193_v30 }
 0x33f   : > { %4095 = vmatmul.msk.bf16.gmra.mxu2 %vm854_vm1, %v1202_v57 }
 0x346   : > { %v1248_v32 = vpop.f32.mrf.mxu2 }
 0x347   : > { %v1249_v35 = vadd.f32 %v4200_v34, %v1248_v32 }
 0x349   : > { %v1288_v39 = vmax.f32 %v1249_v35, 0.0 }
 0x34e   : > { %v1250_v36 = vpop.f32.mrf.mxu2 }
 0x34f   : > { %v1251_v38 = vadd.f32 %v4200_v34, %v1250_v36 }
 0x351   : > { %v1289_v5 = vmax.f32 %v1251_v38, 0.0 }
 0x353   : > { %v1304_v40 = vpack.c.bf16 %v1289_v5, %v1288_v39 }
 0x355   : > { %4104 = vmatmul.msk.bf16.vlgmr.msrb.gmra.mxu3 %vm627_vm0, %v1304_v40 }
 0x356   : > { %v1253_v41 = vpop.f32.mrf.mxu2 }
 0x357   : > { %v1254_v62 = vadd.f32 %v4200_v34, %v1253_v41 }
 0x359   : > { %v1290_v43 = vmax.f32 %v1254_v62, 0.0 }
 0x35e   : > { %v1255_v3 = vpop.f32.mrf.mxu2 }
 0x35f   : > { %v1256_v7 = vadd.f32 %v4200_v34, %v1255_v3 }
 0x361   : > { %v1291_v11 = vmax.f32 %v1256_v7, 0.0 }
 0x363   : > { %v1305_v18 = vpack.c.bf16 %v1291_v11, %v1290_v43 }
 0x365   : > { %4105 = vmatmul.msk.bf16.gmra.mxu3 %vm627_vm0, %v1305_v18 }
 0x366   : > { %v1258_v44 = vpop.f32.mrf.mxu2 }
 0x367   : > { %v1259_v45 = vadd.f32 %v4200_v34, %v1258_v44  ;;  %v4246_v44 = vmov 683565275  }
 0x369   : > { %v1292_v49 = vmax.f32 %v1259_v45, 0.0 }
 0x36e   : > { %v1260_v46 = vpop.f32.mrf.mxu2 }
 0x36f   : > { %v1261_v48 = vadd.f32 %v4200_v34, %v1260_v46  ;;  %v4247_v46 = vmov 2475754826  }
 0x371   : > { %v1293_v50 = vmax.f32 %v1261_v48, 0.0 }
 0x373   : > { %v1306_v51 = vpack.c.bf16 %v1293_v50, %v1292_v49 }
 0x375   : > { %4106 = vmatmul.msk.bf16.gmra.mxu3 %vm627_vm0, %v1306_v51  ;;  %v4248_v51 = vmov 2131351028  }
 0x382   : > { %v1263_v53 = vpop.f32.mrf.mxu2 }
 0x383   : > { %v1264_v12 = vadd.f32 %v4200_v34, %v1263_v53 }
 0x385   : > { %v1294_v55 = vmax.f32 %v1264_v12, 0.0 }
 0x38a   : > { %v1265_v17 = vpop.f32.mrf.mxu2 }
 0x38b   : > { %v1266_v54 = vadd.f32 %v4200_v34, %v1265_v17  ;;  %v4249_v17 = vmov 2102212464  }
 0x38d   : > { %v1295_v56 = vmax.f32 %v1266_v54, 0.0 }
 0x38f   : > { %v1307_v58 = vpack.c.bf16 %v1295_v56, %v1294_v55  ;;  %v4250_v56 = vmov 920167782  }
 0x391   : > { %4107 = vmatmul.msk.bf16.gmra.mxu3 %vm627_vm0, %v1307_v58 }
 0x392   : > { %v1268_v59 = vpop.f32.mrf.mxu2 }
 0x393   : > { %v1269_v27 = vadd.f32 %v4200_v34, %v1268_v59 }
 0x395   : > { %v1296_v61 = vmax.f32 %v1269_v27, 0.0  ;;  %v4251_v27 = vmov 1326507024  }
 0x39a   : > { %v1270_v22 = vpop.f32.mrf.mxu2 }
 0x39b   : > { %v1271_v60 = vadd.f32 %v4200_v34, %v1270_v22 }
 0x39d   : > { %v1297_v0 = vmax.f32 %v1271_v60, 0.0 }
 0x39f   : > { %v1308_v1 = vpack.c.bf16 %v1297_v0, %v1296_v61 }
 0x3a1   : > { %4108 = vmatmul.msk.bf16.gmra.mxu3 %vm627_vm0, %v1308_v1 }
 0x3a2   : > { %v1273_v2 = vpop.f32.mrf.mxu2 }
 0x3a3   : > { %v1274_v4 = vadd.f32 %v4200_v34, %v1273_v2 }
 0x3a5   : > { %v1298_v9 = vmax.f32 %v1274_v4, 0.0 }
 0x3aa   : > { %v1275_v6 = vpop.f32.mrf.mxu2 }
 0x3ab   : > { %v1276_v8 = vadd.f32 %v4200_v34, %v1275_v6 }
 0x3ad   : > { %v1299_v10 = vmax.f32 %v1276_v8, 0.0 }
 0x3af   : > { %v1309_v33 = vpack.c.bf16 %v1299_v10, %v1298_v9 }
 0x3b1   : > { %4109 = vmatmul.msk.bf16.gmra.mxu3 %vm627_vm0, %v1309_v33 }
 0x3b2   : > { %v1278_v37 = vpop.f32.mrf.mxu2 }
 0x3b3   : > { %v1279_v14 = vadd.f32 %v4200_v34, %v1278_v37 }
 0x3b5   : > { %v1300_v16 = vmax.f32 %v1279_v14, 0.0 }
 0x3ba   : > { %v1280_v13 = vpop.f32.mrf.mxu2 }
 0x3bb   : > { %v1281_v15 = vadd.f32 %v4200_v34, %v1280_v13 }
 0x3bd   : > { %v1301_v19 = vmax.f32 %v1281_v15, 0.0 }
 0x3bf   : > { %v1310_v20 = vpack.c.bf16 %v1301_v19, %v1300_v16 }
 0x3c1   : > { %4110 = vmatmul.msk.bf16.gmra.mxu3 %vm627_vm0, %v1310_v20 }
 0x3c2   : > { %v1283_v21 = vpop.f32.mrf.mxu2 }
 0x3c3   : > { %v1284_v42 = vadd.f32 %v4200_v34, %v1283_v21 }
 0x3c5   : > { %v1302_v24 = vmax.f32 %v1284_v42, 0.0 }
 0x3ca   : > { %v1285_v47 = vpop.f32.mrf.mxu2 }
 0x3cb   : > { %v1286_v23 = vadd.f32 %v4200_v34, %v1285_v47 }
 0x3cd   : > { %v1303_v63 = vmax.f32 %v1286_v23, 0.0 }
 0x3cf   : > { %v1311_v25 = vpack.c.bf16 %v1303_v63, %v1302_v24 }
 0x3d1   : > { %4111 = vmatmul.msk.bf16.gmra.mxu3 %vm627_vm0, %v1311_v25 }
 0x3d8   : > { %v1365_v28 = vpop.f32.mrf.mxu3 }
 0x3d9   : > { %v4638_v29 = vadd.f32 %v4635_v26, %v1365_v28 }
 0x3db   : > { %v1405_v52 = vand.u32 2147483647, %v4638_v29  ;;  %v1408_v30 = vand.u32 2139095040, %v4638_v29 }
 0x3dd   : > { %v1409_v31 = vshrl.u32 %v1408_v30, 23  ;;  %v1412_v57 = vand.u32 8388607, %v1405_v52 }
 0x3df   : > { %v4112_v32 = vadd.s32 4294967169, %v1409_v31  ;;  %v1413_v34 = vor.u32 8388608, %v1412_v57 }
 0x3e0   : > { %v1367_v35 = vpop.f32.mrf.mxu3 }
 0x3e1   : > { %v1415_v36 = vadd.s32 1, %v4112_v32  ;;  %v4645_v38 = vadd.f32 %v4635_v26, %v1367_v35  ;;  %v4647_v39 = vshll.u32 %v1413_v34, 8 }
 0x3e3   : > { %vm1416_vm4 = vcmp.gt.s32.totalorder %v1415_v36, 0  ;;  %v1559_v40 = vand.u32 2147483647, %v4645_v38  ;;  %v1562_v41 = vand.u32 2139095040, %v4645_v38  ;;  %v1454_v7 = vand.u32 65535, %v4647_v39 }
 0x3e4   : > { %v1417_v5 = vsel %vm1416_vm4, %v1415_v36, 0  ;;  %v1455_v43 = vshrl.u32 %v4647_v39, 16 }
 0x3e5   : > { %v1419_v62 = vand.u32 31, %v1417_v5  ;;  %v1563_v11 = vshrl.u32 %v1562_v41, 23  ;;  %v1418_v18 = vshrl.u32 %v1417_v5, 5  ;;  %v4657_v49 = vand.u32 8388607, %v1559_v40 }
 0x3e7   : > { %v1420_v3 = vsub.s32 32, %v1419_v62  ;;  %v1422_v45 = vshll.u32 %v4246_v44, %v1419_v62  ;;  %v1425_v48 = vshll.u32 %v4247_v46, %v1419_v62  ;;  %v1428_v12 = vshll.u32 %v4248_v51, %v1419_v62 }
 0x3e8   : > { %v1431_v55 = vshll.u32 %v4249_v17, %v1419_v62  ;;  %v1434_v59 = vshll.u32 %v4250_v56, %v1419_v62  ;;  %v4115_v1 = vadd.s32 4294967169, %v1563_v11  ;;  %vm1437_vm5 = vcmp.lt.s32.totalorder %v1418_v18, 1 }
 0x3e9   : > { %v1423_v50 = vshrl.u32 %v4247_v46, %v1420_v3  ;;  %v1426_v53 = vshrl.u32 %v4248_v51, %v1420_v3  ;;  %v1429_v54 = vshrl.u32 %v4249_v17, %v1420_v3  ;;  %v1432_v58 = vshrl.u32 %v4250_v56, %v1420_v3 }
 0x3ea   : > { %v1435_v22 = vshrl.u32 %v4251_v27, %v1420_v3  ;;  %vm1440_vm6 = vcmp.lt.s32.totalorder %v1418_v18, 4  ;;  %v1421_v6 = vshrl.u32 %v4246_v44, %v1420_v3  ;;  %vm1439_vm7 = vcmp.lt.s32.totalorder %v1418_v18, 3 }
 0x3eb   : > { %v1424_v60 = vor.u32 %v1423_v50, %v1422_v45  ;;  %v1427_v61 = vor.u32 %v1426_v53, %v1425_v48  ;;  %v1430_v0 = vor.u32 %v1429_v54, %v1428_v12  ;;  %v1433_v2 = vor.u32 %v1432_v58, %v1431_v55 }
 0x3ec   : > { %v1436_v4 = vor.u32 %v1435_v22, %v1434_v59  ;;  %v1569_v14 = vadd.s32 1, %v4115_v1  ;;  %vm1438_vm8 = vcmp.lt.s32.totalorder %v1418_v18, 2  ;;  %v1567_v63 = vor.u32 8388608, %v4657_v49 }
 0x3ed   : > { %v1442_v8 = vsel %vm1440_vm6, %v1430_v0, 2102212464  ;;  %v1445_v9 = vsel %vm1437_vm5, %v1424_v60, %v1427_v61  ;;  %v1449_v10 = vsel %vm1437_vm5, %v1427_v61, %v1430_v0  ;;  %v1446_v33 = vsel %vm1440_vm6, %v1433_v2, 920167782 }
 0x3ee   : > { %v1450_v37 = vsel %vm1440_vm6, %v1436_v4, 1326507024  ;;  %v1441_v13 = vsel %vm1437_vm5, %v1421_v6, %v1424_v60  ;;  %v1447_v15 = vsel %vm1439_vm7, %v1430_v0, %v1446_v33  ;;  %v1443_v19 = vsel %vm1439_vm7, %v1427_v61, %v1442_v8 }
 0x3ef   : > { %v1451_v16 = vsel %vm1439_vm7, %v1433_v2, %v1450_v37  ;;  %v1448_v20 = vsel %vm1438_vm8, %v1445_v9, %v1447_v15  ;;  %vm1570_vm9 = vcmp.gt.s32.totalorder %v1569_v14, 0  ;;  %v4669_v25 = vsel %vm1438_vm8, %v1441_v13, %v1443_v19  ;;  %v1370_v13 = vpop.f32.mrf.mxu3 }
 0x3f0   : > { %v1452_v21 = vsel %vm1438_vm8, %v1449_v10, %v1451_v16  ;;  %v1478_v23 = vand.u32 65535, %v1448_v20  ;;  %v1479_v24 = vshrl.u32 %v1448_v20, 16  ;;  %v1571_v31 = vsel %vm1570_vm9, %v1569_v14, 0 }
 0x3f1   : > { %v1456_v42 = vand.u32 65535, %v1452_v21  ;;  %v1457_v47 = vshrl.u32 %v1452_v21, 16  ;;  %v1573_v50 = vand.u32 31, %v1571_v31  ;;  %v4252_v53 = vmov 0  }
 0x3f2   : > { %v1481_v34 = vmul.u32 %v1479_v24, %v1454_v7  ;;  %v1482_v35 = vmul.u32 %v1478_v23, %v1455_v43  ;;  %v1480_v41 = vmul.u32 %v1478_v23, %v1454_v7  ;;  %v1483_v62 = vmul.u32 %v1479_v24, %v1455_v43 }
 0x3f3   : > { %v1459_v28 = vmul.u32 %v1457_v47, %v1454_v7  ;;  %v1460_v30 = vmul.u32 %v1456_v42, %v1455_v43  ;;  %v1458_v57 = vmul.u32 %v1456_v42, %v1454_v7  ;;  %v1461_v32 = vmul.u32 %v1457_v47, %v1455_v43 }
 0x3f4   : > { %v1484_v18 = vshll.u32 %v1481_v34, 16  ;;  %v1485_v45 = vshrl.u32 %v1481_v34, 16  ;;  %v1486_v49 = vshll.u32 %v1482_v35, 16  ;;  %v1487_v54 = vshrl.u32 %v1482_v35, 16 }
 0x3f5   : > { %v1462_v36 = vshll.u32 %v1459_v28, 16  ;;  %v1463_v5 = vshrl.u32 %v1459_v28, 16  ;;  %v1464_v3 = vshll.u32 %v1460_v30, 16  ;;  %v1465_v11 = vshrl.u32 %v1460_v30, 16 }
 0x3f6   : > { %vm1488_vm11 = vc.u32 %v1480_v41, %v1484_v18  ;;  %v1490_v55 = vadd.s32 %v1484_v18, %v1480_v41  ;;  %v4673_v7 = vsub.s32 32, %v1573_v50  ;;  %v4676_v60 = vshrl.u32 %v1571_v31, 5 }
 0x3f7   : > { %vm1466_vm10 = vc.u32 %v1458_v57, %v1462_v36  ;;  %v1468_v48 = vadd.s32 %v1462_v36, %v1458_v57  ;;  %v1489_v59 = vsel %vm1488_vm11, 1, %v4252_v53  ;;  %v1576_v2 = vshll.u32 %v4246_v44, %v1573_v50 }
 0x3f8   : > { %v1467_v12 = vsel %vm1466_vm10, 1, %v4252_v53  ;;  %v1491_v22 = vadd.s32 %v1489_v59, %v1483_v62  ;;  %vm1492_vm13 = vc.u32 %v1490_v55, %v1486_v49  ;;  %v4679_v1 = vadd.s32 %v1490_v55, %v1486_v49 }
 0x3f9   : > { %v1469_v58 = vadd.s32 %v1467_v12, %v1461_v32  ;;  %vm1470_vm12 = vc.u32 %v1468_v48, %v1464_v3  ;;  %v1493_v0 = vsel %vm1492_vm13, 1, %v4252_v53  ;;  %v1577_v6 = vshrl.u32 %v4247_v46, %v4673_v7 }
 0x3fa   : > { %v1471_v43 = vsel %vm1470_vm12, 1, %v4252_v53  ;;  %v1495_v4 = vadd.s32 %v1493_v0, %v1491_v22  ;;  %v1579_v8 = vshll.u32 %v4247_v46, %v1573_v50  ;;  %v1580_v9 = vshrl.u32 %v4248_v51, %v4673_v7 }
 0x3fb   : > { %v1473_v61 = vadd.s32 %v1471_v43, %v1469_v58  ;;  %v1582_v33 = vshll.u32 %v4248_v51, %v1573_v50  ;;  %v1583_v37 = vshrl.u32 %v4249_v17, %v4673_v7  ;;  %v1585_v14 = vshll.u32 %v4249_v17, %v1573_v50 }
 0x3fc   : > { %v1496_v15 = vadd.s32 %v1495_v4, %v1485_v45  ;;  %v4691_v16 = vor.u32 %v1577_v6, %v1576_v2  ;;  %v4693_v19 = vor.u32 %v1580_v9, %v1579_v8  ;;  %v1586_v20 = vshrl.u32 %v4250_v56, %v4673_v7 }
 0x3fd   : > { %v1474_v10 = vadd.s32 %v1473_v61, %v1463_v5  ;;  %v4699_v42 = vor.u32 %v1583_v37, %v1582_v33  ;;  %v1588_v47 = vshll.u32 %v4250_v56, %v1573_v50  ;;  %v1589_v23 = vshrl.u32 %v4251_v27, %v4673_v7 }
 0x3fe   : > { %v1497_v24 = vadd.s32 %v1496_v15, %v1487_v54  ;;  %v1587_v28 = vor.u32 %v1586_v20, %v1585_v14  ;;  %v4705_v30 = vadd.f32 %v4635_v26, %v1370_v13  ;;  %vm1591_vm15 = vcmp.lt.s32.totalorder %v4676_v60, 1 }
 0x3ff   : > { %v4697_v21 = vadd.s32 %v1474_v10, %v1465_v11  ;;  %v1590_v31 = vor.u32 %v1589_v23, %v1588_v47  ;;  %v4710_v57 = vshll.u32 %v1567_v63, 8  ;;  %v1498_v32 = vmul.u32 %v4647_v39, %v4669_v25 }
 0x400   : > { %v1501_v34 = vadd.s32 1, %v1497_v24  ;;  %vm1594_vm1 = vcmp.lt.s32.totalorder %v4676_v60, 4  ;;  %v1599_v35 = vsel %vm1591_vm15, %v4691_v16, %v4693_v19  ;;  %vm1593_vm2 = vcmp.lt.s32.totalorder %v4676_v60, 3 }
 0x401   : > { %vm1500_vm14 = vc.u32 %v4697_v21, %v4679_v1  ;;  %v1600_v36 = vsel %vm1594_vm1, %v1587_v28, 920167782  ;;  %v1603_v63 = vsel %vm1591_vm15, %v4693_v19, %v4699_v42  ;;  %v1604_v39 = vsel %vm1594_vm1, %v1590_v31, 1326507024 }
 0x402   : > { %v1502_v25 = vsel %vm1500_vm14, %v1501_v34, %v1497_v24  ;;  %vm1592_vm3 = vcmp.lt.s32.totalorder %v4676_v60, 2  ;;  %v1601_v5 = vsel %vm1593_vm2, %v4699_v42, %v1600_v36  ;;  %v1605_v41 = vsel %vm1593_vm2, %v1587_v28, %v1604_v39 }
 0x403   : > { %v1503_v62 = vadd.s32 %v1502_v25, %v1498_v32  ;;  %v1602_v3 = vsel %vm1592_vm3, %v1599_v35, %v1601_v5  ;;  %v1606_v11 = vsel %vm1592_vm3, %v1603_v63, %v1605_v41  ;;  %v1608_v18 = vand.u32 65535, %v4710_v57 }
 0x404   : > { %v1609_v45 = vshrl.u32 %v4710_v57, 16  ;;  %v1610_v48 = vand.u32 65535, %v1606_v11  ;;  %v1611_v49 = vshrl.u32 %v1606_v11, 16  ;;  %v1633_v50 = vshrl.u32 %v1602_v3, 16 }
 0x405   : > { %v1504_v12 = vadd.s32 536870912, %v1503_v62  ;;  %v1632_v54 = vand.u32 65535, %v1602_v3  ;;  %v1716_v0 = vand.u32 2139095040, %v4705_v30  ;;  %v1575_v36 = vshrl.u32 %v4246_v44, %v4673_v7 }
 0x406   : > { %v1613_v55 = vmul.u32 %v1611_v49, %v1608_v18  ;;  %v1614_v58 = vmul.u32 %v1610_v48, %v1609_v45  ;;  %v1635_v43 = vmul.u32 %v1633_v50, %v1608_v18  ;;  %v1612_v22 = vmul.u32 %v1610_v48, %v1608_v18 }
 0x407   : > { %v4740_v59 = vshrl.u32 %v1504_v12, 30  ;;  %v1615_v4 = vmul.u32 %v1611_v49, %v1609_v45  ;;  %v1636_v6 = vmul.u32 %v1632_v54, %v1609_v45  ;;  %v1634_v33 = vmul.u32 %v1632_v54, %v1608_v18 }
 0x408   : > { %v1616_v61 = vshll.u32 %v1613_v55, 16  ;;  %v1638_v8 = vshll.u32 %v1635_v43, 16  ;;  %v1618_v9 = vshll.u32 %v1614_v58, 16  ;;  %v1617_v14 = vshrl.u32 %v1613_v55, 16 }
 0x409   : > { %v1506_v2 = vshll.u32 %v4740_v59, 30  ;;  %v1637_v20 = vmul.u32 %v1633_v50, %v1609_v45  ;;  %v1640_v24 = vshll.u32 %v1636_v6, 16  ;;  %v1717_v34 = vshrl.u32 %v1716_v0, 23 }
 0x40a   : > { %vm1620_vm4 = vc.u32 %v1612_v22, %v1616_v61  ;;  %v1622_v10 = vadd.s32 %v1616_v61, %v1612_v22  ;;  %vm1642_vm6 = vc.u32 %v1634_v33, %v1638_v8  ;;  %v1644_v32 = vadd.s32 %v1638_v8, %v1634_v33 }
 0x40b   : > { %v1507_v37 = vsub.s32 %v1503_v62, %v1506_v2  ;;  %v1621_v13 = vsel %vm1620_vm4, 1, %v4252_v53  ;;  %v1643_v31 = vsel %vm1642_vm6, 1, %v4252_v53  ;;  %v1596_v63 = vsel %vm1594_vm1, %v4699_v42, 2102212464 }
 0x40c   : > { %v1623_v15 = vadd.s32 %v1621_v13, %v1615_v4  ;;  %vm1624_vm5 = vc.u32 %v1622_v10, %v1618_v9  ;;  %v1645_v5 = vadd.s32 %v1643_v31, %v1637_v20  ;;  %vm1646_vm8 = vc.u32 %v1644_v32, %v1640_v24 }
 0x40d   : > { %vm1508_vm7 = vcmp.lt.s32.totalorder %v1507_v37, 0  ;;  %v1509_v47 = vsub.s32 0, %v1507_v37  ;;  %v1625_v23 = vsel %vm1624_vm5, 1, %v4252_v53  ;;  %v1595_v41 = vsel %vm1591_vm15, %v1575_v36, %v4691_v16 }
 0x40e   : > { %v1627_v28 = vadd.s32 %v1625_v23, %v1623_v15  ;;  %v1619_v62 = vshrl.u32 %v1614_v58, 16  ;;  %v1647_v3 = vsel %vm1646_vm8, 1, %v4252_v53  ;;  %v4118_v11 = vadd.s32 4294967169, %v1717_v34 }
 0x40f   : > { %v1510_v35 = vsel %vm1508_vm7, %v1509_v47, %v1507_v37  ;;  %v1597_v7 = vsel %vm1593_vm2, %v4693_v19, %v1596_v63  ;;  %v1639_v45 = vshrl.u32 %v1635_v43, 16  ;;  %v1649_v48 = vadd.s32 %v1647_v3, %v1645_v5 }
 0x410   : > { %v1511_v39 = vclz %v1510_v35  ;;  %v1628_v25 = vadd.s32 %v1627_v28, %v1617_v14  ;;  %v1723_v49 = vadd.s32 1, %v4118_v11  ;;  %v1499_v50 = vadd.s32 %v4679_v1, %v4697_v21 }
 0x411   : > { %v1641_v12 = vshrl.u32 %v1636_v6, 16  ;;  %v1650_v16 = vadd.s32 %v1649_v48, %v1639_v45  ;;  %v1598_v55 = vsel %vm1592_vm3, %v1595_v41, %v1597_v7  ;;  %v4765_v58 = vadd.s32 %v1644_v32, %v1640_v24 }
 0x412   : > { %v4113_v18 = vadd.s32 4294967294, %v1511_v39  ;;  %v4759_v42 = vadd.s32 %v1628_v25, %v1619_v62  ;;  %vm1724_vm10 = vcmp.gt.s32.totalorder %v1723_v49, 0  ;;  %v1529_v43 = vsub.s32 4, %v4740_v59  ;;  %v1372_v39 = vpop.f32.mrf.mxu3 }
 0x413   : > { %v1651_v61 = vadd.s32 %v1650_v16, %v1641_v12  ;;  %v1713_v1 = vand.u32 2147483647, %v4705_v30  ;;  %v1725_v21 = vsel %vm1724_vm10, %v1723_v49, 0  ;;  %vm4773_vm12 = vcmp.le.f32.partialorder %v1405_v52, 0.7853982 }
 0x414   : > { %vm4114_vm9 = vcmp.lt.s32.totalorder %v4113_v18, 0  ;;  %vm1654_vm11 = vc.u32 %v4759_v42, %v4765_v58  ;;  %vm1407_vm13 = vcmp.lt.s32.totalorder %v4638_v29, 0  ;;  %v1652_v8 = vmul.u32 %v4710_v57, %v1598_v55 }
 0x415   : > { %v1514_v54 = vsel %vm4114_vm9, 0, %v4113_v18  ;;  %v1655_v6 = vadd.s32 1, %v1651_v61  ;;  %v1727_v9 = vand.u32 31, %v1725_v21  ;;  %v1720_v15 = vand.u32 8388607, %v1713_v1 }
 0x416   : > { %v1515_v22 = vsub.s32 32, %v1514_v54  ;;  %v1519_v19 = vsub.s32 4294967266, %v1514_v54  ;;  %v1516_v0 = vshll.u32 %v1507_v37, %v1514_v54  ;;  %v1530_v37 = vsel %vm1407_vm13, %v1529_v43, %v4740_v59 }
 0x417   : > { %v1656_v14 = vsel %vm1654_vm11, %v1655_v6, %v1651_v61  ;;  %v4784_v52 = vshrl.u32 %v1725_v21, 5  ;;  %v1728_v20 = vsub.s32 32, %v1727_v9  ;;  %v1730_v24 = vshll.u32 %v4246_v44, %v1727_v9 }
 0x418   : > { %v1517_v2 = vshrl.u32 %v1499_v50, %v1515_v22  ;;  %v1520_v4 = vadd.s32 127, %v1519_v19  ;;  %v1657_v13 = vadd.s32 %v1656_v14, %v1652_v8  ;;  %v1733_v57 = vshll.u32 %v4247_v46, %v1727_v9 }
 0x419   : > { %v1731_v31 = vshrl.u32 %v4247_v46, %v1728_v20  ;;  %v1734_v32 = vshrl.u32 %v4248_v51, %v1728_v20  ;;  %v1736_v59 = vshll.u32 %v4248_v51, %v1727_v9  ;;  %v1737_v35 = vshrl.u32 %v4249_v17, %v1728_v20 }
 0x41a   : > { %v1518_v10 = vor.u32 %v1517_v2, %v1516_v0  ;;  %v1521_v33 = vshll.u32 %v1520_v4, 23  ;;  %v1658_v28 = vadd.s32 536870912, %v1657_v13  ;;  %v1739_v36 = vshll.u32 %v4249_v17, %v1727_v9 }
 0x41b   : > { %v1740_v63 = vshrl.u32 %v4250_v56, %v1728_v20  ;;  %v1721_v5 = vor.u32 8388608, %v1720_v15  ;;  %v4796_v41 = vor.u32 %v1731_v31, %v1730_v24  ;;  %v4798_v62 = vor.u32 %v1734_v32, %v1733_v57 }
 0x41c   : > { %v1522_v47 = vor.u32 4788187, %v1521_v33  ;;  %v1525_v23 = vcvt.s32.f32 %v1518_v10  ;;  %v4794_v25 = vshrl.u32 %v1658_v28, 30  ;;  %v4800_v11 = vor.u32 %v1737_v35, %v1736_v59 }
 0x41d   : > { %v1741_v18 = vor.u32 %v1740_v63, %v1739_v36  ;;  %v1743_v7 = vshrl.u32 %v4251_v27, %v1728_v20  ;;  %v1532_v45 = vsel %vm4773_vm12, 0, %v1530_v37  ;;  %v4807_v49 = vadd.f32 %v4635_v26, %v1372_v39 }
 0x41e   : > { %v1523_v34 = vand.u32 2147483647, %v1522_v47  ;;  %v1660_v48 = vshll.u32 %v4794_v25, 30  ;;  %v1742_v12 = vshll.u32 %v4250_v56, %v1727_v9  ;;  %vm1745_vm14 = vcmp.lt.s32.totalorder %v4784_v52, 1 }
 0x41f   : > { %vm1748_vm15 = vcmp.lt.s32.totalorder %v4784_v52, 4  ;;  %vm1747_vm1 = vcmp.lt.s32.totalorder %v4784_v52, 3  ;;  %v1753_v54 = vsel %vm1745_vm14, %v4796_v41, %v4798_v62  ;;  %v4826_v61 = vshll.u32 %v1721_v5, 8 }
 0x420   : > { %v1526_v3 = vmul.f32 %v1525_v23, %v1523_v34  ;;  %v4812_v16 = vsub.s32 %v1657_v13, %v1660_v48  ;;  %v1754_v55 = vsel %vm1748_vm15, %v1741_v18, 920167782  ;;  %v1744_v19 = vor.u32 %v1743_v7, %v1742_v12 }
 0x421   : > { %v1755_v43 = vsel %vm1747_vm1, %v4800_v11, %v1754_v55  ;;  %vm1746_vm3 = vcmp.lt.s32.totalorder %v4784_v52, 2  ;;  %v4838_v4 = vand.u32 3, %v1532_v45  ;;  %v1653_v60 = vadd.s32 %v4765_v58, %v4759_v42 }
 0x422   : > { %v1527_v50 = vxor.u32 2147483648, %v1526_v3  ;;  %vm1662_vm2 = vcmp.lt.s32.totalorder %v4812_v16, 0  ;;  %v1663_v0 = vsub.s32 0, %v4812_v16  ;;  %v4842_v6 = vsel %vm1746_vm3, %v1753_v54, %v1755_v43 }
 0x423   : > { %v1757_v9 = vsel %vm1745_vm14, %v4798_v62, %v4800_v11  ;;  %v1867_v10 = vand.u32 2147483647, %v4807_v49  ;;  %v1758_v13 = vsel %vm1748_vm15, %v1744_v19, 1326507024  ;;  %v1762_v42 = vand.u32 65535, %v4826_v61 }
 0x424   : > { %v1528_v22 = vsel %vm1407_vm13, %v1527_v50, %v1526_v3  ;;  %v1664_v8 = vsel %vm1662_vm2, %v1663_v0, %v4812_v16  ;;  %v1759_v15 = vsel %vm1747_vm1, %v1741_v18, %v1758_v13  ;;  %v1763_v58 = vshrl.u32 %v4826_v61, 16 }
 0x425   : > { %v4831_v21 = vsel %vm4773_vm12, %v4638_v29, %v1528_v22  ;;  %v1665_v14 = vclz %v1664_v8  ;;  %v1787_v47 = vshrl.u32 %v4842_v6, 16  ;;  %v1760_v28 = vsel %vm1746_vm3, %v1757_v9, %v1759_v15 }
 0x426   : > { %v1533_v2 = vmul.f32 %v4831_v21, %v4831_v21  ;;  %v4862_v31 = vshrl.u32 %v4246_v44, %v1728_v20  ;;  %v1764_v32 = vand.u32 65535, %v1760_v28  ;;  %v1765_v59 = vshrl.u32 %v1760_v28, 16 }
 0x427   : > { %v4116_v57 = vadd.s32 4294967294, %v1665_v14  ;;  %v1870_v34 = vand.u32 2139095040, %v4807_v49  ;;  %v1683_v63 = vsub.s32 4, %v4794_v25  ;;  %v1786_v18 = vand.u32 65535, %v4842_v6 }
 0x428   : > { %v1534_v33 = vmul.f32 -0.001358992, %v1533_v2  ;;  %v1541_v37 = vmul.f32 -0.00019511016, %v1533_v2  ;;  %v1767_v5 = vmul.u32 %v1765_v59, %v1762_v42  ;;  %v4866_v3 = vmul.u32 %v1764_v32, %v1763_v58 }
 0x429   : > { %vm4117_vm4 = vcmp.lt.s32.totalorder %v4116_v57, 0  ;;  %vm1554_vm5 = vcmp.eq.s32.totalorder %v4838_v4, 2  ;;  %v4870_v48 = vmul.u32 %v1787_v47, %v1762_v42  ;;  %vm1551_vm6 = vcmp.eq.s32.totalorder %v4838_v4, 0 }
 0x42a   : > { %v1535_v23 = vadd.f32 0.041655596, %v1534_v33  ;;  %v1542_v24 = vadd.f32 0.008332121, %v1541_v37  ;;  %v1668_v39 = vsel %vm4117_vm4, 0, %v4116_v57  ;;  %v1766_v54 = vmul.u32 %v1764_v32, %v1762_v42 }
 0x42b   : > { %v1669_v20 = vsub.s32 32, %v1668_v39  ;;  %v1670_v50 = vshll.u32 %v4812_v16, %v1668_v39  ;;  %v1673_v12 = vsub.s32 4294967266, %v1668_v39  ;;  %v1770_v55 = vshll.u32 %v1767_v5, 16 }
 0x42c   : > { %v1536_v35 = vmul.f32 %v1535_v23, %v1533_v2  ;;  %v1543_v36 = vmul.f32 %v1542_v24, %v1533_v2  ;;  %vm1550_vm7 = vcmp.lt.s32.totalorder %v4838_v4, 2  ;;  %v1769_v0 = vmul.u32 %v1765_v59, %v1763_v58 }
 0x42d   : > { %v1671_v43 = vshrl.u32 %v1653_v60, %v1669_v20  ;;  %vm1548_vm8 = vweird.f32 %v4638_v29  ;;  %vm1561_vm9 = vcmp.lt.s32.totalorder %v4645_v38, 0  ;;  %v1674_v6 = vadd.s32 127, %v1673_v12 }
 0x42e   : > { %v1537_v7 = vadd.f32 -0.4999988, %v1536_v35  ;;  %v1544_v45 = vadd.f32 -0.16666654, %v1543_v36  ;;  %v1772_v8 = vshll.u32 %v4866_v3, 16  ;;  %vm1774_vm10 = vc.u32 %v1766_v54, %v1770_v55 }
 0x42f   : > { %v1776_v9 = vadd.s32 %v1770_v55, %v1766_v54  ;;  %v1672_v37 = vor.u32 %v1671_v43, %v1670_v50  ;;  %v1775_v14 = vsel %vm1774_vm10, 1, %v4252_v53  ;;  %v1675_v13 = vshll.u32 %v1674_v6, 23 }
 0x430   : > { %v1538_v22 = vmul.f32 %v1537_v7, %v1533_v2  ;;  %v1545_v19 = vmul.f32 %v1544_v45, %v1533_v2  ;;  %v1750_v2 = vsel %vm1748_vm15, %v4800_v11, 2102212464  ;;  %v1777_v60 = vadd.s32 %v1775_v14, %v1769_v0 }
 0x431   : > { %vm1778_vm11 = vc.u32 %v1776_v9, %v1772_v8  ;;  %vm4885_vm12 = vcmp.le.f32.partialorder %v1559_v40, 0.7853982  ;;  %v1790_v28 = vmul.u32 %v1786_v18, %v1763_v58  ;;  %v1676_v32 = vor.u32 4788187, %v1675_v13 }
 0x432   : > { %v1539_v33 = vadd.f32 1.0, %v1538_v22  ;;  %v1546_v16 = vadd.f32 1.0, %v1545_v19  ;;  %v1779_v57 = vsel %vm1778_vm11, 1, %v4252_v53  ;;  %v1788_v35 = vmul.u32 %v1786_v18, %v1762_v42 }
 0x433   : > { %v1781_v59 = vadd.s32 %v1779_v57, %v1777_v60  ;;  %v1792_v11 = vshll.u32 %v4870_v48, 16  ;;  %v1679_v39 = vcvt.s32.f32 %v1672_v37  ;;  %v1771_v7 = vshrl.u32 %v1767_v5, 16 }
 0x434   : > { %v1547_v15 = vmul.f32 %v1546_v16, %v4831_v21  ;;  %v1555_v23 = vxor.u32 2147483648, %v1539_v33  ;;  %v1791_v21 = vmul.u32 %v1787_v47, %v1763_v58  ;;  %v1677_v20 = vand.u32 2147483647, %v1676_v32 }
 0x435   : > { %vm1796_vm13 = vc.u32 %v1788_v35, %v1792_v11  ;;  %v1798_v40 = vadd.s32 %v1792_v11, %v1788_v35  ;;  %v1794_v18 = vshll.u32 %v1790_v28, 16  ;;  %v1871_v5 = vshrl.u32 %v1870_v34, 23 }
 0x436   : > { %v1552_v36 = vxor.u32 2147483648, %v1547_v15  ;;  %v1556_v45 = vsel %vm1554_vm5, %v1555_v23, %v1547_v15  ;;  %v1797_v50 = vsel %vm1796_vm13, 1, %v4252_v53  ;;  %v1680_v47 = vmul.f32 %v1679_v39, %v1677_v20 }
 0x437   : > { %v1782_v12 = vadd.s32 %v1781_v59, %v1771_v7  ;;  %v1799_v54 = vadd.s32 %v1797_v50, %v1791_v21  ;;  %v1684_v22 = vsel %vm1561_vm9, %v1683_v63, %v4794_v25  ;;  %vm1800_vm15 = vc.u32 %v1798_v40, %v1794_v18 }
 0x438   : > { %v1553_v42 = vsel %vm1551_vm6, %v1539_v33, %v1552_v36  ;;  %v4121_v19 = vadd.s32 4294967169, %v1871_v5  ;;  %v1681_v43 = vxor.u32 2147483648, %v1680_v47  ;;  %v1749_v4 = vsel %vm1745_vm14, %v4862_v31, %v4796_v41 }
 0x439   : > { %v1557_v58 = vsel %vm1550_vm7, %v1553_v42, %v1556_v45  ;;  %v1773_v34 = vshrl.u32 %v4866_v3, 16  ;;  %v1801_v0 = vsel %vm1800_vm15, 1, %v4252_v53  ;;  %v1751_v29 = vsel %vm1747_vm1, %v4798_v62, %v1750_v2 }
 0x43a   : > { %v1558_v55 = vsel %vm1548_vm8, nan, %v1557_v58  ;;  %v1793_v25 = vshrl.u32 %v4870_v48, 16  ;;  %v1803_v63 = vadd.s32 %v1801_v0, %v1799_v54  ;;  %v1877_v6 = vadd.s32 1, %v4121_v19 }
 0x43b   : > { %3869 = vst.msk [vmem:[%s4897_s25] sm:$0xff] %vm627_vm0, %v1558_v55  ;;  %v1682_v8 = vsel %vm1561_vm9, %v1681_v43, %v1680_v47  ;;  %v1686_v9 = vsel %vm4885_vm12, 0, %v1684_v22  ;;  %v4925_v33 = vadd.s32 %v1782_v12, %v1773_v34  ;;  %v1874_v41 = vand.u32 8388607, %v1867_v10 }
 0x43c   : > { %v1685_v31 = vsel %vm4885_vm12, %v4645_v38, %v1682_v8  ;;  %v1795_v62 = vshrl.u32 %v1790_v28, 16  ;;  %v1804_v3 = vadd.s32 %v1803_v63, %v1793_v25  ;;  %vm1878_vm14 = vcmp.gt.s32.totalorder %v1877_v6, 0 }
 0x43d   : > { %v1687_v48 = vmul.f32 %v1685_v31, %v1685_v31  ;;  %v1752_v16 = vsel %vm1746_vm3, %v1749_v4, %v1751_v29  ;;  %v4934_v37 = vadd.s32 %v1798_v40, %v1794_v18  ;;  %v1879_v14 = vsel %vm1878_vm14, %v1877_v6, 0 }
 0x43e   : > { %v1805_v13 = vadd.s32 %v1804_v3, %v1795_v62  ;;  %v1881_v2 = vand.u32 31, %v1879_v14  ;;  %v4938_v23 = vand.u32 3, %v1686_v9  ;;  %v1806_v24 = vmul.u32 %v4826_v61, %v1752_v16  ;;  %v1375_v9 = vpop.f32.mrf.mxu3 }
 0x43f   : > { %v1688_v60 = vmul.f32 -0.001358992, %v1687_v48  ;;  %v1695_v15 = vmul.f32 -0.00019511016, %v1687_v48  ;;  %vm1808_vm1 = vc.u32 %v4925_v33, %v4934_v37  ;;  %v1875_v59 = vor.u32 8388608, %v1874_v41 }
 0x440   : > { %v1809_v57 = vadd.s32 1, %v1805_v13  ;;  %v4941_v28 = vsub.s32 32, %v1881_v2  ;;  %v4943_v35 = vshrl.u32 %v1879_v14, 5  ;;  %v1884_v36 = vshll.u32 %v4246_v44, %v1881_v2 }
 0x441   : > { %v1689_v32 = vadd.f32 0.041655596, %v1688_v60  ;;  %v1696_v52 = vadd.f32 0.008332121, %v1695_v15  ;;  %v1887_v40 = vshll.u32 %v4247_v46, %v1881_v2  ;;  %v1890_v42 = vshll.u32 %v4248_v51, %v1881_v2 }
 0x442   : > { %v1810_v11 = vsel %vm1808_vm1, %v1809_v57, %v1805_v13  ;;  %v1885_v39 = vshrl.u32 %v4247_v46, %v4941_v28  ;;  %v1888_v7 = vshrl.u32 %v4248_v51, %v4941_v28  ;;  %v1891_v20 = vshrl.u32 %v4249_v17, %v4941_v28 }
 0x443   : > { %v1690_v21 = vmul.f32 %v1689_v32, %v1687_v48  ;;  %v1697_v45 = vmul.f32 %v1696_v52, %v1687_v48  ;;  %v1811_v61 = vadd.s32 %v1810_v11, %v1806_v24  ;;  %v1893_v18 = vshll.u32 %v4249_v17, %v1881_v2 }
 0x444   : > { %v1894_v50 = vshrl.u32 %v4250_v56, %v4941_v28  ;;  %v4957_v12 = vor.u32 %v1885_v39, %v1884_v36  ;;  %v4959_v54 = vor.u32 %v1888_v7, %v1887_v40  ;;  %v1896_v22 = vshll.u32 %v4250_v56, %v1881_v2 }
 0x445   : > { %v1691_v5 = vadd.f32 -0.4999988, %v1690_v21  ;;  %v1698_v58 = vadd.f32 -0.16666654, %v1697_v45  ;;  %v1812_v47 = vadd.s32 536870912, %v1811_v61  ;;  %v1897_v19 = vshrl.u32 %v4251_v27, %v4941_v28 }
 0x446   : > { %v1895_v55 = vor.u32 %v1894_v50, %v1893_v18  ;;  %vm1704_vm2 = vcmp.lt.s32.totalorder %v4938_v23, 2  ;;  %v1892_v0 = vor.u32 %v1891_v20, %v1890_v42  ;;  %vm1705_vm3 = vcmp.eq.s32.totalorder %v4938_v23, 0 }
 0x447   : > { %v1692_v43 = vmul.f32 %v1691_v5, %v1687_v48  ;;  %v1699_v4 = vmul.f32 %v1698_v58, %v1687_v48  ;;  %v4965_v34 = vshrl.u32 %v1812_v47, 30  ;;  %v1898_v29 = vor.u32 %v1897_v19, %v1896_v22 }
 0x448   : > { %vm1899_vm4 = vcmp.lt.s32.totalorder %v4943_v35, 1  ;;  %v4969_v25 = vshll.u32 %v1875_v59, 8  ;;  %vm1902_vm5 = vcmp.lt.s32.totalorder %v4943_v35, 4  ;;  %vm1901_vm6 = vcmp.lt.s32.totalorder %v4943_v35, 3 }
 0x449   : > { %v1693_v63 = vadd.f32 1.0, %v1692_v43  ;;  %v1700_v6 = vadd.f32 1.0, %v1699_v4  ;;  %v1814_v8 = vshll.u32 %v4965_v34, 30  ;;  %v1907_v41 = vsel %vm1899_vm4, %v4957_v12, %v4959_v54 }
 0x44a   : > { %v1908_v62 = vsel %vm1902_vm5, %v1895_v55, 920167782  ;;  %v1912_v3 = vsel %vm1902_vm5, %v1898_v29, 1326507024  ;;  %v1911_v13 = vsel %vm1899_vm4, %v4959_v54, %v1892_v0  ;;  %vm1708_vm7 = vcmp.eq.s32.totalorder %v4938_v23, 2 }
 0x44b   : > { %v1701_v48 = vmul.f32 %v1700_v6, %v1685_v31  ;;  %v1709_v16 = vxor.u32 2147483648, %v1693_v63  ;;  %v1815_v14 = vsub.s32 %v1811_v61, %v1814_v8  ;;  %v1909_v2 = vsel %vm1901_vm6, %v1892_v0, %v1908_v62 }
 0x44c   : > { %v1913_v60 = vsel %vm1901_vm6, %v1895_v55, %v1912_v3  ;;  %v4991_v15 = vadd.f32 %v4635_v26, %v1375_v9  ;;  %vm1900_vm9 = vcmp.lt.s32.totalorder %v4943_v35, 2  ;;  %v1916_v59 = vand.u32 65535, %v4969_v25 }
 0x44d   : > { %v1706_v24 = vxor.u32 2147483648, %v1701_v48  ;;  %vm1816_vm8 = vcmp.lt.s32.totalorder %v1815_v14, 0  ;;  %v1817_v31 = vsub.s32 0, %v1815_v14  ;;  %v1710_v57 = vsel %vm1708_vm7, %v1709_v16, %v1701_v48 }
 0x44e   : > { %v1910_v32 = vsel %vm1900_vm9, %v1907_v41, %v1909_v2  ;;  %v1914_v52 = vsel %vm1900_vm9, %v1911_v13, %v1913_v60  ;;  %vm1702_vm10 = vweird.f32 %v4645_v38  ;;  %v1917_v45 = vshrl.u32 %v4969_v25, 16 }
 0x44f   : > { %v1707_v11 = vsel %vm1705_vm3, %v1693_v63, %v1706_v24  ;;  %v1818_v26 = vsel %vm1816_vm8, %v1817_v31, %v1815_v14  ;;  %v1918_v36 = vand.u32 65535, %v1914_v52  ;;  %v1919_v39 = vshrl.u32 %v1914_v52, 16 }
 0x450   : > { %v1711_v7 = vsel %vm1704_vm2, %v1707_v11, %v1710_v57  ;;  %v1819_v21 = vclz %v1818_v26  ;;  %v1807_v20 = vadd.s32 %v4934_v37, %v4925_v33  ;;  %v2021_v42 = vand.u32 2147483647, %v4991_v15 }
 0x451   : > { %v1712_v61 = vsel %vm1702_vm10, nan, %v1711_v7  ;;  %v1921_v40 = vmul.u32 %v1919_v39, %v1916_v59  ;;  %v1922_v50 = vmul.u32 %v1918_v36, %v1917_v45  ;;  %v1940_v5 = vand.u32 65535, %v1910_v32 }
 0x452   : > { %3870 = vst.msk [vmem:[%s4897_s25 + $0x8] sm:$0xff] %vm627_vm0, %v1712_v61  ;;  %v4119_v18 = vadd.s32 4294967294, %v1819_v21  ;;  %v2024_v38 = vand.u32 2139095040, %v4991_v15  ;;  %v1883_v23 = vshrl.u32 %v4246_v44, %v4941_v28  ;;  %v1920_v58 = vmul.u32 %v1918_v36, %v1916_v59 }
 0x453   : > { %v1924_v47 = vshll.u32 %v1921_v40, 16  ;;  %v1941_v55 = vshrl.u32 %v1910_v32, 16  ;;  %v1904_v33 = vsel %vm1902_vm5, %v1892_v0, 2102212464  ;;  %v1923_v37 = vmul.u32 %v1919_v39, %v1917_v45 }
 0x454   : > { %vm4120_vm11 = vcmp.lt.s32.totalorder %v4119_v18, 0  ;;  %v1926_v22 = vshll.u32 %v1922_v50, 16  ;;  %v1942_v8 = vmul.u32 %v1940_v5, %v1916_v59  ;;  %v1944_v41 = vmul.u32 %v1940_v5, %v1917_v45 }
 0x455   : > { %v1822_v19 = vsel %vm4120_vm11, 0, %v4119_v18  ;;  %vm1928_vm12 = vc.u32 %v1920_v58, %v1924_v47  ;;  %v1930_v43 = vadd.s32 %v1924_v47, %v1920_v58  ;;  %v1943_v4 = vmul.u32 %v1941_v55, %v1916_v59 }
 0x456   : > { %v1823_v29 = vsub.s32 32, %v1822_v19  ;;  %v1827_v63 = vsub.s32 4294967266, %v1822_v19  ;;  %v1929_v6 = vsel %vm1928_vm12, 1, %v4252_v53  ;;  %v1824_v9 = vshll.u32 %v1815_v14, %v1822_v19 }
 0x457   : > { %v1931_v28 = vadd.s32 %v1929_v6, %v1923_v37  ;;  %vm1932_vm13 = vc.u32 %v1930_v43, %v1926_v22  ;;  %v1946_v0 = vshll.u32 %v1943_v4, 16  ;;  %v1925_v16 = vshrl.u32 %v1921_v40, 16 }
 0x458   : > { %v1825_v62 = vshrl.u32 %v1807_v20, %v1823_v29  ;;  %v1828_v3 = vadd.s32 127, %v1827_v63  ;;  %v1933_v48 = vsel %vm1932_vm13, 1, %v4252_v53  ;;  %v1945_v2 = vmul.u32 %v1941_v55, %v1917_v45 }
 0x459   : > { %v1935_v13 = vadd.s32 %v1933_v48, %v1931_v28  ;;  %v1948_v60 = vshll.u32 %v1944_v41, 16  ;;  %vm1950_vm15 = vc.u32 %v1942_v8, %v1946_v0  ;;  %v1952_v57 = vadd.s32 %v1946_v0, %v1942_v8  ;;  %v5065_v0 = vld [vmem:[%s6506_s13] ss:$0 sm:$0xff] }
 0x45a   : > { %v1826_v24 = vor.u32 %v1825_v62, %v1824_v9  ;;  %v1829_v31 = vshll.u32 %v1828_v3, 23  ;;  %v1903_v14 = vsel %vm1899_vm4, %v1883_v23, %v4957_v12  ;;  %v1951_v52 = vsel %vm1950_vm15, 1, %v4252_v53 }
 0x45b   : > { %v1936_v32 = vadd.s32 %v1935_v13, %v1925_v16  ;;  %v2025_v59 = vshrl.u32 %v2024_v38, 23  ;;  %v1837_v26 = vsub.s32 4, %v4965_v34  ;;  %v1953_v36 = vadd.s32 %v1951_v52, %v1945_v2 }
 0x45c   : > { %v1830_v11 = vor.u32 4788187, %v1829_v31  ;;  %vm1954_vm14 = vc.u32 %v1952_v57, %v1948_v60  ;;  %v1905_v39 = vsel %vm1901_vm6, %v4959_v54, %v1904_v33  ;;  %v1927_v7 = vshrl.u32 %v1922_v50, 16 }
 0x45d   : > { %v1955_v21 = vsel %vm1954_vm14, 1, %v4252_v53  ;;  %v4124_v45 = vadd.s32 4294967169, %v2025_v59  ;;  %v1833_v20 = vcvt.s32.f32 %v1826_v24  ;;  %v1947_v12 = vshrl.u32 %v1943_v4, 16  ;;  %v1377_v4 = vpop.f32.mrf.mxu3 }
 0x45e   : > { %v1831_v61 = vand.u32 2147483647, %v1830_v11  ;;  %v1957_v40 = vadd.s32 %v1955_v21, %v1953_v36  ;;  %vm1715_vm1 = vcmp.lt.s32.totalorder %v4705_v30, 0  ;;  %v5027_v18 = vadd.s32 %v1936_v32, %v1927_v7 }
 0x45f   : > { %v2031_v5 = vadd.s32 1, %v4124_v45  ;;  %v1838_v23 = vsel %vm1715_vm1, %v1837_v26, %v4965_v34  ;;  %v1949_v58 = vshrl.u32 %v1944_v41, 16  ;;  %vm5034_vm2 = vcmp.le.f32.partialorder %v1713_v1, 0.7853982 }
 0x460   : > { %v1834_v38 = vmul.f32 %v1833_v20, %v1831_v61  ;;  %v1958_v54 = vadd.s32 %v1957_v40, %v1947_v12  ;;  %v1906_v47 = vsel %vm1900_vm9, %v1903_v14, %v1905_v39  ;;  %v5040_v55 = vadd.s32 %v1952_v57, %v1948_v60 }
 0x461   : > { %vm2032_vm3 = vcmp.gt.s32.totalorder %v2031_v5, 0  ;;  %v2028_v22 = vand.u32 8388607, %v2021_v42  ;;  %v1840_v19 = vsel %vm5034_vm2, 0, %v1838_v23  ;;  %v1960_v63 = vmul.u32 %v4969_v25, %v1906_v47 }
 0x462   : > { %v1835_v33 = vxor.u32 2147483648, %v1834_v38  ;;  %v1959_v37 = vadd.s32 %v1958_v54, %v1949_v58  ;;  %v2033_v34 = vsel %vm2032_vm3, %v2031_v5, 0  ;;  %vm1962_vm4 = vc.u32 %v5027_v18, %v5040_v55 }
 0x463   : > { %v2035_v1 = vand.u32 31, %v2033_v34  ;;  %v5056_v9 = vand.u32 3, %v1840_v19  ;;  %v2029_v41 = vor.u32 8388608, %v2028_v22  ;;  %v5068_v25 = vadd.f32 %v5065_v0, %v1377_v4 }
 0x464   : > { %v1836_v35 = vsel %vm1715_vm1, %v1835_v33, %v1834_v38  ;;  %v1963_v43 = vadd.s32 1, %v1959_v37  ;;  %v5077_v59 = vshrl.u32 %v2033_v34, 5  ;;  %vm1856_vm10 = vweird.f32 %v4705_v30 }
 0x465   : > { %v1839_v29 = vsel %vm5034_vm2, %v4705_v30, %v1836_v35  ;;  %v5054_v6 = vsub.s32 32, %v2035_v1  ;;  %v2038_v2 = vshll.u32 %v4246_v44, %v2035_v1  ;;  %v2041_v31 = vshll.u32 %v4247_v46, %v2035_v1 }
 0x466   : > { %v1841_v8 = vmul.f32 %v1839_v29, %v1839_v29  ;;  %v1964_v28 = vsel %vm1962_vm4, %v1963_v43, %v1959_v37  ;;  %v2047_v14 = vshll.u32 %v4249_v17, %v2035_v1  ;;  %v2044_v11 = vshll.u32 %v4248_v51, %v2035_v1 }
 0x467   : > { %v1965_v62 = vadd.s32 %v1964_v28, %v1960_v63  ;;  %v2039_v3 = vshrl.u32 %v4247_v46, %v5054_v6  ;;  %v2042_v48 = vshrl.u32 %v4248_v51, %v5054_v6  ;;  %v2048_v60 = vshrl.u32 %v4250_v56, %v5054_v6 }
 0x468   : > { %v1842_v16 = vmul.f32 -0.001358992, %v1841_v8  ;;  %v1849_v13 = vmul.f32 -0.00019511016, %v1841_v8  ;;  %v2045_v57 = vshrl.u32 %v4249_v17, %v5054_v6  ;;  %v2051_v61 = vshrl.u32 %v4251_v27, %v5054_v6 }
 0x469   : > { %v1966_v24 = vadd.s32 536870912, %v1965_v62  ;;  %v5082_v36 = vor.u32 %v2039_v3, %v2038_v2  ;;  %v5084_v39 = vor.u32 %v2042_v48, %v2041_v31  ;;  %v2049_v7 = vor.u32 %v2048_v60, %v2047_v14 }
 0x46a   : > { %v1843_v32 = vadd.f32 0.041655596, %v1842_v16  ;;  %v1850_v52 = vadd.f32 0.008332121, %v1849_v13  ;;  %v2046_v12 = vor.u32 %v2045_v57, %v2044_v11  ;;  %v2050_v40 = vshll.u32 %v4250_v56, %v2035_v1 }
 0x46b   : > { %v5080_v26 = vshrl.u32 %v1966_v24, 30  ;;  %v5090_v5 = vshll.u32 %v2029_v41, 8  ;;  %vm2053_vm5 = vcmp.lt.s32.totalorder %v5077_v59, 1  ;;  %vm2056_vm6 = vcmp.lt.s32.totalorder %v5077_v59, 4 }
 0x46c   : > { %v1844_v21 = vmul.f32 %v1843_v32, %v1841_v8  ;;  %v1851_v45 = vmul.f32 %v1850_v52, %v1841_v8  ;;  %vm1859_vm7 = vcmp.eq.s32.totalorder %v5056_v9, 0  ;;  %v2061_v54 = vsel %vm2053_vm5, %v5082_v36, %v5084_v39 }
 0x46d   : > { %v1968_v20 = vshll.u32 %v5080_v26, 30  ;;  %v2062_v50 = vsel %vm2056_vm6, %v2049_v7, 920167782  ;;  %v2178_v47 = vand.u32 2139095040, %v5068_v25  ;;  %vm1858_vm8 = vcmp.lt.s32.totalorder %v5056_v9, 2 }
 0x46e   : > { %v1845_v38 = vadd.f32 -0.4999988, %v1844_v21  ;;  %v1852_v23 = vadd.f32 -0.16666654, %v1851_v45  ;;  %v2052_v22 = vor.u32 %v2051_v61, %v2050_v40  ;;  %vm2055_vm9 = vcmp.lt.s32.totalorder %v5077_v59, 3 }
 0x46f   : > { %v5095_v58 = vsub.s32 %v1965_v62, %v1968_v20  ;;  %vm2054_vm12 = vcmp.lt.s32.totalorder %v5077_v59, 2  ;;  %v2063_v19 = vsel %vm2055_vm9, %v2046_v12, %v2062_v50  ;;  %vm1862_vm13 = vcmp.eq.s32.totalorder %v5056_v9, 2 }
 0x470   : > { %v1846_v33 = vmul.f32 %v1845_v38, %v1841_v8  ;;  %v1853_v37 = vmul.f32 %v1852_v23, %v1841_v8  ;;  %v2064_v43 = vsel %vm2054_vm12, %v2061_v54, %v2063_v19  ;;  %v1961_v4 = vadd.s32 %v5040_v55, %v5027_v18 }
 0x471   : > { %vm1970_vm11 = vcmp.lt.s32.totalorder %v5095_v58, 0  ;;  %v1971_v34 = vsub.s32 0, %v5095_v58  ;;  %v2065_v8 = vsel %vm2053_vm5, %v5084_v39, %v2046_v12  ;;  %v2070_v28 = vand.u32 65535, %v5090_v5 }
 0x472   : > { %v1847_v1 = vadd.f32 1.0, %v1846_v33  ;;  %v1854_v35 = vadd.f32 1.0, %v1853_v37  ;;  %v2066_v48 = vsel %vm2056_vm6, %v2052_v22, 1326507024  ;;  %v2071_v13 = vshrl.u32 %v5090_v5, 16 }
 0x473   : > { %v1972_v63 = vsel %vm1970_vm11, %v1971_v34, %v5095_v58  ;;  %v2067_v16 = vsel %vm2055_vm9, %v2049_v7, %v2066_v48  ;;  %v2095_v18 = vshrl.u32 %v2064_v43, 16  ;;  %v2179_v55 = vshrl.u32 %v2178_v47, 23 }
 0x474   : > { %v1855_v41 = vmul.f32 %v1854_v35, %v1839_v29  ;;  %v1863_v62 = vxor.u32 2147483648, %v1847_v1  ;;  %v1973_v3 = vclz %v1972_v63  ;;  %v2068_v24 = vsel %vm2054_vm12, %v2065_v8, %v2067_v16 }
 0x475   : > { %v2094_v31 = vand.u32 65535, %v2064_v43  ;;  %v1991_v29 = vsub.s32 4, %v5080_v26  ;;  %v2037_v57 = vshrl.u32 %v4246_v44, %v5054_v6  ;;  %v2072_v14 = vand.u32 65535, %v2068_v24 }
 0x476   : > { %v1860_v2 = vxor.u32 2147483648, %v1855_v41  ;;  %v4122_v60 = vadd.s32 4294967294, %v1973_v3  ;;  %v2073_v32 = vshrl.u32 %v2068_v24, 16  ;;  %v1864_v11 = vsel %vm1862_vm13, %v1863_v62, %v1855_v41 }
 0x477   : > { %v2097_v7 = vmul.u32 %v2095_v18, %v2070_v28  ;;  %vm1869_vm14 = vcmp.lt.s32.totalorder %v4807_v49, 0  ;;  %v2058_v6 = vsel %vm2056_vm6, %v2046_v12, 2102212464  ;;  %v2096_v23 = vmul.u32 %v2094_v31, %v2070_v28 }
 0x478   : > { %v1861_v52 = vsel %vm1859_vm7, %v1847_v1, %v1860_v2  ;;  %vm4123_vm15 = vcmp.lt.s32.totalorder %v4122_v60, 0  ;;  %v2075_v61 = vmul.u32 %v2073_v32, %v2070_v28  ;;  %v2074_v54 = vmul.u32 %v2072_v14, %v2070_v28 }
 0x479   : > { %v1865_v21 = vsel %vm1858_vm8, %v1861_v52, %v1864_v11  ;;  %v1976_v45 = vsel %vm4123_vm15, 0, %v4122_v60  ;;  %v2076_v50 = vmul.u32 %v2072_v14, %v2071_v13  ;;  %v2098_v9 = vmul.u32 %v2094_v31, %v2071_v13 }
 0x47a   : > { %v1866_v20 = vsel %vm1856_vm10, nan, %v1865_v21  ;;  %v1977_v40 = vsub.s32 32, %v1976_v45  ;;  %v1981_v38 = vsub.s32 4294967266, %v1976_v45  ;;  %v2078_v47 = vshll.u32 %v2075_v61, 16 }
 0x47b   : > { %3871 = vst.msk [vmem:[%s4897_s25 + $0x10] sm:$0xff] %vm627_vm0, %v1866_v20  ;;  %vm5147_vm1 = vcmp.le.f32.partialorder %v1867_v10, 0.7853982  ;;  %v1978_v12 = vshll.u32 %v5095_v58, %v1976_v45  ;;  %v2100_v22 = vshll.u32 %v2097_v7, 16  ;;  %v2077_v34 = vmul.u32 %v2073_v32, %v2071_v13 }
 0x47c   : > { %v1979_v37 = vshrl.u32 %v1961_v4, %v1977_v40  ;;  %v1982_v30 = vadd.s32 127, %v1981_v38  ;;  %v2080_v19 = vshll.u32 %v2076_v50, 16  ;;  %vm2082_vm2 = vc.u32 %v2074_v54, %v2078_v47 }
 0x47d   : > { %v2084_v1 = vadd.s32 %v2078_v47, %v2074_v54  ;;  %v2083_v63 = vsel %vm2082_vm2, 1, %v4252_v53  ;;  %v2099_v8 = vmul.u32 %v2095_v18, %v2071_v13  ;;  %v2079_v28 = vshrl.u32 %v2075_v61, 16 }
 0x47e   : > { %v1980_v35 = vor.u32 %v1979_v37, %v1978_v12  ;;  %v1983_v43 = vshll.u32 %v1982_v30, 23  ;;  %v2085_v41 = vadd.s32 %v2083_v63, %v2077_v34  ;;  %vm2104_vm4 = vc.u32 %v2096_v23, %v2100_v22 }
 0x47f   : > { %vm2086_vm3 = vc.u32 %v2084_v1, %v2080_v19  ;;  %v2102_v58 = vshll.u32 %v2098_v9, 16  ;;  %v2105_v4 = vsel %vm2104_vm4, 1, %v4252_v53  ;;  %v2106_v48 = vadd.s32 %v2100_v22, %v2096_v23 }
 0x480   : > { %v1984_v10 = vor.u32 4788187, %v1983_v43  ;;  %v2087_v62 = vsel %vm2086_vm3, 1, %v4252_v53  ;;  %v2107_v16 = vadd.s32 %v2105_v4, %v2099_v8  ;;  %v4127_v2 = vadd.s32 4294967169, %v2179_v55 }
 0x481   : > { %v2089_v3 = vadd.s32 %v2087_v62, %v2085_v41  ;;  %v1987_v24 = vcvt.s32.f32 %v1980_v35  ;;  %v1992_v13 = vsel %vm1869_vm14, %v1991_v29, %v5080_v26  ;;  %v2057_v18 = vsel %vm2053_vm5, %v2037_v57, %v5082_v36 }
 0x482   : > { %v1985_v60 = vand.u32 2147483647, %v1984_v10  ;;  %v2059_v31 = vsel %vm2055_vm9, %v5084_v39, %v2058_v6  ;;  %vm2108_vm6 = vc.u32 %v2106_v48, %v2102_v58  ;;  %v2185_v32 = vadd.s32 1, %v4127_v2 }
 0x483   : > { %v2090_v14 = vadd.s32 %v2089_v3, %v2079_v28  ;;  %v2081_v11 = vshrl.u32 %v2076_v50, 16  ;;  %v2109_v55 = vsel %vm2108_vm6, 1, %v4252_v53  ;;  %v2175_v21 = vand.u32 2147483647, %v5068_v25 }
 0x484   : > { %v1988_v52 = vmul.f32 %v1987_v24, %v1985_v60  ;;  %v1994_v26 = vsel %vm5147_vm1, 0, %v1992_v13  ;;  %v2101_v29 = vshrl.u32 %v2097_v7, 16  ;;  %v2111_v45 = vadd.s32 %v2109_v55, %v2107_v16 }
 0x485   : > { %vm2186_vm7 = vcmp.gt.s32.totalorder %v2185_v32, 0  ;;  %v2060_v57 = vsel %vm2054_vm12, %v2057_v18, %v2059_v31  ;;  %v5170_v39 = vadd.s32 %v2090_v14, %v2081_v11  ;;  %v2103_v61 = vshrl.u32 %v2098_v9, 16  ;;  %v1380_v11 = vpop.f32.mrf.mxu3 }
 0x486   : > { %v1989_v36 = vxor.u32 2147483648, %v1988_v52  ;;  %v2187_v6 = vsel %vm2186_vm7, %v2185_v32, 0  ;;  %v2112_v20 = vadd.s32 %v2111_v45, %v2101_v29  ;;  %v5174_v38 = vadd.s32 %v2106_v48, %v2102_v58 }
 0x487   : > { %v2182_v23 = vand.u32 8388607, %v2175_v21  ;;  %v2189_v7 = vand.u32 31, %v2187_v6  ;;  %v5183_v59 = vand.u32 3, %v1994_v26  ;;  %v2114_v47 = vmul.u32 %v5090_v5, %v2060_v57 }
 0x488   : > { %v1990_v40 = vsel %vm1869_vm14, %v1989_v36, %v1988_v52  ;;  %v2113_v50 = vadd.s32 %v2112_v20, %v2103_v61  ;;  %vm2116_vm5 = vc.u32 %v5170_v39, %v5174_v38  ;;  %v5190_v12 = vshrl.u32 %v2187_v6, 5 }
 0x489   : > { %v5181_v54 = vsel %vm5147_vm1, %v4807_v49, %v1990_v40  ;;  %v5192_v37 = vsub.s32 32, %v2189_v7  ;;  %v2192_v33 = vshll.u32 %v4246_v44, %v2189_v7  ;;  %v2195_v22 = vshll.u32 %v4247_v46, %v2189_v7 }
 0x48a   : > { %v1995_v9 = vmul.f32 %v5181_v54, %v5181_v54  ;;  %v2117_v30 = vadd.s32 1, %v2113_v50  ;;  %v2198_v34 = vshll.u32 %v4248_v51, %v2189_v7  ;;  %v2201_v35 = vshll.u32 %v4249_v17, %v2189_v7 }
 0x48b   : > { %v2193_v5 = vshrl.u32 %v4247_v46, %v5192_v37  ;;  %v2196_v63 = vshrl.u32 %v4248_v51, %v5192_v37  ;;  %v2199_v8 = vshrl.u32 %v4249_v17, %v5192_v37  ;;  %v2202_v28 = vshrl.u32 %v4250_v56, %v5192_v37 }
 0x48c   : > { %v1996_v19 = vmul.f32 -0.001358992, %v1995_v9  ;;  %v2003_v1 = vmul.f32 -0.00019511016, %v1995_v9  ;;  %v2118_v43 = vsel %vm2116_vm5, %v2117_v30, %v2113_v50  ;;  %v2204_v58 = vshll.u32 %v4250_v56, %v2189_v7 }
 0x48d   : > { %v2119_v62 = vadd.s32 %v2118_v43, %v2114_v47  ;;  %v5207_v4 = vor.u32 %v2193_v5, %v2192_v33  ;;  %v5209_v3 = vor.u32 %v2196_v63, %v2195_v22  ;;  %v2203_v48 = vor.u32 %v2202_v28, %v2201_v35 }
 0x48e   : > { %v1997_v41 = vadd.f32 0.041655596, %v1996_v19  ;;  %v2004_v10 = vadd.f32 0.008332121, %v2003_v1  ;;  %v2205_v16 = vshrl.u32 %v4251_v27, %v5192_v37  ;;  %v5213_v13 = vor.u32 %v2199_v8, %v2198_v34 }
 0x48f   : > { %v2120_v24 = vadd.s32 536870912, %v2119_v62  ;;  %v2183_v18 = vor.u32 8388608, %v2182_v23  ;;  %vm2207_vm8 = vcmp.lt.s32.totalorder %v5190_v12, 1  ;;  %vm2210_vm9 = vcmp.lt.s32.totalorder %v5190_v12, 4 }
 0x490   : > { %v1998_v2 = vmul.f32 %v1997_v41, %v1995_v9  ;;  %v2005_v60 = vmul.f32 %v2004_v10, %v1995_v9  ;;  %v2206_v31 = vor.u32 %v2205_v16, %v2204_v58  ;;  %vm2209_vm10 = vcmp.lt.s32.totalorder %v5190_v12, 3 }
 0x491   : > { %v5216_v52 = vshrl.u32 %v2120_v24, 30  ;;  %v2215_v55 = vsel %vm2207_vm8, %v5207_v4, %v5209_v3  ;;  %v2216_v26 = vsel %vm2210_vm9, %v2203_v48, 920167782  ;;  %vm2012_vm11 = vcmp.lt.s32.totalorder %v5183_v59, 2 }
 0x492   : > { %v1999_v14 = vadd.f32 -0.4999988, %v1998_v2  ;;  %v2006_v32 = vadd.f32 -0.16666654, %v2005_v60  ;;  %v2220_v29 = vsel %vm2210_vm9, %v2206_v31, 1326507024  ;;  %v2219_v6 = vsel %vm2207_vm8, %v5209_v3, %v5213_v13 }
 0x493   : > { %v2122_v57 = vshll.u32 %v5216_v52, 30  ;;  %vm2010_vm12 = vweird.f32 %v4807_v49  ;;  %v2217_v61 = vsel %vm2209_vm10, %v5213_v13, %v2216_v26  ;;  %v2221_v20 = vsel %vm2209_vm10, %v2203_v48, %v2220_v29 }
 0x494   : > { %v2000_v45 = vmul.f32 %v1999_v14, %v1995_v9  ;;  %v2007_v36 = vmul.f32 %v2006_v32, %v1995_v9  ;;  %v5240_v40 = vshll.u32 %v2183_v18, 8  ;;  %v5243_v23 = vadd.f32 %v5065_v0, %v1380_v11 }
 0x495   : > { %v2123_v47 = vsub.s32 %v2119_v62, %v2122_v57  ;;  %vm2208_vm13 = vcmp.lt.s32.totalorder %v5190_v12, 2  ;;  %vm2013_vm15 = vcmp.eq.s32.totalorder %v5183_v59, 0  ;;  %vm2016_vm14 = vcmp.eq.s32.totalorder %v5183_v59, 2 }
 0x496   : > { %v2001_v7 = vadd.f32 1.0, %v2000_v45  ;;  %v2008_v50 = vadd.f32 1.0, %v2007_v36  ;;  %v2218_v9 = vsel %vm2208_vm13, %v2215_v55, %v2217_v61  ;;  %v2222_v30 = vsel %vm2208_vm13, %v2219_v6, %v2221_v20 }
 0x497   : > { %vm2124_vm1 = vcmp.lt.s32.totalorder %v2123_v47, 0  ;;  %v2125_v34 = vsub.s32 0, %v2123_v47  ;;  %v2224_v19 = vand.u32 65535, %v5240_v40  ;;  %v2226_v1 = vand.u32 65535, %v2222_v30 }
 0x498   : > { %v2009_v33 = vmul.f32 %v2008_v50, %v5181_v54  ;;  %v2017_v22 = vxor.u32 2147483648, %v2001_v7  ;;  %v2227_v5 = vshrl.u32 %v2222_v30, 16  ;;  %v2332_v35 = vand.u32 2139095040, %v5243_v23 }
 0x499   : > { %v2115_v63 = vadd.s32 %v5174_v38, %v5170_v39  ;;  %v2126_v8 = vsel %vm2124_vm1, %v2125_v34, %v2123_v47  ;;  %v2225_v28 = vshrl.u32 %v5240_v40, 16  ;;  %v2191_v54 = vshrl.u32 %v4246_v44, %v5192_v37 }
 0x49a   : > { %v2014_v43 = vxor.u32 2147483648, %v2009_v33  ;;  %v2127_v41 = vclz %v2126_v8  ;;  %v2248_v10 = vand.u32 65535, %v2218_v9  ;;  %v2249_v62 = vshrl.u32 %v2218_v9, 16 }
 0x49b   : > { %v2018_v48 = vsel %vm2016_vm14, %v2017_v22, %v2009_v33  ;;  %v2229_v16 = vmul.u32 %v2227_v5, %v2224_v19  ;;  %v2230_v2 = vmul.u32 %v2226_v1, %v2225_v28  ;;  %v2145_v60 = vsub.s32 4, %v5216_v52 }
 0x49c   : > { %v2015_v58 = vsel %vm2013_vm15, %v2001_v7, %v2014_v43  ;;  %v4125_v38 = vadd.s32 4294967294, %v2127_v41  ;;  %v2333_v24 = vshrl.u32 %v2332_v35, 23  ;;  %v2228_v18 = vmul.u32 %v2226_v1, %v2224_v19 }
 0x49d   : > { %v2019_v39 = vsel %vm2012_vm11, %v2015_v58, %v2018_v48  ;;  %v2231_v31 = vmul.u32 %v2227_v5, %v2225_v28  ;;  %v2232_v14 = vshll.u32 %v2229_v16, 16  ;;  %vm2023_vm2 = vcmp.lt.s32.totalorder %v4991_v15, 0 }
 0x49e   : > { %v2020_v37 = vsel %vm2010_vm12, nan, %v2019_v39  ;;  %vm4126_vm3 = vcmp.lt.s32.totalorder %v4125_v38, 0  ;;  %v2234_v32 = vshll.u32 %v2230_v2, 16  ;;  %v2250_v11 = vmul.u32 %v2248_v10, %v2224_v19 }
 0x49f   : > { %3872 = vst.msk [vmem:[%s4897_s25 + $0x18] sm:$0xff] %vm627_vm0, %v2020_v37  ;;  %v2251_v55 = vmul.u32 %v2249_v62, %v2224_v19  ;;  %v2130_v59 = vsel %vm4126_vm3, 0, %v4125_v38  ;;  %vm2236_vm4 = vc.u32 %v2228_v18, %v2232_v14  ;;  %v2238_v26 = vadd.s32 %v2232_v14, %v2228_v18 }
 0x4a0   : > { %v2252_v29 = vmul.u32 %v2248_v10, %v2225_v28  ;;  %v2131_v45 = vsub.s32 32, %v2130_v59  ;;  %v2135_v36 = vsub.s32 4294967266, %v2130_v59  ;;  %v2233_v57 = vshrl.u32 %v2229_v16, 16 }
 0x4a1   : > { %v2237_v49 = vsel %vm2236_vm4, 1, %v4252_v53  ;;  %vm2240_vm6 = vc.u32 %v2238_v26, %v2234_v32  ;;  %v2253_v61 = vmul.u32 %v2249_v62, %v2225_v28  ;;  %v2254_v20 = vshll.u32 %v2251_v55, 16 }
 0x4a2   : > { %v2239_v6 = vadd.s32 %v2237_v49, %v2231_v31  ;;  %v2132_v7 = vshll.u32 %v2123_v47, %v2130_v59  ;;  %v2133_v50 = vshrl.u32 %v2115_v63, %v2131_v45  ;;  %v2136_v9 = vadd.s32 127, %v2135_v36 }
 0x4a3   : > { %v2241_v30 = vsel %vm2240_vm6, 1, %v4252_v53  ;;  %v2256_v22 = vshll.u32 %v2252_v29, 16  ;;  %vm2258_vm7 = vc.u32 %v2250_v11, %v2254_v20  ;;  %v2260_v34 = vadd.s32 %v2254_v20, %v2250_v11 }
 0x4a4   : > { %v2243_v33 = vadd.s32 %v2241_v30, %v2239_v6  ;;  %v2134_v19 = vor.u32 %v2133_v50, %v2132_v7  ;;  %v2137_v1 = vshll.u32 %v2136_v9, 23  ;;  %v2212_v5 = vsel %vm2210_vm9, %v5213_v13, 2102212464 }
 0x4a5   : > { %v2259_v35 = vsel %vm2258_vm7, 1, %v4252_v53  ;;  %v2211_v47 = vsel %vm2207_vm8, %v2191_v54, %v5207_v4  ;;  %vm2262_vm5 = vc.u32 %v2260_v34, %v2256_v22  ;;  %v2235_v28 = vshrl.u32 %v2230_v2, 16 }
 0x4a6   : > { %v2244_v43 = vadd.s32 %v2243_v33, %v2233_v57  ;;  %v2261_v63 = vadd.s32 %v2259_v35, %v2253_v61  ;;  %v2138_v8 = vor.u32 4788187, %v2137_v1  ;;  %v2263_v41 = vsel %vm2262_vm5, 1, %v4252_v53 }
 0x4a7   : > { %v4130_v10 = vadd.s32 4294967169, %v2333_v24  ;;  %v2146_v62 = vsel %vm2023_vm2, %v2145_v60, %v5216_v52  ;;  %v2213_v13 = vsel %vm2209_vm10, %v5209_v3, %v2212_v5  ;;  %v2255_v58 = vshrl.u32 %v2251_v55, 16 }
 0x4a8   : > { %v2265_v48 = vadd.s32 %v2263_v41, %v2261_v63  ;;  %v2139_v16 = vand.u32 2147483647, %v2138_v8  ;;  %v2141_v4 = vcvt.s32.f32 %v2134_v19  ;;  %v5288_v54 = vadd.s32 %v2244_v43, %v2235_v28  ;;  %v1382_v19 = vpop.f32.mrf.mxu3 }
 0x4a9   : > { %v2339_v39 = vadd.s32 1, %v4130_v10  ;;  %vm5292_vm8 = vcmp.le.f32.partialorder %v2021_v42, 0.7853982  ;;  %v2257_v38 = vshrl.u32 %v2252_v29, 16  ;;  %v5296_v60 = vadd.s32 %v2260_v34, %v2256_v22 }
 0x4aa   : > { %v2266_v24 = vadd.s32 %v2265_v48, %v2255_v58  ;;  %v2142_v52 = vmul.f32 %v2141_v4, %v2139_v16  ;;  %v2329_v3 = vand.u32 2147483647, %v5243_v23  ;;  %v2148_v37 = vsel %vm5292_vm8, 0, %v2146_v62 }
 0x4ab   : > { %vm2340_vm9 = vcmp.gt.s32.totalorder %v2339_v39, 0  ;;  %v2214_v18 = vsel %vm2208_vm13, %v2211_v47, %v2213_v13  ;;  %vm2270_vm10 = vc.u32 %v5288_v54, %v5296_v60  ;;  %v5307_v59 = vand.u32 3, %v2148_v37 }
 0x4ac   : > { %v2267_v31 = vadd.s32 %v2266_v24, %v2257_v38  ;;  %v2341_v14 = vsel %vm2340_vm9, %v2339_v39, 0  ;;  %v2143_v42 = vxor.u32 2147483648, %v2142_v52  ;;  %v2268_v26 = vmul.u32 %v5240_v40, %v2214_v18 }
 0x4ad   : > { %v2343_v32 = vand.u32 31, %v2341_v14  ;;  %v2336_v36 = vand.u32 8388607, %v2329_v3  ;;  %v5319_v57 = vshrl.u32 %v2341_v14, 5  ;;  %v5347_v13 = vadd.f32 %v5065_v0, %v1382_v19 }
 0x4ae   : > { %v2271_v11 = vadd.s32 1, %v2267_v31  ;;  %v2144_v55 = vsel %vm2023_vm2, %v2143_v42, %v2142_v52  ;;  %vm2167_vm15 = vcmp.eq.s32.totalorder %v5307_v59, 0  ;;  %vm2166_vm1 = vcmp.lt.s32.totalorder %v5307_v59, 2 }
 0x4af   : > { %v5310_v29 = vsub.s32 32, %v2343_v32  ;;  %v5315_v12 = vsel %vm5292_vm8, %v4991_v15, %v2144_v55  ;;  %v2346_v61 = vshll.u32 %v4246_v44, %v2343_v32  ;;  %v2355_v50 = vshll.u32 %v4249_v17, %v2343_v32 }
 0x4b0   : > { %v2272_v45 = vsel %vm2270_vm10, %v2271_v11, %v2267_v31  ;;  %v2149_v49 = vmul.f32 %v5315_v12, %v5315_v12  ;;  %v2349_v34 = vshll.u32 %v4247_v46, %v2343_v32  ;;  %v2352_v5 = vshll.u32 %v4248_v51, %v2343_v32 }
 0x4b1   : > { %v2273_v6 = vadd.s32 %v2272_v45, %v2268_v26  ;;  %v2347_v40 = vshrl.u32 %v4247_v46, %v5310_v29  ;;  %v2350_v20 = vshrl.u32 %v4248_v51, %v5310_v29  ;;  %v2353_v7 = vshrl.u32 %v4249_v17, %v5310_v29 }
 0x4b2   : > { %v2356_v9 = vshrl.u32 %v4250_v56, %v5310_v29  ;;  %v2150_v30 = vmul.f32 -0.001358992, %v2149_v49  ;;  %v2157_v33 = vmul.f32 -0.00019511016, %v2149_v49  ;;  %v2359_v47 = vshrl.u32 %v4251_v27, %v5310_v29 }
 0x4b3   : > { %v2274_v22 = vadd.s32 536870912, %v2273_v6  ;;  %v5334_v1 = vor.u32 %v2347_v40, %v2346_v61  ;;  %v5341_v28 = vor.u32 %v2350_v20, %v2349_v34  ;;  %v2337_v41 = vor.u32 8388608, %v2336_v36 }
 0x4b4   : > { %v2357_v35 = vor.u32 %v2356_v9, %v2355_v50  ;;  %v2151_v43 = vadd.f32 0.041655596, %v2150_v30  ;;  %v2158_v63 = vadd.f32 0.008332121, %v2157_v33  ;;  %v5343_v10 = vor.u32 %v2353_v7, %v2352_v5 }
 0x4b5   : > { %v5339_v8 = vshrl.u32 %v2274_v22, 30  ;;  %v2358_v62 = vshll.u32 %v4250_v56, %v2343_v32  ;;  %vm2364_vm11 = vcmp.lt.s32.totalorder %v5319_v57, 4  ;;  %vm2361_vm12 = vcmp.lt.s32.totalorder %v5319_v57, 1 }
 0x4b6   : > { %v2152_v58 = vmul.f32 %v2151_v43, %v2149_v49  ;;  %v2159_v48 = vmul.f32 %v2158_v63, %v2149_v49  ;;  %vm2363_vm13 = vcmp.lt.s32.totalorder %v5319_v57, 3  ;;  %v2370_v39 = vsel %vm2364_vm11, %v2357_v35, 920167782 }
 0x4b7   : > { %v2276_v16 = vshll.u32 %v5339_v8, 30  ;;  %v2360_v4 = vor.u32 %v2359_v47, %v2358_v62  ;;  %v2369_v52 = vsel %vm2361_vm12, %v5334_v1, %v5341_v28  ;;  %vm2362_vm14 = vcmp.lt.s32.totalorder %v5319_v57, 2 }
 0x4b8   : > { %v2153_v2 = vadd.f32 -0.4999988, %v2152_v58  ;;  %v2160_v38 = vadd.f32 -0.16666654, %v2159_v48  ;;  %v2371_v37 = vsel %vm2363_vm13, %v5343_v10, %v2370_v39  ;;  %v5366_v18 = vshll.u32 %v2337_v41, 8 }
 0x4b9   : > { %v5355_v24 = vsub.s32 %v2273_v6, %v2276_v16  ;;  %vm2164_vm3 = vweird.f32 %v4991_v15  ;;  %v2372_v32 = vsel %vm2362_vm14, %v2369_v52, %v2371_v37  ;;  %v2373_v11 = vsel %vm2361_vm12, %v5341_v28, %v5343_v10 }
 0x4ba   : > { %v2154_v31 = vmul.f32 %v2153_v2, %v2149_v49  ;;  %v2161_v14 = vmul.f32 %v2160_v38, %v2149_v49  ;;  %v2374_v55 = vsel %vm2364_vm11, %v2360_v4, 1326507024  ;;  %v2486_v26 = vand.u32 2139095040, %v5347_v13 }
 0x4bb   : > { %vm2278_vm2 = vcmp.lt.s32.totalorder %v5355_v24, 0  ;;  %v2279_v42 = vsub.s32 0, %v5355_v24  ;;  %v2375_v6 = vsel %vm2363_vm13, %v2357_v35, %v2374_v55  ;;  %vm2170_vm4 = vcmp.eq.s32.totalorder %v5307_v59, 2 }
 0x4bc   : > { %v2155_v45 = vadd.f32 1.0, %v2154_v31  ;;  %v2162_v36 = vadd.f32 1.0, %v2161_v14  ;;  %v2269_v61 = vadd.s32 %v5296_v60, %v5288_v54  ;;  %v2378_v20 = vand.u32 65535, %v5366_v18 }
 0x4bd   : > { %v2280_v49 = vsel %vm2278_vm2, %v2279_v42, %v5355_v24  ;;  %v2376_v9 = vsel %vm2362_vm14, %v2373_v11, %v2375_v6  ;;  %v2402_v30 = vand.u32 65535, %v2372_v32  ;;  %v2403_v19 = vshrl.u32 %v2372_v32, 16 }
 0x4be   : > { %v2281_v40 = vclz %v2280_v49  ;;  %v2163_v7 = vmul.f32 %v2162_v36, %v5315_v12  ;;  %v2171_v50 = vxor.u32 2147483648, %v2155_v45  ;;  %v2380_v22 = vand.u32 65535, %v2376_v9 }
 0x4bf   : > { %v2381_v34 = vshrl.u32 %v2376_v9, 16  ;;  %v2345_v35 = vshrl.u32 %v4246_v44, %v5310_v29  ;;  %v2379_v54 = vshrl.u32 %v5366_v18, 16  ;;  %v2487_v60 = vshrl.u32 %v2486_v26, 23 }
 0x4c0   : > { %v4128_v33 = vadd.s32 4294967294, %v2281_v40  ;;  %v2168_v5 = vxor.u32 2147483648, %v2163_v7  ;;  %v2172_v47 = vsel %vm2170_vm4, %v2171_v50, %v2163_v7  ;;  %v2299_v12 = vsub.s32 4, %v5339_v8 }
 0x4c1   : > { %v2383_v43 = vmul.u32 %v2381_v34, %v2378_v20  ;;  %vm2177_vm7 = vcmp.lt.s32.totalorder %v5068_v25, 0  ;;  %v2384_v62 = vmul.u32 %v2380_v22, %v2379_v54  ;;  %v2405_v58 = vmul.u32 %v2403_v19, %v2378_v20 }
 0x4c2   : > { %vm4129_vm6 = vcmp.lt.s32.totalorder %v4128_v33, 0  ;;  %v2169_v63 = vsel %vm2167_vm15, %v2155_v45, %v2168_v5  ;;  %v2404_v4 = vmul.u32 %v2402_v30, %v2378_v20  ;;  %v2382_v2 = vmul.u32 %v2380_v22, %v2378_v20 }
 0x4c3   : > { %v2284_v41 = vsel %vm4129_vm6, 0, %v4128_v33  ;;  %v2173_v29 = vsel %vm2166_vm1, %v2169_v63, %v2172_v47  ;;  %v2386_v38 = vshll.u32 %v2383_v43, 16  ;;  %v2406_v52 = vmul.u32 %v2402_v30, %v2379_v54 }
 0x4c4   : > { %v2285_v48 = vsub.s32 32, %v2284_v41  ;;  %v2289_v16 = vsub.s32 4294967266, %v2284_v41  ;;  %v2174_v39 = vsel %vm2164_vm3, nan, %v2173_v29  ;;  %vm5408_vm5 = vcmp.le.f32.partialorder %v2175_v21, 0.7853982 }
 0x4c5   : > { %3873 = vst.msk [vmem:[%s4897_s25 + $0x20] sm:$0xff] %vm627_vm0, %v2174_v39  ;;  %v2286_v59 = vshll.u32 %v5355_v24, %v2284_v41  ;;  %v2385_v42 = vmul.u32 %v2381_v34, %v2379_v54  ;;  %v2388_v32 = vshll.u32 %v2384_v62, 16  ;;  %vm2390_vm8 = vc.u32 %v2382_v2, %v2386_v38 }
 0x4c6   : > { %v2287_v31 = vshrl.u32 %v2269_v61, %v2285_v48  ;;  %v2290_v14 = vadd.s32 127, %v2289_v16  ;;  %v2392_v15 = vadd.s32 %v2386_v38, %v2382_v2  ;;  %v2408_v11 = vshll.u32 %v2405_v58, 16 }
 0x4c7   : > { %v2366_v45 = vsel %vm2364_vm11, %v5343_v10, 2102212464  ;;  %v2391_v21 = vsel %vm2390_vm8, 1, %v4252_v53  ;;  %v2407_v49 = vmul.u32 %v2403_v19, %v2379_v54  ;;  %v2387_v6 = vshrl.u32 %v2383_v43, 16 }
 0x4c8   : > { %v2288_v55 = vor.u32 %v2287_v31, %v2286_v59  ;;  %v2291_v26 = vshll.u32 %v2290_v14, 23  ;;  %v2393_v36 = vadd.s32 %v2391_v21, %v2385_v42  ;;  %vm2394_vm9 = vc.u32 %v2392_v15, %v2388_v32 }
 0x4c9   : > { %vm2412_vm10 = vc.u32 %v2404_v4, %v2408_v11  ;;  %v2395_v61 = vsel %vm2394_vm9, 1, %v4252_v53  ;;  %v2410_v7 = vshll.u32 %v2406_v52, 16  ;;  %v2414_v50 = vadd.s32 %v2408_v11, %v2404_v4 }
 0x4ca   : > { %v2292_v24 = vor.u32 4788187, %v2291_v26  ;;  %v2413_v40 = vsel %vm2412_vm10, 1, %v4252_v53  ;;  %v2397_v20 = vadd.s32 %v2395_v61, %v2393_v36  ;;  %v2295_v33 = vcvt.s32.f32 %v2288_v55 }
 0x4cb   : > { %v2415_v9 = vadd.s32 %v2413_v40, %v2407_v49  ;;  %v2300_v10 = vsel %vm2177_vm7, %v2299_v12, %v5339_v8  ;;  %v4133_v22 = vadd.s32 4294967169, %v2487_v60  ;;  %v2365_v34 = vsel %vm2361_vm12, %v2345_v35, %v5334_v1 }
 0x4cc   : > { %v2293_v30 = vand.u32 2147483647, %v2292_v24  ;;  %v2367_v19 = vsel %vm2363_vm13, %v5341_v28, %v2366_v45  ;;  %v2398_v5 = vadd.s32 %v2397_v20, %v2387_v6  ;;  %vm2416_vm11 = vc.u32 %v2414_v50, %v2410_v7 }
 0x4cd   : > { %v2389_v47 = vshrl.u32 %v2384_v62, 16  ;;  %v2417_v43 = vsel %vm2416_vm11, 1, %v4252_v53  ;;  %v2493_v63 = vadd.s32 1, %v4133_v22  ;;  %v2302_v41 = vsel %vm5408_vm5, 0, %v2300_v10 }
 0x4ce   : > { %v2296_v54 = vmul.f32 %v2295_v33, %v2293_v30  ;;  %v2409_v8 = vshrl.u32 %v2405_v58, 16  ;;  %v2419_v60 = vadd.s32 %v2417_v43, %v2415_v9  ;;  %v2483_v12 = vand.u32 2147483647, %v5347_v13 }
 0x4cf   : > { %v2368_v1 = vsel %vm2362_vm14, %v2365_v34, %v2367_v19  ;;  %v5434_v35 = vadd.s32 %v2398_v5, %v2389_v47  ;;  %vm2494_vm12 = vcmp.gt.s32.totalorder %v2493_v63, 0  ;;  %v2411_v28 = vshrl.u32 %v2406_v52, 16  ;;  %v1385_v47 = vpop.f32.mrf.mxu3 }
 0x4d0   : > { %v2297_v29 = vxor.u32 2147483648, %v2296_v54  ;;  %v2420_v48 = vadd.s32 %v2419_v60, %v2409_v8  ;;  %v2495_v62 = vsel %vm2494_vm12, %v2493_v63, 0  ;;  %v5438_v4 = vadd.s32 %v2414_v50, %v2410_v7 }
 0x4d1   : > { %v2497_v39 = vand.u32 31, %v2495_v62  ;;  %v5443_v2 = vand.u32 3, %v2302_v41  ;;  %v2422_v38 = vmul.u32 %v5366_v18, %v2368_v1  ;;  %v2490_v52 = vand.u32 8388607, %v2483_v12 }
 0x4d2   : > { %v2298_v16 = vsel %vm2177_vm7, %v2297_v29, %v2296_v54  ;;  %v2421_v57 = vadd.s32 %v2420_v48, %v2411_v28  ;;  %vm2424_vm13 = vc.u32 %v5434_v35, %v5438_v4  ;;  %v5452_v42 = vshrl.u32 %v2495_v62, 5 }
 0x4d3   : > { %v2301_v58 = vsel %vm5408_vm5, %v5068_v25, %v2298_v16  ;;  %v5450_v31 = vsub.s32 32, %v2497_v39  ;;  %v2500_v37 = vshll.u32 %v4246_v44, %v2497_v39  ;;  %v2503_v32 = vshll.u32 %v4247_v46, %v2497_v39 }
 0x4d4   : > { %v2303_v59 = vmul.f32 %v2301_v58, %v2301_v58  ;;  %v2425_v14 = vadd.s32 1, %v2421_v57  ;;  %v2509_v55 = vshll.u32 %v4249_v17, %v2497_v39  ;;  %v2506_v61 = vshll.u32 %v4248_v51, %v2497_v39 }
 0x4d5   : > { %v2501_v18 = vshrl.u32 %v4247_v46, %v5450_v31  ;;  %v2504_v45 = vshrl.u32 %v4248_v51, %v5450_v31  ;;  %v2507_v21 = vshrl.u32 %v4249_v17, %v5450_v31  ;;  %v2510_v36 = vshrl.u32 %v4250_v56, %v5450_v31 }
 0x4d6   : > { %v2304_v15 = vmul.f32 -0.001358992, %v2303_v59  ;;  %v2311_v11 = vmul.f32 -0.00019511016, %v2303_v59  ;;  %v2426_v26 = vsel %vm2424_vm13, %v2425_v14, %v2421_v57  ;;  %v2512_v7 = vshll.u32 %v4250_v56, %v2497_v39 }
 0x4d7   : > { %v2427_v6 = vadd.s32 %v2426_v26, %v2422_v38  ;;  %v5466_v40 = vor.u32 %v2501_v18, %v2500_v37  ;;  %v2511_v20 = vor.u32 %v2510_v36, %v2509_v55  ;;  %v2513_v50 = vshrl.u32 %v4251_v27, %v5450_v31 }
 0x4d8   : > { %v2305_v49 = vadd.f32 0.041655596, %v2304_v15  ;;  %v2312_v24 = vadd.f32 0.008332121, %v2311_v11  ;;  %v5471_v10 = vor.u32 %v2504_v45, %v2503_v32  ;;  %v5473_v22 = vor.u32 %v2507_v21, %v2506_v61 }
 0x4d9   : > { %v2428_v33 = vadd.s32 536870912, %v2427_v6  ;;  %v2514_v34 = vor.u32 %v2513_v50, %v2512_v7  ;;  %vm2518_vm15 = vcmp.lt.s32.totalorder %v5452_v42, 4  ;;  %v2491_v43 = vor.u32 8388608, %v2490_v52 }
 0x4da   : > { %v2306_v9 = vmul.f32 %v2305_v49, %v2303_v59  ;;  %v2313_v30 = vmul.f32 %v2312_v24, %v2303_v59  ;;  %vm2515_vm14 = vcmp.lt.s32.totalorder %v5452_v42, 1  ;;  %vm2517_vm1 = vcmp.lt.s32.totalorder %v5452_v42, 3 }
 0x4db   : > { %v5475_v54 = vshrl.u32 %v2428_v33, 30  ;;  %v2524_v63 = vsel %vm2518_vm15, %v2511_v20, 920167782  ;;  %vm2320_vm2 = vcmp.lt.s32.totalorder %v5443_v2, 2  ;;  %v2523_v29 = vsel %vm2515_vm14, %v5466_v40, %v5471_v10 }
 0x4dc   : > { %v2307_v19 = vadd.f32 -0.4999988, %v2306_v9  ;;  %v2314_v5 = vadd.f32 -0.16666654, %v2313_v30  ;;  %vm2318_vm3 = vweird.f32 %v5068_v25  ;;  %vm2516_vm4 = vcmp.lt.s32.totalorder %v5452_v42, 2 }
 0x4dd   : > { %v2430_v60 = vshll.u32 %v5475_v54, 30  ;;  %v2525_v1 = vsel %vm2517_vm1, %v5473_v22, %v2524_v63  ;;  %v2528_v28 = vsel %vm2518_vm15, %v2514_v34, 1326507024  ;;  %v5496_v48 = vadd.f32 %v5065_v0, %v1385_v47 }
 0x4de   : > { %v2308_v41 = vmul.f32 %v2307_v19, %v2303_v59  ;;  %v2315_v8 = vmul.f32 %v2314_v5, %v2303_v59  ;;  %v2527_v57 = vsel %vm2515_vm14, %v5471_v10, %v5473_v22  ;;  %vm2321_vm6 = vcmp.eq.s32.totalorder %v5443_v2, 0 }
 0x4df   : > { %v2431_v39 = vsub.s32 %v2427_v6, %v2430_v60  ;;  %v2526_v38 = vsel %vm2516_vm4, %v2523_v29, %v2525_v1  ;;  %v2529_v59 = vsel %vm2517_vm1, %v2511_v20, %v2528_v28  ;;  %v5507_v52 = vshll.u32 %v2491_v43, 8 }
 0x4e0   : > { %v2309_v62 = vadd.f32 1.0, %v2308_v41  ;;  %v2316_v16 = vadd.f32 1.0, %v2315_v8  ;;  %vm2324_vm5 = vcmp.eq.s32.totalorder %v5443_v2, 2  ;;  %v2530_v32 = vsel %vm2516_vm4, %v2527_v57, %v2529_v59 }
 0x4e1   : > { %vm2432_vm7 = vcmp.lt.s32.totalorder %v2431_v39, 0  ;;  %v2433_v37 = vsub.s32 0, %v2431_v39  ;;  %v2557_v15 = vshrl.u32 %v2526_v38, 16  ;;  %v2640_v11 = vand.u32 2139095040, %v5496_v48 }
 0x4e2   : > { %v2317_v0 = vmul.f32 %v2316_v16, %v2301_v58  ;;  %v2325_v14 = vxor.u32 2147483648, %v2309_v62  ;;  %v2423_v55 = vadd.s32 %v5438_v4, %v5434_v35  ;;  %v2534_v45 = vand.u32 65535, %v2530_v32 }
 0x4e3   : > { %v2434_v26 = vsel %vm2432_vm7, %v2433_v37, %v2431_v39  ;;  %v2532_v58 = vand.u32 65535, %v5507_v52  ;;  %v2533_v36 = vshrl.u32 %v5507_v52, 16  ;;  %v2556_v49 = vand.u32 65535, %v2526_v38 }
 0x4e4   : > { %v2322_v18 = vxor.u32 2147483648, %v2317_v0  ;;  %v2435_v21 = vclz %v2434_v26  ;;  %v2326_v6 = vsel %vm2324_vm5, %v2325_v14, %v2317_v0  ;;  %v2499_v61 = vshrl.u32 %v4246_v44, %v5450_v31 }
 0x4e5   : > { %v2535_v20 = vshrl.u32 %v2530_v32, 16  ;;  %v2538_v7 = vmul.u32 %v2534_v45, %v2533_v36  ;;  %v2559_v50 = vmul.u32 %v2557_v15, %v2532_v58  ;;  %v2641_v34 = vshrl.u32 %v2640_v11, 23 }
 0x4e6   : > { %v2323_v24 = vsel %vm2321_vm6, %v2309_v62, %v2322_v18  ;;  %v4131_v4 = vadd.s32 4294967294, %v2435_v21  ;;  %v2519_v30 = vsel %vm2515_vm14, %v2499_v61, %v5466_v40  ;;  %v2536_v31 = vmul.u32 %v2534_v45, %v2532_v58 }
 0x4e7   : > { %v2327_v35 = vsel %vm2320_vm2, %v2323_v24, %v2326_v6  ;;  %v2537_v33 = vmul.u32 %v2535_v20, %v2532_v58  ;;  %v2558_v19 = vmul.u32 %v2556_v49, %v2532_v58  ;;  %v2560_v5 = vmul.u32 %v2556_v49, %v2533_v36 }
 0x4e8   : > { %v2328_v9 = vsel %vm2318_vm3, nan, %v2327_v35  ;;  %vm4132_vm8 = vcmp.lt.s32.totalorder %v4131_v4, 0  ;;  %v2539_v47 = vmul.u32 %v2535_v20, %v2533_v36  ;;  %v2562_v63 = vshll.u32 %v2559_v50, 16 }
 0x4e9   : > { %3874 = vst.msk [vmem:[%s4897_s25 + $0x28] sm:$0xff] %vm627_vm0, %v2328_v9  ;;  %v2438_v2 = vsel %vm4132_vm8, 0, %v4131_v4  ;;  %v2540_v43 = vshll.u32 %v2537_v33, 16  ;;  %v2542_v25 = vshll.u32 %v2538_v7, 16  ;;  %v2561_v60 = vmul.u32 %v2557_v15, %v2533_v36 }
 0x4ea   : > { %v2439_v41 = vsub.s32 32, %v2438_v2  ;;  %v2443_v8 = vsub.s32 4294967266, %v2438_v2  ;;  %v2440_v29 = vshll.u32 %v2431_v39, %v2438_v2  ;;  %v2564_v40 = vshll.u32 %v2560_v5, 16 }
 0x4eb   : > { %vm2544_vm9 = vc.u32 %v2536_v31, %v2540_v43  ;;  %v2546_v1 = vadd.s32 %v2540_v43, %v2536_v31  ;;  %vm2566_vm10 = vc.u32 %v2558_v19, %v2562_v63  ;;  %v2568_v59 = vadd.s32 %v2562_v63, %v2558_v19 }
 0x4ec   : > { %v2441_v28 = vshrl.u32 %v2423_v55, %v2439_v41  ;;  %v2444_v62 = vadd.s32 127, %v2443_v8  ;;  %v2545_v16 = vsel %vm2544_vm9, 1, %v4252_v53  ;;  %v2567_v38 = vsel %vm2566_vm10, 1, %v4252_v53 }
 0x4ed   : > { %v2547_v57 = vadd.s32 %v2545_v16, %v2539_v47  ;;  %vm2548_vm11 = vc.u32 %v2546_v1, %v2542_v25  ;;  %v2569_v32 = vadd.s32 %v2567_v38, %v2561_v60  ;;  %v2520_v39 = vsel %vm2518_vm15, %v5473_v22, 2102212464 }
 0x4ee   : > { %v2442_v0 = vor.u32 %v2441_v28, %v2440_v29  ;;  %v2445_v14 = vshll.u32 %v2444_v62, 23  ;;  %v2549_v37 = vsel %vm2548_vm11, 1, %v4252_v53  ;;  %v2541_v15 = vshrl.u32 %v2537_v33, 16  ;;  %v5582_v28 = vld [vmem:[%s6506_s13] ss:$0 sm:$0xff] }
 0x4ef   : > { %v2551_v11 = vadd.s32 %v2549_v37, %v2547_v57  ;;  %vm2570_vm12 = vc.u32 %v2568_v59, %v2564_v40  ;;  %v2453_v55 = vsub.s32 4, %v5475_v54  ;;  %v4136_v45 = vadd.s32 4294967169, %v2641_v34 }
 0x4f0   : > { %v2446_v18 = vor.u32 4788187, %v2445_v14  ;;  %v2571_v26 = vsel %vm2570_vm12, 1, %v4252_v53  ;;  %v2543_v21 = vshrl.u32 %v2538_v7, 16  ;;  %v2563_v36 = vshrl.u32 %v2559_v50, 16 }
 0x4f1   : > { %v2552_v58 = vadd.s32 %v2551_v11, %v2541_v15  ;;  %v2573_v49 = vadd.s32 %v2571_v26, %v2569_v32  ;;  %v2449_v6 = vcvt.s32.f32 %v2442_v0  ;;  %v2521_v61 = vsel %vm2517_vm1, %v5471_v10, %v2520_v39 }
 0x4f2   : > { %v2447_v24 = vand.u32 2147483647, %v2446_v18  ;;  %v2647_v22 = vadd.s32 1, %v4136_v45  ;;  %vm2331_vm13 = vcmp.lt.s32.totalorder %v5243_v23, 0  ;;  %v2565_v35 = vshrl.u32 %v2560_v5, 16 }
 0x4f3   : > { %v5542_v20 = vadd.s32 %v2552_v58, %v2543_v21  ;;  %v2574_v4 = vadd.s32 %v2573_v49, %v2563_v36  ;;  %v2454_v7 = vsel %vm2331_vm13, %v2453_v55, %v5475_v54  ;;  %v5547_v50 = vadd.s32 %v2568_v59, %v2564_v40 }
 0x4f4   : > { %v2450_v9 = vmul.f32 %v2449_v6, %v2447_v24  ;;  %vm2648_vm15 = vcmp.gt.s32.totalorder %v2647_v22, 0  ;;  %vm5551_vm14 = vcmp.le.f32.partialorder %v2329_v3, 0.7853982  ;;  %v2522_v10 = vsel %vm2516_vm4, %v2519_v30, %v2521_v61  ;;  %v1387_v30 = vpop.f32.mrf.mxu3 }
 0x4f5   : > { %v2575_v34 = vadd.s32 %v2574_v4, %v2565_v35  ;;  %v2649_v31 = vsel %vm2648_vm15, %v2647_v22, 0  ;;  %vm2578_vm1 = vc.u32 %v5542_v20, %v5547_v50  ;;  %v2637_v54 = vand.u32 2147483647, %v5496_v48 }
 0x4f6   : > { %v2451_v19 = vxor.u32 2147483648, %v2450_v9  ;;  %v2651_v5 = vand.u32 31, %v2649_v31  ;;  %v2456_v2 = vsel %vm5551_vm14, 0, %v2454_v7  ;;  %v2576_v43 = vmul.u32 %v5507_v52, %v2522_v10 }
 0x4f7   : > { %v2579_v47 = vadd.s32 1, %v2575_v34  ;;  %v5570_v25 = vand.u32 3, %v2456_v2  ;;  %v2644_v29 = vand.u32 8388607, %v2637_v54  ;;  %v5574_v1 = vshrl.u32 %v2649_v31, 5 }
 0x4f8   : > { %v2452_v3 = vsel %vm2331_vm13, %v2451_v19, %v2450_v9  ;;  %v5565_v42 = vsub.s32 32, %v2651_v5  ;;  %v2663_v40 = vshll.u32 %v4249_v17, %v2651_v5  ;;  %v5585_v62 = vadd.f32 %v5582_v28, %v1387_v30 }
 0x4f9   : > { %v2455_v63 = vsel %vm5551_vm14, %v5243_v23, %v2452_v3  ;;  %v2580_v41 = vsel %vm2578_vm1, %v2579_v47, %v2575_v34  ;;  %v2654_v0 = vshll.u32 %v4246_v44, %v2651_v5  ;;  %v2645_v55 = vor.u32 8388608, %v2644_v29 }
 0x4fa   : > { %v2457_v8 = vmul.f32 %v2455_v63, %v2455_v63  ;;  %v2581_v60 = vadd.s32 %v2580_v41, %v2576_v43  ;;  %v2664_v52 = vshrl.u32 %v4250_v56, %v5565_v42  ;;  %v2655_v59 = vshrl.u32 %v4247_v46, %v5565_v42 }
 0x4fb   : > { %v2658_v14 = vshrl.u32 %v4248_v51, %v5565_v42  ;;  %v2661_v37 = vshrl.u32 %v4249_v17, %v5565_v42  ;;  %v2667_v32 = vshrl.u32 %v4251_v27, %v5565_v42  ;;  %v2657_v26 = vshll.u32 %v4247_v46, %v2651_v5 }
 0x4fc   : > { %v2458_v16 = vmul.f32 -0.001358992, %v2457_v8  ;;  %v2465_v57 = vmul.f32 -0.00019511016, %v2457_v8  ;;  %v2582_v38 = vadd.s32 536870912, %v2581_v60  ;;  %v2665_v18 = vor.u32 %v2664_v52, %v2663_v40 }
 0x4fd   : > { %v2660_v45 = vshll.u32 %v4248_v51, %v2651_v5  ;;  %v2666_v21 = vshll.u32 %v4250_v56, %v2651_v5  ;;  %v5602_v24 = vor.u32 %v2655_v59, %v2654_v0  ;;  %v5604_v6 = vor.u32 %v2658_v14, %v2657_v26 }
 0x4fe   : > { %v2459_v39 = vadd.f32 0.041655596, %v2458_v16  ;;  %v2466_v15 = vadd.f32 0.008332121, %v2465_v57  ;;  %v5596_v11 = vshrl.u32 %v2582_v38, 30  ;;  %vm2672_vm2 = vcmp.lt.s32.totalorder %v5574_v1, 4 }
 0x4ff   : > { %v5606_v61 = vor.u32 %v2661_v37, %v2660_v45  ;;  %v2668_v22 = vor.u32 %v2667_v32, %v2666_v21  ;;  %v2678_v7 = vsel %vm2672_vm2, %v2665_v18, 920167782  ;;  %vm2475_vm3 = vcmp.eq.s32.totalorder %v5570_v25, 0 }
 0x500   : > { %v2460_v58 = vmul.f32 %v2459_v39, %v2457_v8  ;;  %v2467_v36 = vmul.f32 %v2466_v15, %v2457_v8  ;;  %v2584_v49 = vshll.u32 %v5596_v11, 30  ;;  %vm2669_vm4 = vcmp.lt.s32.totalorder %v5574_v1, 1 }
 0x501   : > { %vm2671_vm6 = vcmp.lt.s32.totalorder %v5574_v1, 3  ;;  %v5616_v33 = vshll.u32 %v2645_v55, 8  ;;  %v2791_v10 = vand.u32 2147483647, %v5585_v62  ;;  %vm2474_vm7 = vcmp.lt.s32.totalorder %v5570_v25, 2 }
 0x502   : > { %v2461_v35 = vadd.f32 -0.4999988, %v2460_v58  ;;  %v2468_v4 = vadd.f32 -0.16666654, %v2467_v36  ;;  %v5609_v9 = vsub.s32 %v2581_v60, %v2584_v49  ;;  %vm2472_vm8 = vweird.f32 %v5243_v23 }
 0x503   : > { %v2677_v5 = vsel %vm2669_vm4, %v5602_v24, %v5604_v6  ;;  %v2679_v2 = vsel %vm2671_vm6, %v5606_v61, %v2678_v7  ;;  %v2681_v47 = vsel %vm2669_vm4, %v5604_v6, %v5606_v61  ;;  %v2682_v3 = vsel %vm2672_vm2, %v2668_v22, 1326507024 }
 0x504   : > { %v2462_v34 = vmul.f32 %v2461_v35, %v2457_v8  ;;  %v2469_v31 = vmul.f32 %v2468_v4, %v2457_v8  ;;  %vm2586_vm5 = vcmp.lt.s32.totalorder %v5609_v9, 0  ;;  %v2587_v19 = vsub.s32 0, %v5609_v9 }
 0x505   : > { %v2683_v8 = vsel %vm2671_vm6, %v2665_v18, %v2682_v3  ;;  %vm2478_vm9 = vcmp.eq.s32.totalorder %v5570_v25, 2  ;;  %v2577_v60 = vadd.s32 %v5547_v50, %v5542_v20  ;;  %vm2670_vm10 = vcmp.lt.s32.totalorder %v5574_v1, 2 }
 0x506   : > { %v2463_v43 = vadd.f32 1.0, %v2462_v34  ;;  %v2470_v30 = vadd.f32 1.0, %v2469_v31  ;;  %v2588_v41 = vsel %vm2586_vm5, %v2587_v19, %v5609_v9  ;;  %v2680_v16 = vsel %vm2670_vm10, %v2677_v5, %v2679_v2 }
 0x507   : > { %v2589_v29 = vclz %v2588_v41  ;;  %v2684_v57 = vsel %vm2670_vm10, %v2681_v47, %v2683_v8  ;;  %v2686_v59 = vand.u32 65535, %v5616_v33  ;;  %v2687_v32 = vshrl.u32 %v5616_v33, 16 }
 0x508   : > { %v2471_v40 = vmul.f32 %v2470_v30, %v2455_v63  ;;  %v2479_v52 = vxor.u32 2147483648, %v2463_v43  ;;  %v2688_v0 = vand.u32 65535, %v2684_v57  ;;  %v2689_v14 = vshrl.u32 %v2684_v57, 16 }
 0x509   : > { %v4134_v38 = vadd.s32 4294967294, %v2589_v29  ;;  %v2794_v20 = vand.u32 2139095040, %v5585_v62  ;;  %v5652_v50 = vand.u32 8388607, %v2791_v10  ;;  %v2711_v15 = vshrl.u32 %v2680_v16, 16 }
 0x50a   : > { %v2476_v37 = vxor.u32 2147483648, %v2471_v40  ;;  %v2480_v63 = vsel %vm2478_vm9, %v2479_v52, %v2471_v40  ;;  %v2691_v39 = vmul.u32 %v2689_v14, %v2686_v59  ;;  %v2692_v26 = vmul.u32 %v2688_v0, %v2687_v32 }
 0x50b   : > { %vm4135_vm11 = vcmp.lt.s32.totalorder %v4134_v38, 0  ;;  %v2710_v45 = vand.u32 65535, %v2680_v16  ;;  %v2653_v49 = vshrl.u32 %v4246_v44, %v5565_v42  ;;  %v2690_v35 = vmul.u32 %v2688_v0, %v2686_v59 }
 0x50c   : > { %v2477_v18 = vsel %vm2475_vm3, %v2463_v43, %v2476_v37  ;;  %v2592_v55 = vsel %vm4135_vm11, 0, %v4134_v38  ;;  %v2693_v4 = vmul.u32 %v2689_v14, %v2687_v32  ;;  %v2694_v7 = vshll.u32 %v2691_v39, 16 }
 0x50d   : > { %v2481_v21 = vsel %vm2474_vm7, %v2477_v18, %v2480_v63  ;;  %v2593_v58 = vsub.s32 32, %v2592_v55  ;;  %v2597_v36 = vsub.s32 4294967266, %v2592_v55  ;;  %vm2485_vm12 = vcmp.lt.s32.totalorder %v5347_v13, 0 }
 0x50e   : > { %v2482_v22 = vsel %vm2472_vm8, nan, %v2481_v21  ;;  %v2594_v34 = vshll.u32 %v5609_v9, %v2592_v55  ;;  %v2713_v19 = vmul.u32 %v2711_v15, %v2686_v59  ;;  %v2696_v5 = vshll.u32 %v2692_v26, 16 }
 0x50f   : > { %3875 = vst.msk [vmem:[%s4897_s25 + $0x30] sm:$0xff] %vm627_vm0, %v2482_v22  ;;  %v2595_v31 = vshrl.u32 %v2577_v60, %v2593_v58  ;;  %v2598_v25 = vadd.s32 127, %v2597_v36  ;;  %vm2698_vm13 = vc.u32 %v2690_v35, %v2694_v7  ;;  %v2700_v2 = vadd.s32 %v2694_v7, %v2690_v35 }
 0x510   : > { %v2714_v47 = vmul.u32 %v2710_v45, %v2687_v32  ;;  %v2699_v23 = vsel %vm2698_vm13, 1, %v4252_v53  ;;  %v2716_v43 = vshll.u32 %v2713_v19, 16  ;;  %v2607_v30 = vsub.s32 4, %v5596_v11 }
 0x511   : > { %v2596_v42 = vor.u32 %v2595_v31, %v2594_v34  ;;  %v2599_v3 = vshll.u32 %v2598_v25, 23  ;;  %v2701_v41 = vadd.s32 %v2699_v23, %v2693_v4  ;;  %vm2702_vm15 = vc.u32 %v2700_v2, %v2696_v5 }
 0x512   : > { %v2712_v8 = vmul.u32 %v2710_v45, %v2686_v59  ;;  %v2695_v40 = vshrl.u32 %v2691_v39, 16  ;;  %v2703_v9 = vsel %vm2702_vm15, 1, %v4252_v53  ;;  %v2715_v60 = vmul.u32 %v2711_v15, %v2687_v32 }
 0x513   : > { %v2600_v29 = vor.u32 4788187, %v2599_v3  ;;  %v2705_v52 = vadd.s32 %v2703_v9, %v2701_v41  ;;  %v2718_v16 = vshll.u32 %v2714_v47, 16  ;;  %v2603_v0 = vcvt.s32.f32 %v2596_v42 }
 0x514   : > { %vm2720_vm14 = vc.u32 %v2712_v8, %v2716_v43  ;;  %v2722_v57 = vadd.s32 %v2716_v43, %v2712_v8  ;;  %v2795_v37 = vshrl.u32 %v2794_v20, 23  ;;  %v2674_v63 = vsel %vm2672_vm2, %v5606_v61, 2102212464 }
 0x515   : > { %v2601_v38 = vand.u32 2147483647, %v2600_v29  ;;  %v2721_v14 = vsel %vm2720_vm14, 1, %v4252_v53  ;;  %v2706_v18 = vadd.s32 %v2705_v52, %v2695_v40  ;;  %v2697_v55 = vshrl.u32 %v2692_v26, 16 }
 0x516   : > { %v2723_v59 = vadd.s32 %v2721_v14, %v2715_v60  ;;  %vm2724_vm1 = vc.u32 %v2722_v57, %v2718_v16  ;;  %v4139_v15 = vadd.s32 4294967169, %v2795_v37  ;;  %v2608_v45 = vsel %vm2485_vm12, %v2607_v30, %v5596_v11 }
 0x517   : > { %v2604_v39 = vmul.f32 %v2603_v0, %v2601_v38  ;;  %v2725_v32 = vsel %vm2724_vm1, 1, %v4252_v53  ;;  %v2673_v20 = vsel %vm2669_vm4, %v2653_v49, %v5602_v24  ;;  %v2717_v21 = vshrl.u32 %v2713_v19, 16 }
 0x518   : > { %v2727_v58 = vadd.s32 %v2725_v32, %v2723_v59  ;;  %v2675_v61 = vsel %vm2671_vm6, %v5604_v6, %v2674_v63  ;;  %v5685_v22 = vadd.s32 %v2706_v18, %v2697_v55  ;;  %v2801_v26 = vadd.s32 1, %v4139_v15  ;;  %v1390_v63 = vpop.f32.mrf.mxu3 }
 0x519   : > { %v2605_v36 = vxor.u32 2147483648, %v2604_v39  ;;  %vm5689_vm2 = vcmp.le.f32.partialorder %v2483_v12, 0.7853982  ;;  %v2719_v11 = vshrl.u32 %v2714_v47, 16  ;;  %v5697_v7 = vadd.s32 %v2722_v57, %v2718_v16 }
 0x51a   : > { %v2728_v4 = vadd.s32 %v2727_v58, %v2717_v21  ;;  %v2610_v49 = vsel %vm5689_vm2, 0, %v2608_v45  ;;  %vm2802_vm3 = vcmp.gt.s32.totalorder %v2801_v26, 0  ;;  %v2676_v12 = vsel %vm2670_vm10, %v2673_v20, %v2675_v61 }
 0x51b   : > { %v2606_v24 = vsel %vm2485_vm12, %v2605_v36, %v2604_v39  ;;  %v2803_v31 = vsel %vm2802_vm3, %v2801_v26, 0  ;;  %vm2732_vm4 = vc.u32 %v5685_v22, %v5697_v7  ;;  %v2799_v19 = vor.u32 8388608, %v5652_v50 }
 0x51c   : > { %v2609_v6 = vsel %vm5689_vm2, %v5347_v13, %v2606_v24  ;;  %v2729_v34 = vadd.s32 %v2728_v4, %v2719_v11  ;;  %v2805_v5 = vand.u32 31, %v2803_v31  ;;  %v2730_v3 = vmul.u32 %v5616_v33, %v2676_v12 }
 0x51d   : > { %v2611_v25 = vmul.f32 %v2609_v6, %v2609_v6  ;;  %v5710_v43 = vand.u32 3, %v2610_v49  ;;  %v5712_v29 = vshll.u32 %v2799_v19, 8  ;;  %v5714_v40 = vshrl.u32 %v2803_v31, 5 }
 0x51e   : > { %v2733_v2 = vadd.s32 1, %v2729_v34  ;;  %v5708_v23 = vsub.s32 32, %v2805_v5  ;;  %v2808_v57 = vshll.u32 %v4246_v44, %v2805_v5  ;;  %v2811_v38 = vshll.u32 %v4247_v46, %v2805_v5 }
 0x51f   : > { %v2612_v47 = vmul.f32 -0.001358992, %v2611_v25  ;;  %v2619_v42 = vmul.f32 -0.00019511016, %v2611_v25  ;;  %v2814_v0 = vshll.u32 %v4248_v51, %v2805_v5  ;;  %v2817_v37 = vshll.u32 %v4249_v17, %v2805_v5 }
 0x520   : > { %v2734_v1 = vsel %vm2732_vm4, %v2733_v2, %v2729_v34  ;;  %v2809_v50 = vshrl.u32 %v4247_v46, %v5708_v23  ;;  %v2812_v9 = vshrl.u32 %v4248_v51, %v5708_v23  ;;  %v2818_v33 = vshrl.u32 %v4250_v56, %v5708_v23 }
 0x521   : > { %v2613_v30 = vadd.f32 0.041655596, %v2612_v47  ;;  %v2620_v41 = vadd.f32 0.008332121, %v2619_v42  ;;  %v2735_v8 = vadd.s32 %v2734_v1, %v2730_v3  ;;  %v2815_v14 = vshrl.u32 %v4249_v17, %v5708_v23 }
 0x522   : > { %vm2632_vm6 = vcmp.eq.s32.totalorder %v5710_v43, 2  ;;  %v2821_v55 = vshrl.u32 %v4251_v27, %v5708_v23  ;;  %vm2629_vm7 = vcmp.eq.s32.totalorder %v5710_v43, 0  ;;  %v2810_v32 = vor.u32 %v2809_v50, %v2808_v57 }
 0x523   : > { %v2614_v60 = vmul.f32 %v2613_v30, %v2611_v25  ;;  %v2621_v52 = vmul.f32 %v2620_v41, %v2611_v25  ;;  %v2736_v16 = vadd.s32 536870912, %v2735_v8  ;;  %v5734_v15 = vor.u32 %v2812_v9, %v2811_v38 }
 0x524   : > { %v2819_v45 = vor.u32 %v2818_v33, %v2817_v37  ;;  %v2820_v20 = vshll.u32 %v4250_v56, %v2805_v5  ;;  %vm2628_vm5 = vcmp.lt.s32.totalorder %v5710_v43, 2  ;;  %v5740_v61 = vadd.f32 %v5582_v28, %v1390_v63 }
 0x525   : > { %v2615_v18 = vadd.f32 -0.4999988, %v2614_v60  ;;  %v2622_v59 = vadd.f32 -0.16666654, %v2621_v52  ;;  %v5729_v39 = vshrl.u32 %v2736_v16, 30  ;;  %vm2626_vm8 = vweird.f32 %v5347_v13 }
 0x526   : > { %v2816_v26 = vor.u32 %v2815_v14, %v2814_v0  ;;  %v2822_v35 = vor.u32 %v2821_v55, %v2820_v20  ;;  %vm2823_vm9 = vcmp.lt.s32.totalorder %v5714_v40, 1  ;;  %v2840_v11 = vand.u32 65535, %v5712_v29 }
 0x527   : > { %v2616_v21 = vmul.f32 %v2615_v18, %v2611_v25  ;;  %v2623_v58 = vmul.f32 %v2622_v59, %v2611_v25  ;;  %v2738_v36 = vshll.u32 %v5729_v39, 30  ;;  %vm2826_vm10 = vcmp.lt.s32.totalorder %v5714_v40, 4 }
 0x528   : > { %vm2825_vm11 = vcmp.lt.s32.totalorder %v5714_v40, 3  ;;  %v2831_v12 = vsel %vm2823_vm9, %v2810_v32, %v5734_v15  ;;  %v2832_v34 = vsel %vm2826_vm10, %v2819_v45, 920167782  ;;  %v2841_v31 = vshrl.u32 %v5712_v29, 16 }
 0x529   : > { %v2617_v4 = vadd.f32 1.0, %v2616_v21  ;;  %v2624_v24 = vadd.f32 1.0, %v2623_v58  ;;  %v2739_v49 = vsub.s32 %v2735_v8, %v2738_v36  ;;  %vm2824_vm13 = vcmp.lt.s32.totalorder %v5714_v40, 2 }
 0x52a   : > { %v2833_v2 = vsel %vm2825_vm11, %v2816_v26, %v2832_v34  ;;  %v2836_v47 = vsel %vm2826_vm10, %v2822_v35, 1326507024  ;;  %v2948_v42 = vand.u32 2139095040, %v5740_v61  ;;  %v2731_v8 = vadd.s32 %v5697_v7, %v5685_v22 }
 0x52b   : > { %v2625_v25 = vmul.f32 %v2624_v24, %v2609_v6  ;;  %v2633_v19 = vxor.u32 2147483648, %v2617_v4  ;;  %vm2740_vm12 = vcmp.lt.s32.totalorder %v2739_v49, 0  ;;  %v2741_v5 = vsub.s32 0, %v2739_v49 }
 0x52c   : > { %v2834_v30 = vsel %vm2824_vm13, %v2831_v12, %v2833_v2  ;;  %v2835_v6 = vsel %vm2823_vm9, %v5734_v15, %v2816_v26  ;;  %v2945_v9 = vand.u32 2147483647, %v5740_v61  ;;  %v2837_v60 = vsel %vm2825_vm11, %v2819_v45, %v2836_v47 }
 0x52d   : > { %v2630_v3 = vxor.u32 2147483648, %v2625_v25  ;;  %v2742_v1 = vsel %vm2740_vm12, %v2741_v5, %v2739_v49  ;;  %v2634_v41 = vsel %vm2632_vm6, %v2633_v19, %v2625_v25  ;;  %v2864_v52 = vand.u32 65535, %v2834_v30 }
 0x52e   : > { %v2743_v50 = vclz %v2742_v1  ;;  %v2865_v16 = vshrl.u32 %v2834_v30, 16  ;;  %v2807_v0 = vshrl.u32 %v4246_v44, %v5708_v23  ;;  %v2838_v22 = vsel %vm2824_vm13, %v2835_v6, %v2837_v60 }
 0x52f   : > { %v2631_v33 = vsel %vm2629_vm7, %v2617_v4, %v2630_v3  ;;  %v2842_v14 = vand.u32 65535, %v2838_v22  ;;  %v2843_v37 = vshrl.u32 %v2838_v22, 16  ;;  %v2949_v63 = vshrl.u32 %v2948_v42, 23 }
 0x530   : > { %v2635_v57 = vsel %vm2628_vm5, %v2631_v33, %v2634_v41  ;;  %v4137_v38 = vadd.s32 4294967294, %v2743_v50  ;;  %v2761_v18 = vsub.s32 4, %v5729_v39  ;;  %v2827_v43 = vsel %vm2823_vm9, %v2807_v0, %v2810_v32 }
 0x531   : > { %v2636_v7 = vsel %vm2626_vm8, nan, %v2635_v57  ;;  %v2867_v59 = vmul.u32 %v2865_v16, %v2840_v11  ;;  %v2845_v23 = vmul.u32 %v2843_v37, %v2840_v11  ;;  %v2846_v45 = vmul.u32 %v2842_v14, %v2841_v31 }
 0x532   : > { %3876 = vst.msk [vmem:[%s4897_s25 + $0x38] sm:$0xff] %vm627_vm0, %v2636_v7  ;;  %vm4138_vm15 = vcmp.lt.s32.totalorder %v4137_v38, 0  ;;  %v2868_v20 = vmul.u32 %v2864_v52, %v2841_v31  ;;  %v2828_v13 = vsel %vm2826_vm10, %v2816_v26, 2102212464  ;;  %v2866_v36 = vmul.u32 %v2864_v52, %v2840_v11 }
 0x533   : > { %v2746_v55 = vsel %vm4138_vm15, 0, %v4137_v38  ;;  %vm2639_vm14 = vcmp.lt.s32.totalorder %v5496_v48, 0  ;;  %v2844_v4 = vmul.u32 %v2842_v14, %v2840_v11  ;;  %v2848_v24 = vshll.u32 %v2845_v23, 16 }
 0x534   : > { %v2747_v21 = vsub.s32 32, %v2746_v55  ;;  %v2751_v58 = vsub.s32 4294967266, %v2746_v55  ;;  %v2748_v35 = vshll.u32 %v2739_v49, %v2746_v55  ;;  %v2869_v12 = vmul.u32 %v2865_v16, %v2841_v31 }
 0x535   : > { %v2847_v32 = vmul.u32 %v2843_v37, %v2841_v31  ;;  %v2870_v19 = vshll.u32 %v2867_v59, 16  ;;  %v2850_v5 = vshll.u32 %v2846_v45, 16  ;;  %vm2852_vm1 = vc.u32 %v2844_v4, %v2848_v24 }
 0x536   : > { %v2749_v34 = vshrl.u32 %v2731_v8, %v2747_v21  ;;  %v2752_v25 = vadd.s32 127, %v2751_v58  ;;  %v2854_v2 = vadd.s32 %v2848_v24, %v2844_v4  ;;  %v2872_v47 = vshll.u32 %v2868_v20, 16 }
 0x537   : > { %v2853_v1 = vsel %vm2852_vm1, 1, %v4252_v53  ;;  %vm2874_vm2 = vc.u32 %v2866_v36, %v2870_v19  ;;  %v2876_v11 = vadd.s32 %v2870_v19, %v2866_v36  ;;  %v2829_v31 = vsel %vm2825_vm11, %v5734_v15, %v2828_v13 }
 0x538   : > { %v2750_v42 = vor.u32 %v2749_v34, %v2748_v35  ;;  %v2753_v3 = vshll.u32 %v2752_v25, 23  ;;  %v2855_v26 = vadd.s32 %v2853_v1, %v2847_v32  ;;  %vm2856_vm3 = vc.u32 %v2854_v2, %v2850_v5 }
 0x539   : > { %v2875_v49 = vsel %vm2874_vm2, 1, %v4252_v53  ;;  %v2857_v6 = vsel %vm2856_vm3, 1, %v4252_v53  ;;  %v2849_v8 = vshrl.u32 %v2845_v23, 16  ;;  %vm2878_vm4 = vc.u32 %v2876_v11, %v2872_v47 }
 0x53a   : > { %v2754_v30 = vor.u32 4788187, %v2753_v3  ;;  %v2877_v41 = vadd.s32 %v2875_v49, %v2869_v12  ;;  %v2859_v50 = vadd.s32 %v2857_v6, %v2855_v26  ;;  %v4142_v33 = vadd.s32 4294967169, %v2949_v63  ;;  %v1392_v6 = vpop.f32.mrf.mxu3 }
 0x53b   : > { %v2757_v52 = vcvt.s32.f32 %v2750_v42  ;;  %v2851_v16 = vshrl.u32 %v2846_v45, 16  ;;  %v2879_v57 = vsel %vm2878_vm4, 1, %v4252_v53  ;;  %v2871_v0 = vshrl.u32 %v2867_v59, 16 }
 0x53c   : > { %v2755_v60 = vand.u32 2147483647, %v2754_v30  ;;  %v2860_v38 = vadd.s32 %v2859_v50, %v2849_v8  ;;  %v2881_v22 = vadd.s32 %v2879_v57, %v2877_v41  ;;  %v2955_v7 = vadd.s32 1, %v4142_v33 }
 0x53d   : > { %v2762_v15 = vsel %vm2639_vm14, %v2761_v18, %v5729_v39  ;;  %v2952_v37 = vand.u32 8388607, %v2945_v9  ;;  %v2873_v63 = vshrl.u32 %v2868_v20, 16  ;;  %v2830_v21 = vsel %vm2824_vm13, %v2827_v43, %v2829_v31 }
 0x53e   : > { %v2758_v14 = vmul.f32 %v2757_v52, %v2755_v60  ;;  %v5801_v55 = vadd.s32 %v2860_v38, %v2851_v16  ;;  %v2882_v23 = vadd.s32 %v2881_v22, %v2871_v0  ;;  %vm2956_vm6 = vcmp.gt.s32.totalorder %v2955_v7, 0 }
 0x53f   : > { %v5805_v59 = vadd.s32 %v2876_v11, %v2872_v47  ;;  %v2957_v58 = vsel %vm2956_vm6, %v2955_v7, 0  ;;  %vm5809_vm7 = vcmp.le.f32.partialorder %v2637_v54, 0.7853982  ;;  %v2884_v36 = vmul.u32 %v5712_v29, %v2830_v21 }
 0x540   : > { %v2759_v45 = vxor.u32 2147483648, %v2758_v14  ;;  %v2883_v13 = vadd.s32 %v2882_v23, %v2873_v63  ;;  %v2959_v20 = vand.u32 31, %v2957_v58  ;;  %v2764_v43 = vsel %vm5809_vm7, 0, %v2762_v15 }
 0x541   : > { %vm2886_vm5 = vc.u32 %v5801_v55, %v5805_v59  ;;  %v2953_v4 = vor.u32 8388608, %v2952_v37  ;;  %v5823_v24 = vshrl.u32 %v2957_v58, 5  ;;  %v2781_v38 = vand.u32 3, %v2764_v43 }
 0x542   : > { %v2760_v18 = vsel %vm2639_vm14, %v2759_v45, %v2758_v14  ;;  %v2887_v54 = vadd.s32 1, %v2883_v13  ;;  %v5825_v12 = vsub.s32 32, %v2959_v20  ;;  %v2965_v25 = vshll.u32 %v4247_v46, %v2959_v20 }
 0x543   : > { %v2763_v40 = vsel %vm5809_vm7, %v5496_v48, %v2760_v18  ;;  %v2968_v32 = vshll.u32 %v4248_v51, %v2959_v20  ;;  %v2971_v19 = vshll.u32 %v4249_v17, %v2959_v20  ;;  %v2974_v42 = vshll.u32 %v4250_v56, %v2959_v20 }
 0x544   : > { %v2765_v35 = vmul.f32 %v2763_v40, %v2763_v40  ;;  %v2888_v34 = vsel %vm2886_vm5, %v2887_v54, %v2883_v13  ;;  %v2963_v29 = vshrl.u32 %v4247_v46, %v5825_v12  ;;  %v2966_v3 = vshrl.u32 %v4248_v51, %v5825_v12 }
 0x545   : > { %v2889_v47 = vadd.s32 %v2888_v34, %v2884_v36  ;;  %v2969_v1 = vshrl.u32 %v4249_v17, %v5825_v12  ;;  %v2972_v26 = vshrl.u32 %v4250_v56, %v5825_v12  ;;  %v2975_v31 = vshrl.u32 %v4251_v27, %v5825_v12 }
 0x546   : > { %v2766_v5 = vmul.f32 -0.001358992, %v2765_v35  ;;  %v2773_v2 = vmul.f32 -0.00019511016, %v2765_v35  ;;  %v2962_v41 = vshll.u32 %v4246_v44, %v2959_v20  ;;  %v5842_v8 = vor.u32 %v2966_v3, %v2965_v25 }
 0x547   : > { %v2890_v30 = vadd.s32 536870912, %v2889_v47  ;;  %v5844_v50 = vor.u32 %v2969_v1, %v2968_v32  ;;  %v2973_v33 = vor.u32 %v2972_v26, %v2971_v19  ;;  %v2976_v57 = vor.u32 %v2975_v31, %v2974_v42 }
 0x548   : > { %v2767_v49 = vadd.f32 0.041655596, %v2766_v5  ;;  %v2774_v11 = vadd.f32 0.008332121, %v2773_v2  ;;  %v5848_v0 = vor.u32 %v2963_v29, %v2962_v41  ;;  %v5850_v22 = vshll.u32 %v2953_v4, 8 }
 0x549   : > { %v5846_v16 = vshrl.u32 %v2890_v30, 30  ;;  %v5853_v7 = vadd.f32 %v5582_v28, %v1392_v6  ;;  %vm2980_vm8 = vcmp.lt.s32.totalorder %v5823_v24, 4  ;;  %vm2977_vm9 = vcmp.lt.s32.totalorder %v5823_v24, 1 }
 0x54a   : > { %v2768_v60 = vmul.f32 %v2767_v49, %v2765_v35  ;;  %v2775_v52 = vmul.f32 %v2774_v11, %v2765_v35  ;;  %vm2979_vm10 = vcmp.lt.s32.totalorder %v5823_v24, 3  ;;  %v2986_v63 = vsel %vm2980_vm8, %v2973_v33, 920167782 }
 0x54b   : > { %v2892_v37 = vshll.u32 %v5846_v16, 30  ;;  %v2990_v23 = vsel %vm2980_vm8, %v2976_v57, 1326507024  ;;  %v2989_v13 = vsel %vm2977_vm9, %v5842_v8, %v5844_v50  ;;  %vm2978_vm11 = vcmp.lt.s32.totalorder %v5823_v24, 2 }
 0x54c   : > { %v2769_v14 = vadd.f32 -0.4999988, %v2768_v60  ;;  %v2776_v15 = vadd.f32 -0.16666654, %v2775_v52  ;;  %v2985_v39 = vsel %vm2977_vm9, %v5848_v0, %v5842_v8  ;;  %v2987_v18 = vsel %vm2979_vm10, %v5844_v50, %v2986_v63 }
 0x54d   : > { %v2893_v58 = vsub.s32 %v2889_v47, %v2892_v37  ;;  %v2991_v20 = vsel %vm2979_vm10, %v2973_v33, %v2990_v23  ;;  %vm2780_vm13 = vweird.f32 %v5496_v48  ;;  %vm2782_vm15 = vcmp.lt.s32.totalorder %v2781_v38, 2 }
 0x54e   : > { %v2770_v45 = vmul.f32 %v2769_v14, %v2765_v35  ;;  %v2777_v21 = vmul.f32 %v2776_v15, %v2765_v35  ;;  %vm2783_vm14 = vcmp.eq.s32.totalorder %v2781_v38, 0  ;;  %v2992_v35 = vsel %vm2978_vm11, %v2989_v13, %v2991_v20 }
 0x54f   : > { %vm2894_vm12 = vcmp.lt.s32.totalorder %v2893_v58, 0  ;;  %v2895_v54 = vsub.s32 0, %v2893_v58  ;;  %v2996_v32 = vand.u32 65535, %v2992_v35  ;;  %vm2786_vm1 = vcmp.eq.s32.totalorder %v2781_v38, 2 }
 0x550   : > { %v2771_v43 = vadd.f32 1.0, %v2770_v45  ;;  %v2778_v36 = vadd.f32 1.0, %v2777_v21  ;;  %v2988_v5 = vsel %vm2978_vm11, %v2985_v39, %v2987_v18  ;;  %v2995_v2 = vshrl.u32 %v5850_v22, 16 }
 0x551   : > { %v2896_v25 = vsel %vm2894_vm12, %v2895_v54, %v2893_v58  ;;  %v2994_v42 = vand.u32 65535, %v5850_v22  ;;  %v2997_v29 = vshrl.u32 %v2992_v35, 16  ;;  %v3099_v3 = vand.u32 2147483647, %v5853_v7 }
 0x552   : > { %v2779_v4 = vmul.f32 %v2778_v36, %v2763_v40  ;;  %v2787_v34 = vxor.u32 2147483648, %v2771_v43  ;;  %v2897_v19 = vclz %v2896_v25  ;;  %v2885_v40 = vadd.s32 %v5805_v59, %v5801_v55 }
 0x553   : > { %v3000_v49 = vmul.u32 %v2996_v32, %v2995_v2  ;;  %v2999_v30 = vmul.u32 %v2997_v29, %v2994_v42  ;;  %v3018_v31 = vand.u32 65535, %v2988_v5  ;;  %v3019_v6 = vshrl.u32 %v2988_v5, 16 }
 0x554   : > { %v2784_v47 = vxor.u32 2147483648, %v2779_v4  ;;  %v2788_v1 = vsel %vm2786_vm1, %v2787_v34, %v2779_v4  ;;  %v4140_v26 = vadd.s32 4294967294, %v2897_v19  ;;  %v2961_v33 = vshrl.u32 %v4246_v44, %v5825_v12 }
 0x555   : > { %v2998_v60 = vmul.u32 %v2996_v32, %v2994_v42  ;;  %v3001_v14 = vmul.u32 %v2997_v29, %v2995_v2  ;;  %v3002_v55 = vshll.u32 %v2999_v30, 16  ;;  %v3003_v37 = vshrl.u32 %v2999_v30, 16 }
 0x556   : > { %v2785_v11 = vsel %vm2783_vm14, %v2771_v43, %v2784_v47  ;;  %vm4141_vm2 = vcmp.lt.s32.totalorder %v4140_v26, 0  ;;  %v3004_v63 = vshll.u32 %v3000_v49, 16  ;;  %v3021_v23 = vmul.u32 %v3019_v6, %v2994_v42 }
 0x557   : > { %v2789_v41 = vsel %vm2782_vm15, %v2785_v11, %v2788_v1  ;;  %v2900_v57 = vsel %vm4141_vm2, 0, %v4140_v26  ;;  %vm3006_vm3 = vc.u32 %v2998_v60, %v3002_v55  ;;  %v3008_v38 = vadd.s32 %v3002_v55, %v2998_v60 }
 0x558   : > { %v2790_v52 = vsel %vm2780_vm13, nan, %v2789_v41  ;;  %v2901_v59 = vsub.s32 32, %v2900_v57  ;;  %v2905_v15 = vsub.s32 4294967266, %v2900_v57  ;;  %v3022_v45 = vmul.u32 %v3018_v31, %v2995_v2 }
 0x559   : > { %3877 = vst.msk [vmem:[%s4897_s25 + $0x40] sm:$0xff] %vm627_vm0, %v2790_v52  ;;  %v2902_v21 = vshll.u32 %v2893_v58, %v2900_v57  ;;  %v3007_v39 = vsel %vm3006_vm3, 1, %v4252_v53  ;;  %vm3010_vm4 = vc.u32 %v3008_v38, %v3004_v63  ;;  %v3020_v18 = vmul.u32 %v3018_v31, %v2994_v42 }
 0x55a   : > { %v2903_v13 = vshrl.u32 %v2885_v40, %v2901_v59  ;;  %v2906_v12 = vadd.s32 127, %v2905_v15  ;;  %v3009_v48 = vadd.s32 %v3007_v39, %v3001_v14  ;;  %v3024_v20 = vshll.u32 %v3021_v23, 16  ;;  %v1395_v15 = vpop.f32.mrf.mxu3 }
 0x55b   : > { %v3011_v54 = vsel %vm3010_vm4, 1, %v4252_v53  ;;  %v3023_v35 = vmul.u32 %v3019_v6, %v2995_v2  ;;  %v3026_v34 = vshll.u32 %v3022_v45, 16  ;;  %v2982_v58 = vsel %vm2980_vm8, %v5844_v50, 2102212464 }
 0x55c   : > { %v2904_v43 = vor.u32 %v2903_v13, %v2902_v21  ;;  %v2907_v36 = vshll.u32 %v2906_v12, 23  ;;  %v3013_v4 = vadd.s32 %v3011_v54, %v3009_v48  ;;  %vm3028_vm6 = vc.u32 %v3020_v18, %v3024_v20 }
 0x55d   : > { %v3030_v25 = vadd.s32 %v3024_v20, %v3020_v18  ;;  %v3029_v19 = vsel %vm3028_vm6, 1, %v4252_v53  ;;  %v3102_v5 = vand.u32 2139095040, %v5853_v7  ;;  %v3005_v47 = vshrl.u32 %v3000_v49, 16 }
 0x55e   : > { %v2908_v32 = vor.u32 4788187, %v2907_v36  ;;  %v3014_v42 = vadd.s32 %v3013_v4, %v3003_v37  ;;  %v3031_v29 = vadd.s32 %v3029_v19, %v3023_v35  ;;  %v2911_v40 = vcvt.s32.f32 %v2904_v43 }
 0x55f   : > { %vm3032_vm7 = vc.u32 %v3030_v25, %v3026_v34  ;;  %v3103_v26 = vshrl.u32 %v3102_v5, 23  ;;  %v2915_v11 = vsub.s32 4, %v5846_v16  ;;  %v2981_v30 = vsel %vm2977_vm9, %v2961_v33, %v5848_v0 }
 0x560   : > { %v2909_v1 = vand.u32 2147483647, %v2908_v32  ;;  %v3033_v2 = vsel %vm3032_vm7, 1, %v4252_v53  ;;  %v3025_v50 = vshrl.u32 %v3021_v23, 16  ;;  %v2983_v49 = vsel %vm2979_vm10, %v5842_v8, %v2982_v58 }
 0x561   : > { %v3035_v31 = vadd.s32 %v3033_v2, %v3031_v29  ;;  %v3015_v41 = vadd.s32 %v3014_v42, %v3005_v47  ;;  %v4145_v60 = vadd.s32 4294967169, %v3103_v26  ;;  %v3027_v52 = vshrl.u32 %v3022_v45, 16 }
 0x562   : > { %v2912_v6 = vmul.f32 %v2911_v40, %v2909_v1  ;;  %vm2793_vm5 = vcmp.lt.s32.totalorder %v5585_v62, 0  ;;  %v3034_v55 = vadd.s32 %v3030_v25, %v3026_v34  ;;  %v2984_v0 = vsel %vm2978_vm11, %v2981_v30, %v2983_v49 }
 0x563   : > { %v3036_v57 = vadd.s32 %v3035_v31, %v3025_v50  ;;  %v3109_v59 = vadd.s32 1, %v4145_v60  ;;  %v2916_v37 = vsel %vm2793_vm5, %v2915_v11, %v5846_v16  ;;  %v3106_v63 = vand.u32 8388607, %v3099_v3 }
 0x564   : > { %v2913_v14 = vxor.u32 2147483648, %v2912_v6  ;;  %vm5918_vm8 = vcmp.le.f32.partialorder %v2791_v10, 0.7853982  ;;  %vm3040_vm9 = vc.u32 %v3015_v41, %v3034_v55  ;;  %v5926_v45 = vadd.f32 %v5582_v28, %v1395_v15 }
 0x565   : > { %v3037_v33 = vadd.s32 %v3036_v57, %v3027_v52  ;;  %vm3110_vm10 = vcmp.gt.s32.totalorder %v3109_v59, 0  ;;  %v2918_v21 = vsel %vm5918_vm8, 0, %v2916_v37  ;;  %v3038_v10 = vmul.u32 %v5850_v22, %v2984_v0 }
 0x566   : > { %v2914_v38 = vsel %vm2793_vm5, %v2913_v14, %v2912_v6  ;;  %v3111_v24 = vsel %vm3110_vm10, %v3109_v59, 0  ;;  %v3107_v48 = vor.u32 8388608, %v3106_v63  ;;  %v5931_v54 = vand.u32 3, %v2918_v21 }
 0x567   : > { %v2917_v16 = vsel %vm5918_vm8, %v5585_v62, %v2914_v38  ;;  %v3041_v23 = vadd.s32 1, %v3037_v33  ;;  %v3113_v12 = vand.u32 31, %v3111_v24  ;;  %v3253_v35 = vand.u32 2147483647, %v5926_v45 }
 0x568   : > { %v2919_v13 = vmul.f32 %v2917_v16, %v2917_v16  ;;  %v5934_v34 = vadd.s32 %v3034_v55, %v3015_v41  ;;  %v5938_v58 = vshll.u32 %v3107_v48, 8  ;;  %v3256_v19 = vand.u32 2139095040, %v5926_v45 }
 0x569   : > { %v3042_v39 = vsel %vm3040_vm9, %v3041_v23, %v3037_v33  ;;  %v3114_v36 = vsub.s32 32, %v3113_v12  ;;  %v5944_v1 = vshrl.u32 %v3111_v24, 5  ;;  %v3116_v40 = vshll.u32 %v4246_v44, %v3113_v12 }
 0x56a   : > { %v2920_v18 = vmul.f32 -0.001358992, %v2919_v13  ;;  %v2927_v20 = vmul.f32 -0.00019511016, %v2919_v13  ;;  %v3043_v43 = vadd.s32 %v3042_v39, %v3038_v10  ;;  %v3125_v26 = vshll.u32 %v4249_v17, %v3113_v12 }
 0x56b   : > { %v3117_v32 = vshrl.u32 %v4247_v46, %v3114_v36  ;;  %v3126_v22 = vshrl.u32 %v4250_v56, %v3114_v36  ;;  %v3120_v29 = vshrl.u32 %v4248_v51, %v3114_v36  ;;  %v3123_v2 = vshrl.u32 %v4249_v17, %v3114_v36 }
 0x56c   : > { %v2921_v4 = vadd.f32 0.041655596, %v2920_v18  ;;  %v2928_v28 = vadd.f32 0.008332121, %v2927_v20  ;;  %v3044_v25 = vadd.s32 536870912, %v3043_v43  ;;  %v3119_v31 = vshll.u32 %v4247_v46, %v3113_v12 }
 0x56d   : > { %vm2937_vm11 = vcmp.eq.s32.totalorder %v5931_v54, 0  ;;  %vm2940_vm12 = vcmp.eq.s32.totalorder %v5931_v54, 2  ;;  %v3118_v6 = vor.u32 %v3117_v32, %v3116_v40  ;;  %v3122_v49 = vshll.u32 %v4248_v51, %v3113_v12 }
 0x56e   : > { %v2922_v5 = vmul.f32 %v2921_v4, %v2919_v13  ;;  %v2929_v47 = vmul.f32 %v2928_v28, %v2919_v13  ;;  %v5941_v42 = vshrl.u32 %v3044_v25, 30  ;;  %v3127_v41 = vor.u32 %v3126_v22, %v3125_v26 }
 0x56f   : > { %v3129_v60 = vshrl.u32 %v4251_v27, %v3114_v36  ;;  %vm2936_vm13 = vcmp.lt.s32.totalorder %v5931_v54, 2  ;;  %v3121_v55 = vor.u32 %v3120_v29, %v3119_v31  ;;  %vm2934_vm15 = vweird.f32 %v5585_v62 }
 0x570   : > { %v2923_v11 = vadd.f32 -0.4999988, %v2922_v5  ;;  %v2930_v30 = vadd.f32 -0.16666654, %v2929_v47  ;;  %v3046_v50 = vshll.u32 %v5941_v42, 30  ;;  %v3124_v59 = vor.u32 %v3123_v2, %v3122_v49 }
 0x571   : > { %v3128_v15 = vshll.u32 %v4250_v56, %v3113_v12  ;;  %vm3134_vm14 = vcmp.lt.s32.totalorder %v5944_v1, 4  ;;  %v3257_v37 = vshrl.u32 %v3256_v19, 23  ;;  %vm3131_vm2 = vcmp.lt.s32.totalorder %v5944_v1, 1 }
 0x572   : > { %v2924_v52 = vmul.f32 %v2923_v11, %v2919_v13  ;;  %v2931_v57 = vmul.f32 %v2930_v30, %v2919_v13  ;;  %v3047_v14 = vsub.s32 %v3043_v43, %v3046_v50  ;;  %v3140_v38 = vsel %vm3134_vm14, %v3127_v41, 920167782 }
 0x573   : > { %v3130_v8 = vor.u32 %v3129_v60, %v3128_v15  ;;  %v3148_v23 = vand.u32 65535, %v5938_v58  ;;  %v3139_v10 = vsel %vm3131_vm2, %v3118_v6, %v3121_v55  ;;  %vm3133_vm3 = vcmp.lt.s32.totalorder %v5944_v1, 3 }
 0x574   : > { %v2925_v0 = vadd.f32 1.0, %v2924_v52  ;;  %v2932_v33 = vadd.f32 1.0, %v2931_v57  ;;  %vm3048_vm1 = vcmp.lt.s32.totalorder %v3047_v14, 0  ;;  %v3049_v63 = vsub.s32 0, %v3047_v14 }
 0x575   : > { %v3149_v39 = vshrl.u32 %v5938_v58, 16  ;;  %v4148_v48 = vadd.s32 4294967169, %v3257_v37  ;;  %v3115_v20 = vshrl.u32 %v4246_v44, %v3114_v36  ;;  %vm3132_vm4 = vcmp.lt.s32.totalorder %v5944_v1, 2 }
 0x576   : > { %v2933_v24 = vmul.f32 %v2932_v33, %v2917_v16  ;;  %v2941_v21 = vxor.u32 2147483648, %v2925_v0  ;;  %v3050_v13 = vsel %vm3048_vm1, %v3049_v63, %v3047_v14  ;;  %v3141_v43 = vsel %vm3133_vm3, %v3124_v59, %v3140_v38 }
 0x577   : > { %v3051_v12 = vclz %v3050_v13  ;;  %v3142_v4 = vsel %vm3132_vm4, %v3139_v10, %v3141_v43  ;;  %v3143_v28 = vsel %vm3131_vm2, %v3121_v55, %v3124_v59  ;;  %v3144_v25 = vsel %vm3134_vm14, %v3130_v8, 1326507024 }
 0x578   : > { %v2938_v18 = vxor.u32 2147483648, %v2933_v24  ;;  %v2942_v36 = vsel %vm2940_vm12, %v2941_v21, %v2933_v24  ;;  %v3145_v22 = vsel %vm3133_vm3, %v3127_v41, %v3144_v25  ;;  %v3172_v19 = vand.u32 65535, %v3142_v4 }
 0x579   : > { %v4143_v16 = vadd.s32 4294967294, %v3051_v12  ;;  %v3146_v47 = vsel %vm3132_vm4, %v3143_v28, %v3145_v22  ;;  %v3173_v29 = vshrl.u32 %v3142_v4, 16  ;;  %v3069_v31 = vsub.s32 4, %v5941_v42 }
 0x57a   : > { %v2939_v32 = vsel %vm2937_vm11, %v2925_v0, %v2938_v18  ;;  %v3150_v26 = vand.u32 65535, %v3146_v47  ;;  %v3151_v11 = vshrl.u32 %v3146_v47, 16  ;;  %v3136_v54 = vsel %vm3134_vm14, %v3124_v59, 2102212464 }
 0x57b   : > { %v2943_v5 = vsel %vm2936_vm13, %v2939_v32, %v2942_v36  ;;  %vm4144_vm6 = vcmp.lt.s32.totalorder %v4143_v16, 0  ;;  %v3135_v41 = vsel %vm3131_vm2, %v3115_v20, %v3118_v6  ;;  %v3175_v15 = vmul.u32 %v3173_v29, %v3148_v23 }
 0x57c   : > { %v2944_v40 = vsel %vm2934_vm15, nan, %v2943_v5  ;;  %v3054_v2 = vsel %vm4144_vm6, 0, %v4143_v16  ;;  %v3153_v60 = vmul.u32 %v3151_v11, %v3148_v23  ;;  %v3154_v52 = vmul.u32 %v3150_v26, %v3149_v39 }
 0x57d   : > { %3878 = vst.msk [vmem:[%s4897_s25 + $0x48] sm:$0xff] %vm627_vm0, %v2944_v40  ;;  %v3055_v30 = vsub.s32 32, %v3054_v2  ;;  %v3059_v50 = vsub.s32 4294967266, %v3054_v2  ;;  %v3056_v49 = vshll.u32 %v3047_v14, %v3054_v2  ;;  %v3176_v37 = vmul.u32 %v3172_v19, %v3149_v39 }
 0x57e   : > { %vm2947_vm7 = vcmp.lt.s32.totalorder %v5740_v61, 0  ;;  %v3137_v0 = vsel %vm3133_vm3, %v3121_v55, %v3136_v54  ;;  %v3152_v33 = vmul.u32 %v3150_v26, %v3148_v23  ;;  %v3156_v63 = vshll.u32 %v3153_v60, 16 }
 0x57f   : > { %v3057_v62 = vshrl.u32 %v5934_v34, %v3055_v30  ;;  %v3060_v57 = vadd.s32 127, %v3059_v50  ;;  %v3174_v8 = vmul.u32 %v3172_v19, %v3148_v23  ;;  %v3155_v38 = vmul.u32 %v3151_v11, %v3149_v39 }
 0x580   : > { %v3178_v24 = vshll.u32 %v3175_v15, 16  ;;  %v3158_v6 = vshll.u32 %v3154_v52, 16  ;;  %vm3160_vm5 = vc.u32 %v3152_v33, %v3156_v63  ;;  %v3162_v21 = vadd.s32 %v3156_v63, %v3152_v33 }
 0x581   : > { %v3058_v59 = vor.u32 %v3057_v62, %v3056_v49  ;;  %v3061_v14 = vshll.u32 %v3060_v57, 23  ;;  %v3177_v13 = vmul.u32 %v3173_v29, %v3149_v39  ;;  %v3161_v12 = vsel %vm3160_vm5, 1, %v4252_v53 }
 0x582   : > { %v3180_v18 = vshll.u32 %v3176_v37, 16  ;;  %v3163_v20 = vadd.s32 %v3161_v12, %v3155_v38  ;;  %vm3164_vm8 = vc.u32 %v3162_v21, %v3158_v6  ;;  %vm3182_vm9 = vc.u32 %v3174_v8, %v3178_v24 }
 0x583   : > { %v3062_v34 = vor.u32 4788187, %v3061_v14  ;;  %v3065_v10 = vcvt.s32.f32 %v3058_v59  ;;  %v3184_v55 = vadd.s32 %v3178_v24, %v3174_v8  ;;  %v3165_v23 = vsel %vm3164_vm8, 1, %v4252_v53 }
 0x584   : > { %v3183_v16 = vsel %vm3182_vm9, 1, %v4252_v53  ;;  %v3263_v4 = vadd.s32 1, %v4148_v48  ;;  %v3157_v28 = vshrl.u32 %v3153_v60, 16  ;;  %v3167_v25 = vadd.s32 %v3165_v23, %v3163_v20 }
 0x585   : > { %v3063_v43 = vand.u32 2147483647, %v3062_v34  ;;  %v3185_v32 = vadd.s32 %v3183_v16, %v3177_v13  ;;  %vm3186_vm10 = vc.u32 %v3184_v55, %v3180_v18  ;;  %v3159_v36 = vshrl.u32 %v3154_v52, 16 }
 0x586   : > { %v3187_v22 = vsel %vm3186_vm10, 1, %v4252_v53  ;;  %vm3264_vm11 = vcmp.gt.s32.totalorder %v3263_v4, 0  ;;  %v3168_v19 = vadd.s32 %v3167_v25, %v3157_v28  ;;  %v3179_v5 = vshrl.u32 %v3175_v15, 16 }
 0x587   : > { %v3066_v39 = vmul.f32 %v3065_v10, %v3063_v43  ;;  %v3189_v47 = vadd.s32 %v3187_v22, %v3185_v32  ;;  %v3265_v29 = vsel %vm3264_vm11, %v3263_v4, 0  ;;  %v3070_v2 = vsel %vm2947_vm7, %v3069_v31, %v5941_v42 }
 0x588   : > { %v3138_v48 = vsel %vm3132_vm4, %v3135_v41, %v3137_v0  ;;  %v3267_v26 = vand.u32 31, %v3265_v29  ;;  %vm6011_vm12 = vcmp.le.f32.partialorder %v2945_v9, 0.7853982  ;;  %v6015_v30 = vadd.s32 %v3168_v19, %v3159_v36 }
 0x589   : > { %v3067_v40 = vxor.u32 2147483648, %v3066_v39  ;;  %v3181_v50 = vshrl.u32 %v3176_v37, 16  ;;  %v3190_v54 = vadd.s32 %v3189_v47, %v3179_v5  ;;  %v6019_v60 = vadd.s32 %v3184_v55, %v3180_v18 }
 0x58a   : > { %v3260_v42 = vand.u32 8388607, %v3253_v35  ;;  %v6023_v1 = vsub.s32 32, %v3267_v26  ;;  %v3072_v31 = vsel %vm6011_vm12, 0, %v3070_v2  ;;  %v3192_v52 = vmul.u32 %v5938_v58, %v3138_v48 }
 0x58b   : > { %v3068_v49 = vsel %vm2947_vm7, %v3067_v40, %v3066_v39  ;;  %v3191_v41 = vadd.s32 %v3190_v54, %v3181_v50  ;;  %vm3194_vm13 = vc.u32 %v6015_v30, %v6019_v60  ;;  %v6033_v57 = vshrl.u32 %v3265_v29, 5 }
 0x58c   : > { %v3071_v9 = vsel %vm6011_vm12, %v5740_v61, %v3068_v49  ;;  %v3270_v15 = vshll.u32 %v4246_v44, %v3267_v26  ;;  %v3271_v0 = vshrl.u32 %v4247_v46, %v6023_v1  ;;  %v3274_v33 = vshrl.u32 %v4248_v51, %v6023_v1 }
 0x58d   : > { %v3073_v62 = vmul.f32 %v3071_v9, %v3071_v9  ;;  %v3195_v37 = vadd.s32 1, %v3191_v41  ;;  %v3277_v63 = vshrl.u32 %v4249_v17, %v6023_v1  ;;  %v3273_v59 = vshll.u32 %v4247_v46, %v3267_v26 }
 0x58e   : > { %v3276_v14 = vshll.u32 %v4248_v51, %v3267_v26  ;;  %v3279_v24 = vshll.u32 %v4249_v17, %v3267_v26  ;;  %v3280_v6 = vshrl.u32 %v4250_v56, %v6023_v1  ;;  %v3282_v21 = vshll.u32 %v4250_v56, %v3267_v26 }
 0x58f   : > { %v3074_v8 = vmul.f32 -0.001358992, %v3073_v62  ;;  %v3081_v58 = vmul.f32 -0.00019511016, %v3073_v62  ;;  %v3196_v38 = vsel %vm3194_vm13, %v3195_v37, %v3191_v41  ;;  %v3283_v12 = vshrl.u32 %v4251_v27, %v6023_v1  ;;  %v1397_v37 = vpop.f32.mrf.mxu3 }
 0x590   : > { %v3197_v10 = vadd.s32 %v3196_v38, %v3192_v52  ;;  %v6050_v18 = vor.u32 %v3271_v0, %v3270_v15  ;;  %v6052_v20 = vor.u32 %v3274_v33, %v3273_v59  ;;  %v6054_v55 = vor.u32 %v3277_v63, %v3276_v14 }
 0x591   : > { %v3075_v13 = vadd.f32 0.041655596, %v3074_v8  ;;  %v3082_v34 = vadd.f32 0.008332121, %v3081_v58  ;;  %v3281_v43 = vor.u32 %v3280_v6, %v3279_v24  ;;  %v3284_v28 = vor.u32 %v3283_v12, %v3282_v21 }
 0x592   : > { %v3198_v4 = vadd.s32 536870912, %v3197_v10  ;;  %v3089_v25 = vand.u32 3, %v3072_v31  ;;  %v3261_v32 = vor.u32 8388608, %v3260_v42  ;;  %vm3285_vm15 = vcmp.lt.s32.totalorder %v6033_v57, 1 }
 0x593   : > { %v3076_v23 = vmul.f32 %v3075_v13, %v3073_v62  ;;  %v3083_v16 = vmul.f32 %v3082_v34, %v3073_v62  ;;  %vm3288_vm14 = vcmp.lt.s32.totalorder %v6033_v57, 4  ;;  %vm3287_vm1 = vcmp.lt.s32.totalorder %v6033_v57, 3 }
 0x594   : > { %v6057_v22 = vshrl.u32 %v3198_v4, 30  ;;  %v3293_v19 = vsel %vm3285_vm15, %v6050_v18, %v6052_v20  ;;  %v3294_v5 = vsel %vm3288_vm14, %v3281_v43, 920167782  ;;  %v3298_v47 = vsel %vm3288_vm14, %v3284_v28, 1326507024 }
 0x595   : > { %v3077_v39 = vadd.f32 -0.4999988, %v3076_v23  ;;  %v3084_v36 = vadd.f32 -0.16666654, %v3083_v16  ;;  %v3297_v48 = vsel %vm3285_vm15, %v6052_v20, %v6054_v55  ;;  %v3295_v26 = vsel %vm3287_vm1, %v6054_v55, %v3294_v5 }
 0x596   : > { %v3200_v2 = vshll.u32 %v6057_v22, 30  ;;  %v3299_v11 = vsel %vm3287_vm1, %v3281_v43, %v3298_v47  ;;  %v6079_v50 = vshll.u32 %v3261_v32, 8  ;;  %vm3286_vm2 = vcmp.lt.s32.totalorder %v6033_v57, 2 }
 0x597   : > { %v3078_v29 = vmul.f32 %v3077_v39, %v3073_v62  ;;  %v3085_v40 = vmul.f32 %v3084_v36, %v3073_v62  ;;  %vm3088_vm3 = vweird.f32 %v5740_v61  ;;  %vm3090_vm4 = vcmp.lt.s32.totalorder %v3089_v25, 2 }
 0x598   : > { %v3201_v42 = vsub.s32 %v3197_v10, %v3200_v2  ;;  %v3296_v31 = vsel %vm3286_vm2, %v3293_v19, %v3295_v26  ;;  %v3300_v41 = vsel %vm3286_vm2, %v3297_v48, %v3299_v11  ;;  %vm3091_vm7 = vcmp.eq.s32.totalorder %v3089_v25, 0 }
 0x599   : > { %v3079_v54 = vadd.f32 1.0, %v3078_v29  ;;  %v3086_v49 = vadd.f32 1.0, %v3085_v40  ;;  %vm3094_vm5 = vcmp.eq.s32.totalorder %v3089_v25, 2  ;;  %v3304_v0 = vand.u32 65535, %v3300_v41 }
 0x59a   : > { %vm3202_vm6 = vcmp.lt.s32.totalorder %v3201_v42, 0  ;;  %v3203_v15 = vsub.s32 0, %v3201_v42  ;;  %v3305_v33 = vshrl.u32 %v3300_v41, 16  ;;  %v3302_v58 = vand.u32 65535, %v6079_v50 }
 0x59b   : > { %v3087_v52 = vmul.f32 %v3086_v49, %v3071_v9  ;;  %v3095_v62 = vxor.u32 2147483648, %v3079_v54  ;;  %v3303_v59 = vshrl.u32 %v6079_v50, 16  ;;  %v3326_v38 = vand.u32 65535, %v3296_v31  ;;  %v6092_v9 = vld [vmem:[%s6506_s13] ss:$0 sm:$0xff] }
 0x59c   : > { %v3204_v8 = vsel %vm3202_vm6, %v3203_v15, %v3201_v42  ;;  %v3327_v24 = vshrl.u32 %v3296_v31, 16  ;;  %v6095_v6 = vadd.f32 %v6092_v9, %v1397_v37  ;;  %v3307_v34 = vmul.u32 %v3305_v33, %v3302_v58 }
 0x59d   : > { %v3092_v63 = vxor.u32 2147483648, %v3087_v52  ;;  %v3205_v14 = vclz %v3204_v8  ;;  %v3096_v13 = vsel %vm3094_vm5, %v3095_v62, %v3087_v52  ;;  %v3308_v10 = vmul.u32 %v3304_v0, %v3303_v59 }
 0x59e   : > { %v3193_v43 = vadd.s32 %v6019_v60, %v6015_v30  ;;  %v3269_v16 = vshrl.u32 %v4246_v44, %v6023_v1  ;;  %v3306_v28 = vmul.u32 %v3304_v0, %v3302_v58  ;;  %v3309_v32 = vmul.u32 %v3305_v33, %v3303_v59 }
 0x59f   : > { %v3093_v21 = vsel %vm3091_vm7, %v3079_v54, %v3092_v63  ;;  %v4146_v23 = vadd.s32 4294967294, %v3205_v14  ;;  %v3310_v39 = vshll.u32 %v3307_v34, 16  ;;  %v3312_v36 = vshll.u32 %v3308_v10, 16 }
 0x5a0   : > { %v3097_v12 = vsel %vm3090_vm4, %v3093_v21, %v3096_v13  ;;  %v3328_v19 = vmul.u32 %v3326_v38, %v3302_v58  ;;  %v3329_v25 = vmul.u32 %v3327_v24, %v3302_v58  ;;  %v3330_v30 = vmul.u32 %v3326_v38, %v3303_v59 }
 0x5a1   : > { %v3098_v4 = vsel %vm3088_vm3, nan, %v3097_v12  ;;  %vm4147_vm8 = vcmp.lt.s32.totalorder %v4146_v23, 0  ;;  %vm3314_vm9 = vc.u32 %v3306_v28, %v3310_v39  ;;  %v3316_v47 = vadd.s32 %v3310_v39, %v3306_v28 }
 0x5a2   : > { %3879 = vst.msk [vmem:[%s4897_s25 + $0x50] sm:$0xff] %vm627_vm0, %v3098_v4  ;;  %v3208_v5 = vsel %vm4147_vm8, 0, %v4146_v23  ;;  %v3311_v40 = vshrl.u32 %v3307_v34, 16  ;;  %v3315_v1 = vsel %vm3314_vm9, 1, %v4252_v53  ;;  %v3331_v2 = vmul.u32 %v3327_v24, %v3303_v59 }
 0x5a3   : > { %v3209_v60 = vsub.s32 32, %v3208_v5  ;;  %v3213_v29 = vsub.s32 4294967266, %v3208_v5  ;;  %v3317_v61 = vadd.s32 %v3315_v1, %v3309_v32  ;;  %vm3318_vm10 = vc.u32 %v3316_v47, %v3312_v36  ;;  %v1400_v32 = vpop.f32.mrf.mxu3 }
 0x5a4   : > { %v3332_v48 = vshll.u32 %v3329_v25, 16  ;;  %v3210_v26 = vshll.u32 %v3201_v42, %v3208_v5  ;;  %v3319_v49 = vsel %vm3318_vm10, 1, %v4252_v53  ;;  %v3334_v41 = vshll.u32 %v3330_v30, 16 }
 0x5a5   : > { %v3211_v11 = vshrl.u32 %v3193_v43, %v3209_v60  ;;  %v3214_v54 = vadd.s32 127, %v3213_v29  ;;  %v3321_v31 = vadd.s32 %v3319_v49, %v3317_v61  ;;  %v3290_v37 = vsel %vm3288_vm14, %v6054_v55, 2102212464 }
 0x5a6   : > { %vm3336_vm11 = vc.u32 %v3328_v19, %v3332_v48  ;;  %v3338_v52 = vadd.s32 %v3332_v48, %v3328_v19  ;;  %v3407_v42 = vand.u32 2147483647, %v6095_v6  ;;  %v3289_v58 = vsel %vm3285_vm15, %v3269_v16, %v6050_v18 }
 0x5a7   : > { %v3212_v62 = vor.u32 %v3211_v11, %v3210_v26  ;;  %v3215_v15 = vshll.u32 %v3214_v54, 23  ;;  %v3337_v0 = vsel %vm3336_vm11, 1, %v4252_v53  ;;  %v3322_v33 = vadd.s32 %v3321_v31, %v3311_v40 }
 0x5a8   : > { %v3339_v63 = vadd.s32 %v3337_v0, %v3331_v2  ;;  %vm3340_vm12 = vc.u32 %v3338_v52, %v3334_v41  ;;  %v3313_v59 = vshrl.u32 %v3308_v10, 16  ;;  %v3223_v38 = vsub.s32 4, %v6057_v22 }
 0x5a9   : > { %v3216_v8 = vor.u32 4788187, %v3215_v15  ;;  %v3341_v14 = vsel %vm3340_vm12, 1, %v4252_v53  ;;  %v3333_v24 = vshrl.u32 %v3329_v25, 16  ;;  %v3410_v55 = vand.u32 2139095040, %v6095_v6 }
 0x5aa   : > { %v3343_v21 = vadd.s32 %v3341_v14, %v3339_v63  ;;  %v3219_v34 = vcvt.s32.f32 %v3212_v62  ;;  %v3291_v12 = vsel %vm3287_vm1, %v6052_v20, %v3290_v37  ;;  %v3323_v43 = vadd.s32 %v3322_v33, %v3313_v59 }
 0x5ab   : > { %v3217_v13 = vand.u32 2147483647, %v3216_v8  ;;  %v3335_v23 = vshrl.u32 %v3330_v30, 16  ;;  %v3411_v28 = vshrl.u32 %v3410_v55, 23  ;;  %v3414_v18 = vand.u32 8388607, %v3407_v42 }
 0x5ac   : > { %v3344_v4 = vadd.s32 %v3343_v21, %v3333_v24  ;;  %v3342_v16 = vadd.s32 %v3338_v52, %v3334_v41  ;;  %vm3101_vm13 = vcmp.lt.s32.totalorder %v5853_v7, 0  ;;  %v3292_v39 = vsel %vm3286_vm2, %v3289_v58, %v3291_v12 }
 0x5ad   : > { %v3220_v10 = vmul.f32 %v3219_v34, %v3217_v13  ;;  %v4151_v19 = vadd.s32 4294967169, %v3411_v28  ;;  %v3224_v20 = vsel %vm3101_vm13, %v3223_v38, %v6057_v22  ;;  %v3415_v47 = vor.u32 8388608, %v3414_v18 }
 0x5ae   : > { %v3345_v36 = vadd.s32 %v3344_v4, %v3335_v23  ;;  %vm3348_vm15 = vc.u32 %v3323_v43, %v3342_v16  ;;  %v6129_v60 = vadd.f32 %v6092_v9, %v1400_v32  ;;  %vm6133_vm14 = vcmp.le.f32.partialorder %v3099_v3, 0.7853982 }
 0x5af   : > { %v3221_v25 = vxor.u32 2147483648, %v3220_v10  ;;  %v3417_v30 = vadd.s32 1, %v4151_v19  ;;  %v3346_v40 = vmul.u32 %v6079_v50, %v3292_v39  ;;  %v3226_v61 = vsel %vm6133_vm14, 0, %v3224_v20 }
 0x5b0   : > { %v3349_v5 = vadd.s32 1, %v3345_v36  ;;  %v6143_v3 = vshll.u32 %v3415_v47, 8  ;;  %v3561_v54 = vand.u32 2147483647, %v6129_v60  ;;  %v3564_v49 = vand.u32 2139095040, %v6129_v60 }
 0x5b1   : > { %v3222_v57 = vsel %vm3101_vm13, %v3221_v25, %v3220_v10  ;;  %vm3418_vm1 = vcmp.gt.s32.totalorder %v3417_v30, 0  ;;  %v6147_v37 = vand.u32 3, %v3226_v61  ;;  %v6151_v33 = vadd.s32 %v3342_v16, %v3323_v43 }
 0x5b2   : > { %v3225_v22 = vsel %vm6133_vm14, %v5853_v7, %v3222_v57  ;;  %v3350_v1 = vsel %vm3348_vm15, %v3349_v5, %v3345_v36  ;;  %v3419_v26 = vsel %vm3418_vm1, %v3417_v30, 0  ;;  %v6154_v63 = vand.u32 65535, %v6143_v3 }
 0x5b3   : > { %v3227_v2 = vmul.f32 %v3225_v22, %v3225_v22  ;;  %v3351_v48 = vadd.s32 %v3350_v1, %v3346_v40  ;;  %v3421_v11 = vand.u32 31, %v3419_v26  ;;  %v3565_v8 = vshrl.u32 %v3564_v49, 23 }
 0x5b4   : > { %v6158_v58 = vand.u32 8388607, %v3561_v54  ;;  %v6161_v24 = vshrl.u32 %v3419_v26, 5  ;;  %vm3248_vm2 = vcmp.eq.s32.totalorder %v6147_v37, 2  ;;  %vm3245_vm3 = vcmp.eq.s32.totalorder %v6147_v37, 0 }
 0x5b5   : > { %v3228_v50 = vmul.f32 -0.001358992, %v3227_v2  ;;  %v3235_v31 = vmul.f32 -0.00019511016, %v3227_v2  ;;  %v3352_v41 = vadd.s32 536870912, %v3351_v48  ;;  %v3422_v52 = vsub.s32 32, %v3421_v11 }
 0x5b6   : > { %v3424_v21 = vshll.u32 %v4246_v44, %v3421_v11  ;;  %v3427_v28 = vshll.u32 %v4247_v46, %v3421_v11  ;;  %v3430_v18 = vshll.u32 %v4248_v51, %v3421_v11  ;;  %v3433_v10 = vshll.u32 %v4249_v17, %v3421_v11 }
 0x5b7   : > { %v3229_v62 = vadd.f32 0.041655596, %v3228_v50  ;;  %v3236_v15 = vadd.f32 0.008332121, %v3235_v31  ;;  %v6149_v0 = vshrl.u32 %v3352_v41, 30  ;;  %v3425_v55 = vshrl.u32 %v4247_v46, %v3422_v52 }
 0x5b8   : > { %v3428_v13 = vshrl.u32 %v4248_v51, %v3422_v52  ;;  %v3434_v34 = vshrl.u32 %v4250_v56, %v3422_v52  ;;  %v3431_v4 = vshrl.u32 %v4249_v17, %v3422_v52  ;;  %v3437_v16 = vshrl.u32 %v4251_v27, %v3422_v52 }
 0x5b9   : > { %v3230_v59 = vmul.f32 %v3229_v62, %v3227_v2  ;;  %v3237_v14 = vmul.f32 %v3236_v15, %v3227_v2  ;;  %v3354_v38 = vshll.u32 %v6149_v0, 30  ;;  %vm3244_vm4 = vcmp.lt.s32.totalorder %v6147_v37, 2 }
 0x5ba   : > { %vm3242_vm7 = vweird.f32 %v5853_v7  ;;  %v3426_v19 = vor.u32 %v3425_v55, %v3424_v21  ;;  %v3429_v25 = vor.u32 %v3428_v13, %v3427_v28  ;;  %v3435_v20 = vor.u32 %v3434_v34, %v3433_v10 }
 0x5bb   : > { %v3231_v12 = vadd.f32 -0.4999988, %v3230_v59  ;;  %v3238_v43 = vadd.f32 -0.16666654, %v3237_v14  ;;  %v6168_v23 = vsub.s32 %v3351_v48, %v3354_v38  ;;  %v3436_v5 = vshll.u32 %v4250_v56, %v3421_v11 }
 0x5bc   : > { %v3432_v57 = vor.u32 %v3431_v4, %v3430_v18  ;;  %v3457_v61 = vshrl.u32 %v6143_v3, 16  ;;  %vm3439_vm5 = vcmp.lt.s32.totalorder %v6161_v24, 1  ;;  %vm3442_vm8 = vcmp.lt.s32.totalorder %v6161_v24, 4 }
 0x5bd   : > { %v3232_v32 = vmul.f32 %v3231_v12, %v3227_v2  ;;  %v3239_v39 = vmul.f32 %v3238_v43, %v3227_v2  ;;  %vm3356_vm6 = vcmp.lt.s32.totalorder %v6168_v23, 0  ;;  %v3357_v36 = vsub.s32 0, %v6168_v23 }
 0x5be   : > { %v3438_v1 = vor.u32 %v3437_v16, %v3436_v5  ;;  %v4154_v2 = vadd.s32 4294967169, %v3565_v8  ;;  %vm3441_vm9 = vcmp.lt.s32.totalorder %v6161_v24, 3  ;;  %v3447_v11 = vsel %vm3439_vm5, %v3426_v19, %v3429_v25 }
 0x5bf   : > { %v3233_v47 = vadd.f32 1.0, %v3232_v32  ;;  %v3240_v30 = vadd.f32 1.0, %v3239_v39  ;;  %v3358_v29 = vsel %vm3356_vm6, %v3357_v36, %v6168_v23  ;;  %v3448_v50 = vsel %vm3442_vm8, %v3435_v20, 920167782 }
 0x5c0   : > { %v3359_v40 = vclz %v3358_v29  ;;  %v3423_v41 = vshrl.u32 %v4246_v44, %v3422_v52  ;;  %vm3440_vm10 = vcmp.lt.s32.totalorder %v6161_v24, 2  ;;  %v3451_v8 = vsel %vm3439_vm5, %v3429_v25, %v3432_v57 }
 0x5c1   : > { %v3241_v48 = vmul.f32 %v3240_v30, %v3225_v22  ;;  %v3249_v26 = vxor.u32 2147483648, %v3233_v47  ;;  %v3449_v22 = vsel %vm3441_vm9, %v3432_v57, %v3448_v50  ;;  %v3452_v14 = vsel %vm3442_vm8, %v3438_v1, 1326507024 }
 0x5c2   : > { %v4149_v49 = vadd.s32 4294967294, %v3359_v40  ;;  %v3450_v15 = vsel %vm3440_vm10, %v3447_v11, %v3449_v22  ;;  %v3444_v34 = vsel %vm3442_vm8, %v3432_v57, 2102212464  ;;  %v3453_v4 = vsel %vm3441_vm9, %v3435_v20, %v3452_v14 }
 0x5c3   : > { %v3246_v31 = vxor.u32 2147483648, %v3241_v48  ;;  %v3250_v62 = vsel %vm3248_vm2, %v3249_v26, %v3241_v48  ;;  %v3480_v38 = vand.u32 65535, %v3450_v15  ;;  %v3481_v28 = vshrl.u32 %v3450_v15, 16 }
 0x5c4   : > { %vm4150_vm11 = vcmp.lt.s32.totalorder %v4149_v49, 0  ;;  %v3454_v10 = vsel %vm3440_vm10, %v3451_v8, %v3453_v4  ;;  %v3571_v36 = vadd.s32 1, %v4154_v2  ;;  %vm3255_vm12 = vcmp.lt.s32.totalorder %v5926_v45, 0 }
 0x5c5   : > { %v3247_v59 = vsel %vm3245_vm3, %v3233_v47, %v3246_v31  ;;  %v3362_v52 = vsel %vm4150_vm11, 0, %v4149_v49  ;;  %v3484_v16 = vmul.u32 %v3480_v38, %v3457_v61  ;;  %v3458_v32 = vand.u32 65535, %v3454_v10 }
 0x5c6   : > { %v3251_v21 = vsel %vm3244_vm4, %v3247_v59, %v3250_v62  ;;  %v3363_v55 = vsub.s32 32, %v3362_v52  ;;  %v3367_v13 = vsub.s32 4294967266, %v3362_v52  ;;  %v3364_v43 = vshll.u32 %v6168_v23, %v3362_v52 }
 0x5c7   : > { %v3252_v12 = vsel %vm3242_vm7, nan, %v3251_v21  ;;  %v3459_v39 = vshrl.u32 %v3454_v10, 16  ;;  %v3483_v7 = vmul.u32 %v3481_v28, %v6154_v63  ;;  %v3377_v20 = vsub.s32 4, %v6149_v0 }
 0x5c8   : > { %3880 = vst.msk [vmem:[%s4897_s25 + $0x58] sm:$0xff] %vm627_vm0, %v3252_v12  ;;  %v3365_v18 = vshrl.u32 %v6151_v33, %v3363_v55  ;;  %v3368_v37 = vadd.s32 127, %v3367_v13  ;;  %v3443_v47 = vsel %vm3439_vm5, %v3423_v41, %v3426_v19  ;;  %v3445_v33 = vsel %vm3441_vm9, %v3429_v25, %v3444_v34 }
 0x5c9   : > { %v3461_v30 = vmul.u32 %v3459_v39, %v6154_v63  ;;  %v3462_v29 = vmul.u32 %v3458_v32, %v3457_v61  ;;  %v3482_v57 = vmul.u32 %v3480_v38, %v6154_v63  ;;  %vm6229_vm13 = vcmp.le.f32.partialorder %v3253_v35, 0.7853982 }
 0x5ca   : > { %v3366_v23 = vor.u32 %v3365_v18, %v3364_v43  ;;  %v3369_v5 = vshll.u32 %v3368_v37, 23  ;;  %v3485_v2 = vmul.u32 %v3481_v28, %v3457_v61  ;;  %v3486_v48 = vshll.u32 %v3483_v7, 16 }
 0x5cb   : > { %v3488_v26 = vshll.u32 %v3484_v16, 16  ;;  %v3460_v19 = vmul.u32 %v3458_v32, %v6154_v63  ;;  %v3463_v11 = vmul.u32 %v3459_v39, %v3457_v61  ;;  %v3464_v25 = vshll.u32 %v3461_v30, 16 }
 0x5cc   : > { %v3370_v1 = vor.u32 4788187, %v3369_v5  ;;  %v3373_v49 = vcvt.s32.f32 %v3366_v23  ;;  %v3466_v31 = vshll.u32 %v3462_v29, 16  ;;  %vm3490_vm15 = vc.u32 %v3482_v57, %v3486_v48 }
 0x5cd   : > { %v3492_v41 = vadd.s32 %v3486_v48, %v3482_v57  ;;  %vm3468_vm14 = vc.u32 %v3460_v19, %v3464_v25  ;;  %v3470_v22 = vadd.s32 %v3464_v25, %v3460_v19  ;;  %v3491_v35 = vsel %vm3490_vm15, 1, %v4252_v53 }
 0x5ce   : > { %v3371_v50 = vand.u32 2147483647, %v3370_v1  ;;  %vm3572_vm1 = vcmp.gt.s32.totalorder %v3571_v36, 0  ;;  %v3469_v15 = vsel %vm3468_vm14, 1, %v4252_v53  ;;  %v3493_v8 = vadd.s32 %v3491_v35, %v3485_v2 }
 0x5cf   : > { %vm3494_vm2 = vc.u32 %v3492_v41, %v3488_v26  ;;  %v3471_v59 = vadd.s32 %v3469_v15, %v3463_v11  ;;  %vm3472_vm3 = vc.u32 %v3470_v22, %v3466_v31  ;;  %v3487_v52 = vshrl.u32 %v3483_v7, 16 }
 0x5d0   : > { %v3374_v62 = vmul.f32 %v3373_v49, %v3371_v50  ;;  %v3495_v63 = vsel %vm3494_vm2, 1, %v4252_v53  ;;  %v3473_v14 = vsel %vm3472_vm3, 1, %v4252_v53  ;;  %v3573_v21 = vsel %vm3572_vm1, %v3571_v36, 0 }
 0x5d1   : > { %v3497_v38 = vadd.s32 %v3495_v63, %v3493_v8  ;;  %v3378_v55 = vsel %vm3255_vm12, %v3377_v20, %v6149_v0  ;;  %v3465_v13 = vshrl.u32 %v3461_v30, 16  ;;  %v3475_v34 = vadd.s32 %v3473_v14, %v3471_v59 }
 0x5d2   : > { %v3375_v61 = vxor.u32 2147483648, %v3374_v62  ;;  %v3575_v12 = vand.u32 31, %v3573_v21  ;;  %v3446_v4 = vsel %vm3440_vm10, %v3443_v47, %v3445_v33  ;;  %v3489_v28 = vshrl.u32 %v3484_v16, 16 }
 0x5d3   : > { %v3498_v18 = vadd.s32 %v3497_v38, %v3487_v52  ;;  %v3467_v10 = vshrl.u32 %v3462_v29, 16  ;;  %v3476_v32 = vadd.s32 %v3475_v34, %v3465_v13  ;;  %v3380_v36 = vsel %vm6229_vm13, 0, %v3378_v55 }
 0x5d4   : > { %v3376_v43 = vsel %vm3255_vm12, %v3375_v61, %v3374_v62  ;;  %v6248_v39 = vsub.s32 32, %v3575_v12  ;;  %v6254_v5 = vadd.s32 %v3492_v41, %v3488_v26  ;;  %v3569_v24 = vor.u32 8388608, %v6158_v58 }
 0x5d5   : > { %v3379_v37 = vsel %vm6229_vm13, %v5926_v45, %v3376_v43  ;;  %v3499_v7 = vadd.s32 %v3498_v18, %v3489_v28  ;;  %v6252_v23 = vadd.s32 %v3476_v32, %v3467_v10  ;;  %v3500_v47 = vmul.u32 %v6143_v3, %v3446_v4 }
 0x5d6   : > { %v3381_v0 = vmul.f32 %v3379_v37, %v3379_v37  ;;  %v6260_v30 = vshrl.u32 %v3573_v21, 5  ;;  %v3581_v29 = vshll.u32 %v4247_v46, %v3575_v12  ;;  %v3582_v57 = vshrl.u32 %v4248_v51, %v6248_v39 }
 0x5d7   : > { %v3503_v33 = vadd.s32 1, %v3499_v7  ;;  %vm3502_vm4 = vc.u32 %v6252_v23, %v6254_v5  ;;  %v3585_v58 = vshrl.u32 %v4249_v17, %v6248_v39  ;;  %v3579_v3 = vshrl.u32 %v4247_v46, %v6248_v39 }
 0x5d8   : > { %v3382_v16 = vmul.f32 -0.001358992, %v3381_v0  ;;  %v3389_v20 = vmul.f32 -0.00019511016, %v3381_v0  ;;  %v3587_v26 = vshll.u32 %v4249_v17, %v3575_v12  ;;  %v3588_v49 = vshrl.u32 %v4250_v56, %v6248_v39 }
 0x5d9   : > { %v3504_v2 = vsel %vm3502_vm4, %v3503_v33, %v3499_v7  ;;  %v3584_v25 = vshll.u32 %v4248_v51, %v3575_v12  ;;  %v3591_v50 = vshrl.u32 %v4251_v27, %v6248_v39  ;;  %v3578_v41 = vshll.u32 %v4246_v44, %v3575_v12 }
 0x5da   : > { %v3383_v40 = vadd.f32 0.041655596, %v3382_v16  ;;  %v3390_v1 = vadd.f32 0.008332121, %v3389_v20  ;;  %v3505_v48 = vadd.s32 %v3504_v2, %v3500_v47  ;;  %v3589_v22 = vor.u32 %v3588_v49, %v3587_v26 }
 0x5db   : > { %v3590_v35 = vshll.u32 %v4250_v56, %v3575_v12  ;;  %v6277_v8 = vor.u32 %v3582_v57, %v3581_v29  ;;  %v6279_v59 = vor.u32 %v3585_v58, %v3584_v25  ;;  %v6283_v63 = vor.u32 %v3579_v3, %v3578_v41 }
 0x5dc   : > { %v3384_v19 = vmul.f32 %v3383_v40, %v3381_v0  ;;  %v3391_v11 = vmul.f32 %v3390_v1, %v3381_v0  ;;  %v3506_v31 = vadd.s32 536870912, %v3505_v48  ;;  %vm3596_vm6 = vcmp.lt.s32.totalorder %v6260_v30, 4 }
 0x5dd   : > { %v3592_v61 = vor.u32 %v3591_v50, %v3590_v35  ;;  %v3602_v21 = vsel %vm3596_vm6, %v3589_v22, 920167782  ;;  %vm3396_vm7 = vweird.f32 %v5926_v45  ;;  %v3397_v55 = vand.u32 3, %v3380_v36 }
 0x5de   : > { %v3385_v62 = vadd.f32 -0.4999988, %v3384_v19  ;;  %v3392_v15 = vadd.f32 -0.16666654, %v3391_v11  ;;  %v6281_v52 = vshrl.u32 %v3506_v31, 30  ;;  %vm3593_vm5 = vcmp.lt.s32.totalorder %v6260_v30, 1 }
 0x5df   : > { %v6291_v34 = vshll.u32 %v3569_v24, 8  ;;  %vm3595_vm8 = vcmp.lt.s32.totalorder %v6260_v30, 3  ;;  %v3605_v4 = vsel %vm3593_vm5, %v6277_v8, %v6279_v59  ;;  %v3601_v18 = vsel %vm3593_vm5, %v6283_v63, %v6277_v8 }
 0x5e0   : > { %v3386_v14 = vmul.f32 %v3385_v62, %v3381_v0  ;;  %v3393_v38 = vmul.f32 %v3392_v15, %v3381_v0  ;;  %v3508_v13 = vshll.u32 %v6281_v52, 30  ;;  %v3603_v10 = vsel %vm3595_vm8, %v6279_v59, %v3602_v21 }
 0x5e1   : > { %v3606_v32 = vsel %vm3596_vm6, %v3592_v61, 1326507024  ;;  %vm3594_vm9 = vcmp.lt.s32.totalorder %v6260_v30, 2  ;;  %vm3398_vm10 = vcmp.lt.s32.totalorder %v3397_v55, 2  ;;  %vm3399_vm12 = vcmp.eq.s32.totalorder %v3397_v55, 0 }
 0x5e2   : > { %v3387_v12 = vadd.f32 1.0, %v3386_v14  ;;  %v3394_v43 = vadd.f32 1.0, %v3393_v38  ;;  %v3509_v28 = vsub.s32 %v3505_v48, %v3508_v13  ;;  %v3607_v36 = vsel %vm3595_vm8, %v3589_v22, %v3606_v32  ;;  %v1402_v48 = vpop.f32.mrf.mxu3 }
 0x5e3   : > { %v3608_v16 = vsel %vm3594_vm9, %v3605_v4, %v3607_v36  ;;  %v3604_v47 = vsel %vm3594_vm9, %v3601_v18, %v3603_v10  ;;  %vm3402_vm13 = vcmp.eq.s32.totalorder %v3397_v55, 2  ;;  %v3610_v29 = vand.u32 65535, %v6291_v34 }
 0x5e4   : > { %v3395_v0 = vmul.f32 %v3394_v43, %v3379_v37  ;;  %v3403_v7 = vxor.u32 2147483648, %v3387_v12  ;;  %vm3510_vm11 = vcmp.lt.s32.totalorder %v3509_v28, 0  ;;  %v3511_v24 = vsub.s32 0, %v3509_v28 }
 0x5e5   : > { %v3612_v33 = vand.u32 65535, %v3608_v16  ;;  %v3611_v57 = vshrl.u32 %v6291_v34, 16  ;;  %v3613_v58 = vshrl.u32 %v3608_v16, 16  ;;  %v3634_v49 = vand.u32 65535, %v3604_v47 }
 0x5e6   : > { %v3400_v20 = vxor.u32 2147483648, %v3395_v0  ;;  %v3512_v37 = vsel %vm3510_vm11, %v3511_v24, %v3509_v28  ;;  %v3404_v1 = vsel %vm3402_vm13, %v3403_v7, %v3395_v0  ;;  %v3635_v19 = vshrl.u32 %v3604_v47, 16 }
 0x5e7   : > { %v3513_v2 = vclz %v3512_v37  ;;  %v3616_v26 = vmul.u32 %v3612_v33, %v3611_v57  ;;  %v3615_v50 = vmul.u32 %v3613_v58, %v3610_v29  ;;  %v3501_v31 = vadd.s32 %v6254_v5, %v6252_v23 }
 0x5e8   : > { %v3401_v40 = vsel %vm3399_vm12, %v3387_v12, %v3400_v20  ;;  %v3637_v41 = vmul.u32 %v3635_v19, %v3610_v29  ;;  %v6324_v22 = vadd.f32 %v6092_v9, %v1402_v48  ;;  %v3614_v35 = vmul.u32 %v3612_v33, %v3610_v29 }
 0x5e9   : > { %v3405_v3 = vsel %vm3398_vm10, %v3401_v40, %v3404_v1  ;;  %v4152_v25 = vadd.s32 4294967294, %v3513_v2  ;;  %v3617_v62 = vmul.u32 %v3613_v58, %v3611_v57  ;;  %v3618_v15 = vshll.u32 %v3615_v50, 16 }
 0x5ea   : > { %v3406_v11 = vsel %vm3396_vm7, nan, %v3405_v3  ;;  %v3620_v14 = vshll.u32 %v3616_v26, 16  ;;  %v3638_v38 = vmul.u32 %v3634_v49, %v3611_v57  ;;  %v3640_v45 = vshll.u32 %v3637_v41, 16 }
 0x5eb   : > { %3881 = vst.msk [vmem:[%s4897_s25 + $0x60] sm:$0xff] %vm627_vm0, %v3406_v11  ;;  %vm4153_vm15 = vcmp.lt.s32.totalorder %v4152_v25, 0  ;;  %vm3622_vm14 = vc.u32 %v3614_v35, %v3618_v15  ;;  %v3636_v13 = vmul.u32 %v3634_v49, %v3610_v29  ;;  %v3624_v23 = vadd.s32 %v3618_v15, %v3614_v35 }
 0x5ec   : > { %v3516_v61 = vsel %vm4153_vm15, 0, %v4152_v25  ;;  %v3623_v43 = vsel %vm3622_vm14, 1, %v4252_v53  ;;  %v3639_v5 = vmul.u32 %v3635_v19, %v3611_v57  ;;  %v3642_v10 = vshll.u32 %v3638_v38, 16 }
 0x5ed   : > { %v3517_v21 = vsub.s32 32, %v3516_v61  ;;  %v3521_v55 = vsub.s32 4294967266, %v3516_v61  ;;  %v3518_v12 = vshll.u32 %v3509_v28, %v3516_v61  ;;  %v3625_v18 = vadd.s32 %v3623_v43, %v3617_v62 }
 0x5ee   : > { %vm3644_vm1 = vc.u32 %v3636_v13, %v3640_v45  ;;  %vm3626_vm2 = vc.u32 %v3624_v23, %v3620_v14  ;;  %v3646_v0 = vadd.s32 %v3640_v45, %v3636_v13  ;;  %v3598_v28 = vsel %vm3596_vm6, %v6279_v59, 2102212464 }
 0x5ef   : > { %v3519_v4 = vshrl.u32 %v3501_v31, %v3517_v21  ;;  %v3522_v9 = vadd.s32 127, %v3521_v55  ;;  %v3645_v32 = vsel %vm3644_vm1, 1, %v4252_v53  ;;  %v3627_v24 = vsel %vm3626_vm2, 1, %v4252_v53 }
 0x5f0   : > { %v3647_v16 = vadd.s32 %v3645_v32, %v3639_v5  ;;  %v3619_v20 = vshrl.u32 %v3615_v50, 16  ;;  %v3629_v47 = vadd.s32 %v3627_v24, %v3625_v18  ;;  %vm3648_vm3 = vc.u32 %v3646_v0, %v3642_v10 }
 0x5f1   : > { %v3520_v7 = vor.u32 %v3519_v4, %v3518_v12  ;;  %v3523_v36 = vshll.u32 %v3522_v9, 23  ;;  %v3577_v37 = vshrl.u32 %v4246_v44, %v6248_v39  ;;  %v3621_v29 = vshrl.u32 %v3616_v26, 16 }
 0x5f2   : > { %v3649_v57 = vsel %vm3648_vm3, 1, %v4252_v53  ;;  %v3630_v40 = vadd.s32 %v3629_v47, %v3619_v20  ;;  %v3641_v1 = vshrl.u32 %v3637_v41, 16  ;;  %v3718_v58 = vand.u32 2139095040, %v6324_v22 }
 0x5f3   : > { %v3524_v33 = vor.u32 4788187, %v3523_v36  ;;  %v3651_v2 = vadd.s32 %v3649_v57, %v3647_v16  ;;  %v3527_v3 = vcvt.s32.f32 %v3520_v7  ;;  %v3597_v59 = vsel %vm3593_vm5, %v3577_v37, %v6283_v63 }
 0x5f4   : > { %v3599_v49 = vsel %vm3595_vm8, %v6277_v8, %v3598_v28  ;;  %v6342_v19 = vadd.s32 %v3630_v40, %v3621_v29  ;;  %v3643_v39 = vshrl.u32 %v3638_v38, 16  ;;  %v3719_v11 = vshrl.u32 %v3718_v58, 23 }
 0x5f5   : > { %v3525_v48 = vand.u32 2147483647, %v3524_v33  ;;  %v3652_v26 = vadd.s32 %v3651_v2, %v3641_v1  ;;  %v6344_v50 = vadd.s32 %v3646_v0, %v3642_v10  ;;  %v3531_v31 = vsub.s32 4, %v6281_v52 }
 0x5f6   : > { %v3600_v41 = vsel %vm3594_vm9, %v3597_v59, %v3599_v49  ;;  %v4157_v62 = vadd.s32 4294967169, %v3719_v11  ;;  %vm3409_vm6 = vcmp.lt.s32.totalorder %v6095_v6, 0  ;;  %v3715_v15 = vand.u32 2147483647, %v6324_v22 }
 0x5f7   : > { %v3528_v25 = vmul.f32 %v3527_v3, %v3525_v48  ;;  %v3653_v35 = vadd.s32 %v3652_v26, %v3643_v39  ;;  %vm3656_vm4 = vc.u32 %v6342_v19, %v6344_v50  ;;  %vm6355_vm7 = vcmp.le.f32.partialorder %v3407_v42, 0.7853982 }
 0x5f8   : > { %v3725_v61 = vadd.s32 1, %v4157_v62  ;;  %v3654_v38 = vmul.u32 %v6291_v34, %v3600_v41  ;;  %v3532_v45 = vsel %vm3409_vm6, %v3531_v31, %v6281_v52  ;;  %v3722_v42 = vand.u32 8388607, %v3715_v15 }
 0x5f9   : > { %v3529_v63 = vxor.u32 2147483648, %v3528_v25  ;;  %v3657_v8 = vadd.s32 1, %v3653_v35  ;;  %v3534_v5 = vsel %vm6355_vm7, 0, %v3532_v45  ;;  %vm3550_vm11 = vweird.f32 %v6095_v6 }
 0x5fa   : > { %vm3726_vm5 = vcmp.gt.s32.totalorder %v3725_v61, 0  ;;  %v3551_v0 = vand.u32 3, %v3534_v5  ;;  %v3723_v7 = vor.u32 8388608, %v3722_v42  ;;  %vm3563_vm3 = vcmp.lt.s32.totalorder %v6129_v60, 0 }
 0x5fb   : > { %v3530_v30 = vsel %vm3409_vm6, %v3529_v63, %v3528_v25  ;;  %v3658_v55 = vsel %vm3656_vm4, %v3657_v8, %v3653_v35  ;;  %v3727_v43 = vsel %vm3726_vm5, %v3725_v61, 0 }
 0x5fc   : > { %v3533_v21 = vsel %vm6355_vm7, %v6095_v6, %v3530_v30  ;;  %v3659_v12 = vadd.s32 %v3658_v55, %v3654_v38  ;;  %v3729_v23 = vand.u32 31, %v3727_v43  ;;  %v6373_v28 = vshrl.u32 %v3727_v43, 5 }
 0x5fd   : > { %v3535_v13 = vmul.f32 %v3533_v21, %v3533_v21  ;;  %vm3553_vm8 = vcmp.eq.s32.totalorder %v3551_v0, 0  ;;  %vm3552_vm9 = vcmp.lt.s32.totalorder %v3551_v0, 2  ;;  %vm3556_vm12 = vcmp.eq.s32.totalorder %v3551_v0, 2 }
 0x5fe   : > { %v3660_v9 = vadd.s32 536870912, %v3659_v12  ;;  %v6368_v52 = vsub.s32 32, %v3729_v23  ;;  %v3732_v20 = vshll.u32 %v4246_v44, %v3729_v23  ;;  %v3735_v2 = vshll.u32 %v4247_v46, %v3729_v23 }
 0x5ff   : > { %v3536_v4 = vmul.f32 -0.001358992, %v3535_v13  ;;  %v3543_v34 = vmul.f32 -0.00019511016, %v3535_v13  ;;  %v3738_v58 = vshll.u32 %v4248_v51, %v3729_v23  ;;  %v3741_v48 = vshll.u32 %v4249_v17, %v3729_v23 }
 0x600   : > { %v6370_v32 = vshrl.u32 %v3660_v9, 30  ;;  %v3733_v47 = vshrl.u32 %v4247_v46, %v6368_v52  ;;  %v3736_v33 = vshrl.u32 %v4248_v51, %v6368_v52  ;;  %v3742_v37 = vshrl.u32 %v4250_v56, %v6368_v52 }
 0x601   : > { %v3537_v18 = vadd.f32 0.041655596, %v3536_v4  ;;  %v3544_v10 = vadd.f32 0.008332121, %v3543_v34  ;;  %v3739_v1 = vshrl.u32 %v4249_v17, %v6368_v52  ;;  %v3745_v3 = vshrl.u32 %v4251_v27, %v6368_v52 }
 0x602   : > { %v3662_v16 = vshll.u32 %v6370_v32, 30  ;;  %v6394_v26 = vor.u32 %v3733_v47, %v3732_v20  ;;  %v6396_v11 = vor.u32 %v3736_v33, %v3735_v2  ;;  %v3743_v46 = vor.u32 %v3742_v37, %v3741_v48 }
 0x603   : > { %v3538_v36 = vmul.f32 %v3537_v18, %v3535_v13  ;;  %v3545_v24 = vmul.f32 %v3544_v10, %v3535_v13  ;;  %v3744_v51 = vshll.u32 %v4250_v56, %v3729_v23  ;;  %v3740_v31 = vor.u32 %v3739_v1, %v3738_v58 }
 0x604   : > { %v6382_v40 = vsub.s32 %v3659_v12, %v3662_v16  ;;  %v6400_v62 = vshll.u32 %v3723_v7, 8  ;;  %vm3747_vm13 = vcmp.lt.s32.totalorder %v6373_v28, 1  ;;  %vm3750_vm15 = vcmp.lt.s32.totalorder %v6373_v28, 4 }
 0x605   : > { %v3539_v29 = vadd.f32 -0.4999988, %v3538_v36  ;;  %v3546_v57 = vadd.f32 -0.16666654, %v3545_v24  ;;  %v3746_v35 = vor.u32 %v3745_v3, %v3744_v51  ;;  %vm3749_vm14 = vcmp.lt.s32.totalorder %v6373_v28, 3 }
 0x606   : > { %vm3664_vm10 = vcmp.lt.s32.totalorder %v6382_v40, 0  ;;  %v3665_v39 = vsub.s32 0, %v6382_v40  ;;  %v3755_v56 = vsel %vm3747_vm13, %v6394_v26, %v6396_v11  ;;  %v3756_v14 = vsel %vm3750_vm15, %v3743_v46, 920167782 }
 0x607   : > { %v3540_v59 = vmul.f32 %v3539_v29, %v3535_v13  ;;  %v3547_v49 = vmul.f32 %v3546_v57, %v3535_v13  ;;  %v3655_v38 = vadd.s32 %v6344_v50, %v6342_v19  ;;  %vm3748_vm1 = vcmp.lt.s32.totalorder %v6373_v28, 2 }
 0x608   : > { %v3666_v27 = vsel %vm3664_vm10, %v3665_v39, %v6382_v40  ;;  %v3757_v45 = vsel %vm3749_vm14, %v3740_v31, %v3756_v14  ;;  %v3759_v13 = vsel %vm3747_vm13, %v6396_v11, %v3740_v31  ;;  %v3760_v19 = vsel %vm3750_vm15, %v3746_v35, 1326507024 }
 0x609   : > { %v3541_v17 = vadd.f32 1.0, %v3540_v59  ;;  %v3548_v25 = vadd.f32 1.0, %v3547_v49  ;;  %v3667_v41 = vclz %v3666_v27  ;;  %v3758_v55 = vsel %vm3748_vm1, %v3755_v56, %v3757_v45 }
 0x60a   : > { %v3788_v50 = vand.u32 65535, %v3758_v55  ;;  %v3764_v4 = vand.u32 65535, %v6400_v62  ;;  %v3761_v9 = vsel %vm3749_vm14, %v3743_v46, %v3760_v19  ;;  %v3765_v18 = vshrl.u32 %v6400_v62, 16 }
 0x60b   : > { %v3549_v63 = vmul.f32 %v3548_v25, %v3533_v21  ;;  %v3557_v8 = vxor.u32 2147483648, %v3541_v17  ;;  %v4155_v61 = vadd.s32 4294967294, %v3667_v41  ;;  %v3789_v10 = vshrl.u32 %v3758_v55, 16 }
 0x60c   : > { %v3762_v24 = vsel %vm3748_vm1, %v3759_v13, %v3761_v9  ;;  %v3792_v6 = vmul.u32 %v3788_v50, %v3765_v18  ;;  %v3752_v29 = vsel %vm3750_vm15, %v3740_v31, 2102212464  ;;  %vm3704_vm15 = vweird.f32 %v6129_v60 }
 0x60d   : > { %v3554_v30 = vxor.u32 2147483648, %v3549_v63  ;;  %v3558_v21 = vsel %vm3556_vm12, %v3557_v8, %v3549_v63  ;;  %vm4156_vm2 = vcmp.lt.s32.totalorder %v4155_v61, 0  ;;  %v3766_v16 = vand.u32 65535, %v3762_v24 }
 0x60e   : > { %v3670_v43 = vsel %vm4156_vm2, 0, %v4155_v61  ;;  %v3767_v20 = vshrl.u32 %v3762_v24, 16  ;;  %v3791_v47 = vmul.u32 %v3789_v10, %v3764_v4  ;;  %v3793_v58 = vmul.u32 %v3789_v10, %v3765_v18 }
 0x60f   : > { %v3555_v12 = vsel %vm3553_vm8, %v3541_v17, %v3554_v30  ;;  %v3671_v23 = vsub.s32 32, %v3670_v43  ;;  %v3675_v5 = vsub.s32 4294967266, %v3670_v43  ;;  %v3672_v7 = vshll.u32 %v6382_v40, %v3670_v43 }
 0x610   : > { %v3559_v42 = vsel %vm3552_vm9, %v3555_v12, %v3558_v21  ;;  %v3769_v57 = vmul.u32 %v3767_v20, %v3764_v4  ;;  %v3770_v1 = vmul.u32 %v3766_v16, %v3765_v18  ;;  %v3790_v40 = vmul.u32 %v3788_v50, %v3764_v4 }
 0x611   : > { %v3560_v34 = vsel %vm3550_vm11, nan, %v3559_v42  ;;  %v3673_v36 = vshrl.u32 %v3655_v38, %v3671_v23  ;;  %v3676_v0 = vadd.s32 127, %v3675_v5  ;;  %v3794_v48 = vshll.u32 %v3791_v47, 16 }
 0x612   : > { %3882 = vst.msk [vmem:[%s4897_s25 + $0x68] sm:$0xff] %vm627_vm0, %v3560_v34  ;;  %v3768_v3 = vmul.u32 %v3766_v16, %v3764_v4  ;;  %v3771_v59 = vmul.u32 %v3767_v20, %v3765_v18  ;;  %v3772_v49 = vshll.u32 %v3769_v57, 16  ;;  %v3796_v39 = vshll.u32 %v3792_v6, 16 }
 0x613   : > { %v3674_v33 = vor.u32 %v3673_v36, %v3672_v7  ;;  %v3677_v37 = vshll.u32 %v3676_v0, 23  ;;  %vm3798_vm4 = vc.u32 %v3790_v40, %v3794_v48  ;;  %v3800_v17 = vadd.s32 %v3794_v48, %v3790_v40 }
 0x614   : > { %v3774_v25 = vshll.u32 %v3770_v1, 16  ;;  %vm3776_vm6 = vc.u32 %v3768_v3, %v3772_v49  ;;  %v3778_v27 = vadd.s32 %v3772_v49, %v3768_v3  ;;  %v3799_v41 = vsel %vm3798_vm4, 1, %v4252_v53 }
 0x615   : > { %v3678_v2 = vor.u32 4788187, %v3677_v37  ;;  %v3681_v51 = vcvt.s32.f32 %v3674_v33  ;;  %v3777_v35 = vsel %vm3776_vm6, 1, %v4252_v53  ;;  %v3801_v63 = vadd.s32 %v3799_v41, %v3793_v58 }
 0x616   : > { %vm3802_vm7 = vc.u32 %v3800_v17, %v3796_v39  ;;  %v3731_v8 = vshrl.u32 %v4246_v44, %v6368_v52  ;;  %v3779_v61 = vadd.s32 %v3777_v35, %v3771_v59  ;;  %vm3780_vm5 = vc.u32 %v3778_v27, %v3774_v25 }
 0x617   : > { %v3679_v46 = vand.u32 2147483647, %v3678_v2  ;;  %v3803_v56 = vsel %vm3802_vm7, 1, %v4252_v53  ;;  %v3781_v30 = vsel %vm3780_vm5, 1, %v4252_v53  ;;  %v3795_v38 = vshrl.u32 %v3791_v47, 16 }
 0x618   : > { %v3805_v45 = vadd.s32 %v3803_v56, %v3801_v63  ;;  %v3751_v21 = vsel %vm3747_vm13, %v3731_v8, %v6394_v26  ;;  %v3753_v55 = vsel %vm3749_vm14, %v6396_v11, %v3752_v29  ;;  %v3773_v13 = vshrl.u32 %v3769_v57, 16 }
 0x619   : > { %v3682_v31 = vmul.f32 %v3681_v51, %v3679_v46  ;;  %v3783_v12 = vadd.s32 %v3781_v30, %v3779_v61  ;;  %vm6454_vm8 = vcmp.le.f32.partialorder %v3561_v54, 0.7853982  ;;  %v3797_v52 = vshrl.u32 %v3792_v6, 16 }
 0x61a   : > { %v3806_v43 = vadd.s32 %v3805_v45, %v3795_v38  ;;  %v3775_v19 = vshrl.u32 %v3770_v1, 16  ;;  %v3754_v42 = vsel %vm3748_vm1, %v3751_v21, %v3753_v55  ;;  %v3804_v5 = vadd.s32 %v3800_v17, %v3796_v39 }
 0x61b   : > { %v3683_v14 = vxor.u32 2147483648, %v3682_v31  ;;  %v3784_v50 = vadd.s32 %v3783_v12, %v3773_v13  ;;  %v3685_v18 = vsub.s32 4, %v6370_v32  ;;  %v3808_v10 = vmul.u32 %v6400_v62, %v3754_v42 }
 0x61c   : > { %v3807_v23 = vadd.s32 %v3806_v43, %v3797_v52  ;;  %vm3717_vm1 = vcmp.lt.s32.totalorder %v6324_v22, 0  ;;  %vm6478_vm2 = vcmp.le.f32.partialorder %v3715_v15, 0.7853982  ;;  %vm3858_vm7 = vweird.f32 %v6324_v22 }
 0x61d   : > { %v3684_v53 = vsel %vm3563_vm3, %v3683_v14, %v3682_v31  ;;  %v3785_v54 = vadd.s32 %v3784_v50, %v3775_v19  ;;  %v3686_v28 = vsel %vm3563_vm3, %v3685_v18, %v6370_v32 }
 0x61e   : > { %v3687_v26 = vsel %vm6454_vm8, %v6129_v60, %v3684_v53  ;;  %v3811_v9 = vadd.s32 1, %v3807_v23  ;;  %v3688_v29 = vsel %vm6454_vm8, 0, %v3686_v28 }
 0x61f   : > { %v3689_v11 = vmul.f32 %v3687_v26, %v3687_v26  ;;  %vm3810_vm9 = vc.u32 %v3785_v54, %v3804_v5  ;;  %v3705_v58 = vand.u32 3, %v3688_v29  ;;  %v3809_v35 = vadd.s32 %v3804_v5, %v3785_v54 }
 0x620   : > { %v3812_v0 = vsel %vm3810_vm9, %v3811_v9, %v3807_v23 }
 0x621   : > { %v3690_v4 = vmul.f32 -0.001358992, %v3689_v11  ;;  %v3697_v34 = vmul.f32 -0.00019511016, %v3689_v11  ;;  %v3813_v24 = vadd.s32 %v3812_v0, %v3808_v10  ;;  %vm3707_vm11 = vcmp.eq.s32.totalorder %v3705_v58, 0 }
 0x622   : > { %vm3710_vm12 = vcmp.eq.s32.totalorder %v3705_v58, 2  ;;  %vm3706_vm13 = vcmp.lt.s32.totalorder %v3705_v58, 2 }
 0x623   : > { %v3691_v7 = vadd.f32 0.041655596, %v3690_v4  ;;  %v3698_v36 = vadd.f32 0.008332121, %v3697_v34  ;;  %v3814_v47 = vadd.s32 536870912, %v3813_v24 }
 0x625   : > { %v3692_v16 = vmul.f32 %v3691_v7, %v3689_v11  ;;  %v3699_v20 = vmul.f32 %v3698_v36, %v3689_v11  ;;  %v3815_v37 = vshrl.u32 %v3814_v47, 30 }
 0x627   : > { %v3693_v6 = vadd.f32 -0.4999988, %v3692_v16  ;;  %v3700_v33 = vadd.f32 -0.16666654, %v3699_v20  ;;  %v3816_v1 = vshll.u32 %v3815_v37, 30  ;;  %v3839_v19 = vsub.s32 4, %v3815_v37 }
 0x629   : > { %v3694_v57 = vmul.f32 %v3693_v6, %v3689_v11  ;;  %v3701_v62 = vmul.f32 %v3700_v33, %v3689_v11  ;;  %v3817_v48 = vsub.s32 %v3813_v24, %v3816_v1  ;;  %v3840_v54 = vsel %vm3717_vm1, %v3839_v19, %v3815_v37 }
 0x62a   : > { %v3842_v15 = vsel %vm6478_vm2, 0, %v3840_v54 }
 0x62b   : > { %v3695_v2 = vadd.f32 1.0, %v3694_v57  ;;  %v3702_v40 = vadd.f32 1.0, %v3701_v62  ;;  %vm3818_vm10 = vcmp.lt.s32.totalorder %v3817_v48, 0  ;;  %v3819_v49 = vsub.s32 0, %v3817_v48 }
 0x62c   : > { %v3859_v7 = vand.u32 3, %v3842_v15 }
 0x62d   : > { %v3703_v3 = vmul.f32 %v3702_v40, %v3687_v26  ;;  %v3711_v59 = vxor.u32 2147483648, %v3695_v2  ;;  %v3820_v39 = vsel %vm3818_vm10, %v3819_v49, %v3817_v48 }
 0x62e   : > { %v3821_v17 = vclz %v3820_v39  ;;  %vm3861_vm3 = vcmp.eq.s32.totalorder %v3859_v7, 0  ;;  %vm3864_vm4 = vcmp.eq.s32.totalorder %v3859_v7, 2  ;;  %vm3860_vm6 = vcmp.lt.s32.totalorder %v3859_v7, 2 }
 0x62f   : > { %v3708_v32 = vxor.u32 2147483648, %v3703_v3  ;;  %v3712_v51 = vsel %vm3710_vm12, %v3711_v59, %v3703_v3 }
 0x630   : > { %v4158_v41 = vadd.s32 4294967294, %v3821_v17 }
 0x631   : > { %v3709_v46 = vsel %vm3707_vm11, %v3695_v2, %v3708_v32 }
 0x632   : > { %v3713_v25 = vsel %vm3706_vm13, %v3709_v46, %v3712_v51  ;;  %vm4159_vm14 = vcmp.lt.s32.totalorder %v4158_v41, 0 }
 0x633   : > { %v3714_v27 = vsel %vm3704_vm15, nan, %v3713_v25  ;;  %v3824_v31 = vsel %vm4159_vm14, 0, %v4158_v41 }
 0x634   : > { %3883 = vst.msk [vmem:[%s4897_s25 + $0x70] sm:$0xff] %vm627_vm0, %v3714_v27  ;;  %v3825_v63 = vsub.s32 32, %v3824_v31  ;;  %v3829_v8 = vsub.s32 4294967266, %v3824_v31  ;;  %v3826_v61 = vshll.u32 %v3817_v48, %v3824_v31 }
 0x636   : > { %v3827_v56 = vshrl.u32 %v3809_v35, %v3825_v63  ;;  %v3830_v14 = vadd.s32 127, %v3829_v8 }
 0x638   : > { %v3828_v30 = vor.u32 %v3827_v56, %v3826_v61  ;;  %v3831_v38 = vshll.u32 %v3830_v14, 23 }
 0x63a   : > { %v3832_v45 = vor.u32 4788187, %v3831_v38  ;;  %v3835_v55 = vcvt.s32.f32 %v3828_v30 }
 0x63c   : > { %v3833_v21 = vand.u32 2147483647, %v3832_v45 }
 0x63e   : > { %v3836_v13 = vmul.f32 %v3835_v55, %v3833_v21 }
 0x640   : > { %v3837_v60 = vxor.u32 2147483648, %v3836_v13 }
 0x642   : > { %v3838_v44 = vsel %vm3717_vm1, %v3837_v60, %v3836_v13 }
 0x643   : > { %v3841_v53 = vsel %vm6478_vm2, %v6324_v22, %v3838_v44 }
 0x644   : > { %v3843_v52 = vmul.f32 %v3841_v53, %v3841_v53 }
 0x646   : > { %v3844_v43 = vmul.f32 -0.001358992, %v3843_v52  ;;  %v3851_v26 = vmul.f32 -0.00019511016, %v3843_v52 }
 0x648   : > { %v3845_v50 = vadd.f32 0.041655596, %v3844_v43  ;;  %v3852_v11 = vadd.f32 0.008332121, %v3851_v26 }
 0x64a   : > { %v3846_v42 = vmul.f32 %v3845_v50, %v3843_v52  ;;  %v3853_v23 = vmul.f32 %v3852_v11, %v3843_v52 }
 0x64c   : > { %v3847_v5 = vadd.f32 -0.4999988, %v3846_v42  ;;  %v3854_v4 = vadd.f32 -0.16666654, %v3853_v23 }
 0x64e   : > { %v3848_v34 = vmul.f32 %v3847_v5, %v3843_v52  ;;  %v3855_v9 = vmul.f32 %v3854_v4, %v3843_v52 }
 0x650   : > { %v3849_v18 = vadd.f32 1.0, %v3848_v34  ;;  %v3856_v10 = vadd.f32 1.0, %v3855_v9 }
 0x652   : > { %v3857_v36 = vmul.f32 %v3856_v10, %v3841_v53  ;;  %v3865_v0 = vxor.u32 2147483648, %v3849_v18 }
 0x654   : > { %v3862_v24 = vxor.u32 2147483648, %v3857_v36  ;;  %v3866_v20 = vsel %vm3864_vm4, %v3865_v0, %v3857_v36 }
 0x656   : > { %v3863_v16 = vsel %vm3861_vm3, %v3849_v18, %v3862_v24 }
 0x657   : > { %v3867_v28 = vsel %vm3860_vm6, %v3863_v16, %v3866_v20 }
 0x658   : > { %v3868_v47 = vsel %vm3858_vm7, nan, %v3867_v28 }
 0x659   : > { %3884 = vst.msk [vmem:[%s4897_s25 + $0x78] sm:$0xff] %vm627_vm0, %v3868_v47 }
 0x65a PF: > { %s26_s18 = sadd.s32 1, %s4243_s18  }
 0x65b   : > { %p23_p4 = scmp.ge.s32.totalorder %s26_s18, 4  }
 0x65d   :  { %25 = sbr.rel (!%p23_p4) target bundleno = 1 (0x1), region = 121 }

</bundles_post_ra>
